<compile_context>
chip_gen: v5e
topology: v5e:2x2
jax: 0.10.0
libtpu: 0.0.40
codegen_flags: <defaults>
</compile_context>

<pallas_src>
import math

import jax
import jax.numpy as jnp
from jax.experimental import pallas as pl
from jax.experimental.pallas import tpu as pltpu


def _round_up(x, m):
    return (x + m - 1) // m * m


def _largest_divisor(n, candidates):
    for c in candidates:
        if c <= n and n % c == 0:
            return c
    return 1


# ----------------------------------------------------------------------------
# Fused bidirectional LSTM kernel.
# Grid = (direction, time_block).  h/c live in VMEM scratch across time blocks
# (time axis is "arbitrary" => executed sequentially per core).  Gate order in
# the packed weights is i, f, o, g; each gate occupies a 128-aligned column
# slab.
# ----------------------------------------------------------------------------
def _bilstm_kernel(x_ref, wih_ref, whh_ref, b_ref, out_ref,
                   gx_scr, h_scr, c_scr):
    d = pl.program_id(0)                       # 0 = forward, 1 = backward

    @pl.when(pl.program_id(1) == 0)
    def _():
        h_scr[...] = jnp.zeros_like(h_scr)
        c_scr[...] = jnp.zeros_like(c_scr)

    Tt, B, nIn = x_ref.shape
    Hp = h_scr.shape[-1]

    # Hoisted input projection: one big MXU matmul for the whole time block,
    # bias folded in.  Stored to VMEM scratch so the per-step loop only reads
    # one (B, 4Hp) slab at a time.
    x2d = x_ref[...].reshape(Tt * B, nIn)
    gx = (jnp.dot(x2d, wih_ref[...], preferred_element_type=jnp.float32)
          + b_ref[...])                        # (Tt*B, 4*Hp)
    gx_scr[...] = gx.reshape(Tt, B, 4 * Hp)

    # Sequential recurrence over the block.  The backward direction consumes
    # the block in reversed time order but writes its result at the original
    # time index, so out[t] is indexed by original time for both directions.
    for tau in range(Tt):
        t_idx = tau + d * (Tt - 1 - 2 * tau)   # tau (fwd) or Tt-1-tau (bwd)
        gates = gx_scr[t_idx] + jnp.dot(
            h_scr[...], whh_ref[...], preferred_element_type=jnp.float32)
        # gate slabs: [i | f | o | g] -> one sigmoid over 3 slabs, one tanh.
        ifo = jax.nn.sigmoid(gates[:, :3 * Hp])
        i_g = ifo[:, 0 * Hp:1 * Hp]
        f_g = ifo[:, 1 * Hp:2 * Hp]
        o_g = ifo[:, 2 * Hp:3 * Hp]
        g_g = jnp.tanh(gates[:, 3 * Hp:4 * Hp])
        c = f_g * c_scr[...] + i_g * g_g
        h = o_g * jnp.tanh(c)
        c_scr[...] = c
        h_scr[...] = h
        # Lane-aligned, unmasked (Bp, Hp) store straight into the output block.
        out_ref[t_idx] = h.astype(out_ref.dtype)


def bidirectional_lstm(x, wih_s, whh_s, bias_s, *, time_block=None):
    """x: (T, Bp, nIn) f32, Bp % 8 == 0.
    wih_s: (2, nIn, 4*Hp), whh_s: (2, Hp, 4*Hp), bias_s: (2, 1, 4*Hp).
    Returns (2, T, Bp, Hp): [0] forward, [1] backward hidden states, both
    indexed in original time order.
    """
    T, Bp, nIn = x.shape
    Hp = whh_s.shape[1]
    Tt = time_block or _largest_divisor(T, (16, 8, 4, 2, 1))
    nT = T // Tt

    flops = 2 * (2 * T * Bp * nIn * 4 * Hp + 2 * T * Bp * Hp * 4 * Hp)
    trans = 2 * 5 * T * Bp * Hp
    nbytes = 4 * (2 * T * Bp * nIn + wih_s.size + whh_s.size + bias_s.size
                  + 2 * T * Bp * Hp)

    return pl.pallas_call(
        _bilstm_kernel,
        out_shape=jax.ShapeDtypeStruct((2, T, Bp, Hp), jnp.float32),
        grid_spec=pltpu.PrefetchScalarGridSpec(
            num_scalar_prefetch=0,
            grid=(2, nT),
            in_specs=[
                # Same x feeds both directions; backward walks blocks in
                # reverse: block index t (fwd) or nT-1-t (bwd).
                pl.BlockSpec((Tt, Bp, nIn),
                             lambda d, t: (t + d * (nT - 1 - 2 * t), 0, 0)),
                # Per-direction weights/bias; leading dim squeezed away so the
                # kernel sees plain 2-D operands (fetched once per direction).
                pl.BlockSpec((None, nIn, 4 * Hp), lambda d, t: (d, 0, 0)),
                pl.BlockSpec((None, Hp, 4 * Hp), lambda d, t: (d, 0, 0)),
                pl.BlockSpec((None, 1, 4 * Hp), lambda d, t: (d, 0, 0)),
            ],
            out_specs=pl.BlockSpec(
                (None, Tt, Bp, Hp),
                lambda d, t: (d, t + d * (nT - 1 - 2 * t), 0, 0)),
            scratch_shapes=[
                pltpu.VMEM((Tt, Bp, 4 * Hp), jnp.float32),   # gx_scr
                pltpu.VMEM((Bp, Hp), jnp.float32),           # h_scr
                pltpu.VMEM((Bp, Hp), jnp.float32),           # c_scr
            ],
        ),
        compiler_params=pltpu.CompilerParams(
            dimension_semantics=("parallel", "arbitrary")),
        cost_estimate=pl.CostEstimate(
            flops=int(flops), transcendentals=int(trans),
            bytes_accessed=int(nbytes)),
    )(x, wih_s, whh_s, bias_s)


# ----------------------------------------------------------------------------
# Fused output projection: out = h_f @ W_top + h_b @ W_bot + b.
# Consumes the (2, T, B, Hp) direction planes directly (no concat), tiled over
# time-blocks of rows with "parallel" semantics; nOut padded to 128 lanes so
# stores are unmasked.
# ----------------------------------------------------------------------------
def _proj_kernel(h_ref, wt_ref, wb_ref, b_ref, o_ref):
    _, rT, B, Hp = h_ref.shape
    nOutP = o_ref.shape[-1]
    hf = h_ref[0].reshape(rT * B, Hp)
    hb = h_ref[1].reshape(rT * B, Hp)
    out = (jnp.dot(hf, wt_ref[...], preferred_element_type=jnp.float32)
           + jnp.dot(hb, wb_ref[...], preferred_element_type=jnp.float32)
           + b_ref[...])
    o_ref[...] = out.reshape(rT, B, nOutP).astype(o_ref.dtype)


def bidirectional_projection(h_all, w_top, w_bot, bias, *, row_block=None):
    """h_all: (2, T, Bp, Hp); w_top/w_bot: (Hp, nOutP); bias: (1, nOutP).
    Returns (T, Bp, nOutP)."""
    _, T, Bp, Hp = h_all.shape
    nOutP = w_top.shape[1]
    rT = row_block or _largest_divisor(T, (64, 32, 16, 8, 4, 2, 1))
    nR = T // rT

    flops = 2 * 2 * T * Bp * Hp * nOutP
    nbytes = 4 * (h_all.size + w_top.size + w_bot.size + bias.size
                  + T * Bp * nOutP)

    return pl.pallas_call(
        _proj_kernel,
        out_shape=jax.ShapeDtypeStruct((T, Bp, nOutP), jnp.float32),
        grid_spec=pltpu.PrefetchScalarGridSpec(
            num_scalar_prefetch=0,
            grid=(nR,),
            in_specs=[
                pl.BlockSpec((2, rT, Bp, Hp), lambda r: (0, r, 0, 0)),
                pl.BlockSpec((Hp, nOutP), lambda r: (0, 0)),
                pl.BlockSpec((Hp, nOutP), lambda r: (0, 0)),
                pl.BlockSpec((1, nOutP), lambda r: (0, 0)),
            ],
            out_specs=pl.BlockSpec((rT, Bp, nOutP), lambda r: (r, 0, 0)),
        ),
        compiler_params=pltpu.CompilerParams(
            dimension_semantics=("parallel",)),
        cost_estimate=pl.CostEstimate(
            flops=int(flops), transcendentals=0, bytes_accessed=int(nbytes)),
    )(h_all, w_top, w_bot, bias)


# ----------------------------------------------------------------------------
# Module wrapper: parameter init (PyTorch layout) + one-time packing into the
# padded / gate-aligned / direction-stacked kernel layout.
# ----------------------------------------------------------------------------
class BidirectionalLSTM:
    def __init__(self, nIn, nHidden, nOut, key):
        self.nIn, self.nHidden, self.nOut = nIn, nHidden, nOut
        ks = jax.random.split(key, 10)
        k_lstm = 1.0 / math.sqrt(nHidden)
        u = lambda k, shape, bound: jax.random.uniform(
            k, shape, jnp.float32, -bound, bound)

        # forward direction params (PyTorch shapes: W_ih (4H,nIn), W_hh (4H,H))
        self.w_ih_f = u(ks[0], (4 * nHidden, nIn), k_lstm)
        self.w_hh_f = u(ks[1], (4 * nHidden, nHidden), k_lstm)
        self.b_ih_f = u(ks[2], (4 * nHidden,), k_lstm)
        self.b_hh_f = u(ks[3], (4 * nHidden,), k_lstm)
        # backward direction params
        self.w_ih_b = u(ks[4], (4 * nHidden, nIn), k_lstm)
        self.w_hh_b = u(ks[5], (4 * nHidden, nHidden), k_lstm)
        self.b_ih_b = u(ks[6], (4 * nHidden,), k_lstm)
        self.b_hh_b = u(ks[7], (4 * nHidden,), k_lstm)
        # embedding Linear(2H -> nOut)
        k_lin = 1.0 / math.sqrt(2 * nHidden)
        self.w_emb = u(ks[8], (nOut, 2 * nHidden), k_lin)
        self.b_emb = u(ks[9], (nOut,), k_lin)

        # --- one-time kernel-friendly packing (not per call) ----------------
        H = nHidden
        Hp = _round_up(H, 128)            # lane-aligned gate slabs
        nOutP = _round_up(nOut, 128)      # lane-dense projection stores
        self.Hp, self.nOutP = Hp, nOutP

        def pack_dir(w_ih, w_hh, b_ih, b_hh):
            wih_p = jnp.zeros((nIn, 4 * Hp), jnp.float32)
            whh_p = jnp.zeros((Hp, 4 * Hp), jnp.float32)
            b_p = jnp.zeros((4 * Hp,), jnp.float32)
            # Kernel gate-slab order: i, f, o, g (sigmoid gates contiguous).
            # PyTorch row-chunk order is i, f, g, o.
            for slab, g in enumerate((0, 1, 3, 2)):
                wih_p = wih_p.at[:, slab * Hp:slab * Hp + H].set(
                    w_ih[g * H:(g + 1) * H, :].T)
                whh_p = whh_p.at[:H, slab * Hp:slab * Hp + H].set(
                    w_hh[g * H:(g + 1) * H, :].T)
                b_p = b_p.at[slab * Hp:slab * Hp + H].set(
                    b_ih[g * H:(g + 1) * H] + b_hh[g * H:(g + 1) * H])
            return wih_p, whh_p, b_p

        f_pack = pack_dir(self.w_ih_f, self.w_hh_f, self.b_ih_f, self.b_hh_f)
        b_pack = pack_dir(self.w_ih_b, self.w_hh_b, self.b_ih_b, self.b_hh_b)
        self.wih_s = jnp.stack([f_pack[0], b_pack[0]])          # (2, nIn, 4Hp)
        self.whh_s = jnp.stack([f_pack[1], b_pack[1]])          # (2, Hp, 4Hp)
        self.bias_s = jnp.stack([f_pack[2], b_pack[2]])[:, None, :]  # (2,1,4Hp)

        # projection weight split into its h_f / h_b halves, padded
        self.w_top = jnp.zeros((Hp, nOutP), jnp.float32).at[:H, :nOut].set(
            self.w_emb[:, :H].T)
        self.w_bot = jnp.zeros((Hp, nOutP), jnp.float32).at[:H, :nOut].set(
            self.w_emb[:, H:].T)
        self.b_emb_p = jnp.zeros((1, nOutP), jnp.float32).at[0, :nOut].set(
            self.b_emb)

    def __call__(self, x):
        T, B, _ = x.shape
        Bp = _round_up(B, 8)               # f32 sublane-dense batch
        if Bp != B:
            x = jnp.pad(x, ((0, 0), (0, Bp - B), (0, 0)))
        h_all = bidirectional_lstm(x, self.wih_s, self.whh_s, self.bias_s)
        out_p = bidirectional_projection(h_all, self.w_top, self.w_bot,
                                         self.b_emb_p)
        return out_p[:, :B, :self.nOut]


# ----------------------------------------------------------------------------
# Pure-JAX reference (for correctness check only).
# ----------------------------------------------------------------------------
def _lstm_ref_dir(x, w_ih, w_hh, b_ih, b_hh, reverse):
    H = w_hh.shape[1]
    B = x.shape[1]

    def step(carry, xt):
        h, c = carry
        gates = xt @ w_ih.T + b_ih + h @ w_hh.T + b_hh
        i, f, g, o = jnp.split(gates, 4, axis=-1)
        i, f, o = jax.nn.sigmoid(i), jax.nn.sigmoid(f), jax.nn.sigmoid(o)
        g = jnp.tanh(g)
        c = f * c + i * g
        h = o * jnp.tanh(c)
        return (h, c), h

    xs = x[::-1] if reverse else x
    init = (jnp.zeros((B, H), jnp.float32), jnp.zeros((B, H), jnp.float32))
    _, hs = jax.lax.scan(step, init, xs)
    return hs[::-1] if reverse else hs


def _ref_forward(m, x):
    T, B, _ = x.shape
    h_f = _lstm_ref_dir(x, m.w_ih_f, m.w_hh_f, m.b_ih_f, m.b_hh_f, False)
    h_b = _lstm_ref_dir(x, m.w_ih_b, m.w_hh_b, m.b_ih_b, m.b_hh_b, True)
    rec = jnp.concatenate([h_f, h_b], axis=-1).reshape(T * B, -1)
    out = rec @ m.w_emb.T + m.b_emb
    return out.reshape(T, B, -1)


if __name__ == "__main__":
    T, B, nIn, nHidden, nOut = 8, 2, 16, 32, 16
    key = jax.random.PRNGKey(0)
    k_param, k_x = jax.random.split(key)

    model = BidirectionalLSTM(nIn, nHidden, nOut, k_param)
    x = jax.random.normal(k_x, (T, B, nIn), jnp.float32)

    out = model(x)
    out = jax.block_until_ready(out)

    ref = _ref_forward(model, x)
    assert out.shape == (T, B, nOut)
    assert jnp.allclose(out, ref, rtol=1e-4, atol=1e-4), (
        float(jnp.max(jnp.abs(out - ref))))

    print("KERNEL_OK")
</pallas_src>

<mosaic_0001>
module attributes {stable_mosaic.version = 11 : i64} {
  func.func @_bilstm_kernel(%arg0: i32, %arg1: i32, %arg2: memref<8x8x16xf32, #tpu.memory_space<vmem>>, %arg3: memref<1x16x512xf32, #tpu.memory_space<vmem>>, %arg4: memref<1x128x512xf32, #tpu.memory_space<vmem>>, %arg5: memref<1x1x512xf32, #tpu.memory_space<vmem>>, %arg6: memref<1x8x8x128xf32, #tpu.memory_space<vmem>>, %arg7: memref<8x8x512xf32, #tpu.memory_space<vmem>>, %arg8: memref<8x128xf32, #tpu.memory_space<vmem>>, %arg9: memref<8x128xf32, #tpu.memory_space<vmem>>) attributes {dimension_semantics = [#tpu.dimension_semantics<parallel>, #tpu.dimension_semantics<arbitrary>], iteration_bounds = array<i64: 2, 1>, scalar_prefetch = 0 : i64, scratch_operands = 3 : i64, tpu.core_type = #tpu.core_type<tc>, window_params = [{transform_indices = @transform_0, window_bounds = array<i64: 8, 8, 16>}, {transform_indices = @transform_1, window_bounds = array<i64: 1, 16, 512>}, {transform_indices = @transform_2, window_bounds = array<i64: 1, 128, 512>}, {transform_indices = @transform_3, window_bounds = array<i64: 1, 1, 512>}, {transform_indices = @transform_4, window_bounds = array<i64: 1, 8, 8, 128>}]} {
    %c0_i32 = arith.constant 0 : i32
    %0 = arith.cmpi eq, %arg1, %c0_i32 : i32
    %1 = arith.extui %0 : i1 to i32
    %c0_i32_0 = arith.constant 0 : i32
    %2 = arith.cmpi ne, %1, %c0_i32_0 : i32
    scf.if %2 {
      %cst_161 = arith.constant 0.000000e+00 : f32
      %278 = vector.broadcast %cst_161 : f32 to vector<8x128xf32>
      %c0_162 = arith.constant 0 : index
      %c0_163 = arith.constant 0 : index
      %279 = vector.load %arg8[%c0_162, %c0_163] : memref<8x128xf32, #tpu.memory_space<vmem>>, vector<8x128xf32>
      tpu.vector_store %arg8[%c0_162, %c0_163], %278 {strides = array<i32>} : memref<8x128xf32, #tpu.memory_space<vmem>>, vector<8x128xf32>,
      %cst_164 = arith.constant 0.000000e+00 : f32
      %280 = vector.broadcast %cst_164 : f32 to vector<8x128xf32>
      %c0_165 = arith.constant 0 : index
      %c0_166 = arith.constant 0 : index
      %281 = vector.load %arg9[%c0_165, %c0_166] : memref<8x128xf32, #tpu.memory_space<vmem>>, vector<8x128xf32>
      tpu.vector_store %arg9[%c0_165, %c0_166], %280 {strides = array<i32>} : memref<8x128xf32, #tpu.memory_space<vmem>>, vector<8x128xf32>,
    } else {
    }
    %c0 = arith.constant 0 : index
    %c0_1 = arith.constant 0 : index
    %c0_2 = arith.constant 0 : index
    %3 = vector.load %arg2[%c0, %c0_1, %c0_2] : memref<8x8x16xf32, #tpu.memory_space<vmem>>, vector<8x8x16xf32>
    %4 = vector.shape_cast %3 : vector<8x8x16xf32> to vector<64x16xf32>
    %c0_3 = arith.constant 0 : index
    %c0_4 = arith.constant 0 : index
    %c0_5 = arith.constant 0 : index
    %5 = vector.load %arg3[%c0_3, %c0_4, %c0_5] : memref<1x16x512xf32, #tpu.memory_space<vmem>>, vector<1x16x512xf32>
    %6 = vector.shape_cast %5 : vector<1x16x512xf32> to vector<16x512xf32>
    %cst = arith.constant dense<0.000000e+00> : vector<64x512xf32>
    %7 = tpu.matmul %4, %6, %cst {dimension_numbers = #tpu.dot_dimension_numbers<[1], [0], [0], [1], [0, 0, 1, 1], [], []>} : vector<64x16xf32>, vector<16x512xf32>, vector<64x512xf32> -> vector<64x512xf32>
    %c0_6 = arith.constant 0 : index
    %c0_7 = arith.constant 0 : index
    %c0_8 = arith.constant 0 : index
    %8 = vector.load %arg5[%c0_6, %c0_7, %c0_8] : memref<1x1x512xf32, #tpu.memory_space<vmem>>, vector<1x1x512xf32>
    %9 = vector.shape_cast %8 : vector<1x1x512xf32> to vector<1x512xf32>
    %10 = vector.broadcast %9 : vector<1x512xf32> to vector<64x512xf32>
    %11 = arith.addf %7, %10 : vector<64x512xf32>
    %12 = vector.shape_cast %11 : vector<64x512xf32> to vector<8x8x512xf32>
    %c0_9 = arith.constant 0 : index
    %c0_10 = arith.constant 0 : index
    %c0_11 = arith.constant 0 : index
    %13 = vector.load %arg7[%c0_9, %c0_10, %c0_11] : memref<8x8x512xf32, #tpu.memory_space<vmem>>, vector<8x8x512xf32>
    tpu.vector_store %arg7[%c0_9, %c0_10, %c0_11], %12 {strides = array<i32>} : memref<8x8x512xf32, #tpu.memory_space<vmem>>, vector<8x8x512xf32>,
    %c7_i32 = arith.constant 7 : i32
    %14 = arith.muli %arg0, %c7_i32 : i32
    %c0_i32_12 = arith.constant 0 : i32
    %15 = arith.addi %c0_i32_12, %14 : i32
    %16 = arith.index_cast %15 : i32 to index
    %c0_13 = arith.constant 0 : index
    %c0_14 = arith.constant 0 : index
    %17 = vector.load %arg7[%16, %c0_13, %c0_14] : memref<8x8x512xf32, #tpu.memory_space<vmem>>, vector<1x8x512xf32>
    %18 = vector.shape_cast %17 : vector<1x8x512xf32> to vector<8x512xf32>
    %c0_15 = arith.constant 0 : index
    %c0_16 = arith.constant 0 : index
    %19 = vector.load %arg8[%c0_15, %c0_16] : memref<8x128xf32, #tpu.memory_space<vmem>>, vector<8x128xf32>
    %c0_17 = arith.constant 0 : index
    %c0_18 = arith.constant 0 : index
    %c0_19 = arith.constant 0 : index
    %20 = vector.load %arg4[%c0_17, %c0_18, %c0_19] : memref<1x128x512xf32, #tpu.memory_space<vmem>>, vector<1x128x512xf32>
    %21 = vector.shape_cast %20 : vector<1x128x512xf32> to vector<128x512xf32>
    %cst_20 = arith.constant dense<0.000000e+00> : vector<8x512xf32>
    %22 = tpu.matmul %19, %21, %cst_20 {dimension_numbers = #tpu.dot_dimension_numbers<[1], [0], [0], [1], [0, 0, 1, 1], [], []>} : vector<8x128xf32>, vector<128x512xf32>, vector<8x512xf32> -> vector<8x512xf32>
    %23 = arith.addf %18, %22 : vector<8x512xf32>
    %24 = vector.extract_strided_slice %23 {offsets = [0, 0], sizes = [8, 384], strides = [1, 1]} : vector<8x512xf32> to vector<8x384xf32>
    %25 = arith.negf %24 : vector<8x384xf32>
    %26 = math.exp %25 : vector<8x384xf32>
    %cst_21 = arith.constant 1.000000e+00 : f32
    %27 = vector.broadcast %cst_21 : f32 to vector<8x384xf32>
    %28 = arith.addf %27, %26 : vector<8x384xf32>
    %29 = arith.divf %27, %28 : vector<8x384xf32>
    %30 = vector.extract_strided_slice %29 {offsets = [0, 0], sizes = [8, 128], strides = [1, 1]} : vector<8x384xf32> to vector<8x128xf32>
    %31 = vector.extract_strided_slice %29 {offsets = [0, 128], sizes = [8, 128], strides = [1, 1]} : vector<8x384xf32> to vector<8x128xf32>
    %32 = vector.extract_strided_slice %29 {offsets = [0, 256], sizes = [8, 128], strides = [1, 1]} : vector<8x384xf32> to vector<8x128xf32>
    %33 = vector.extract_strided_slice %23 {offsets = [0, 384], sizes = [8, 128], strides = [1, 1]} : vector<8x512xf32> to vector<8x128xf32>
    %34 = math.tanh %33 : vector<8x128xf32>
    %c0_22 = arith.constant 0 : index
    %c0_23 = arith.constant 0 : index
    %35 = vector.load %arg9[%c0_22, %c0_23] : memref<8x128xf32, #tpu.memory_space<vmem>>, vector<8x128xf32>
    %36 = arith.mulf %31, %35 : vector<8x128xf32>
    %37 = arith.mulf %30, %34 : vector<8x128xf32>
    %38 = arith.addf %36, %37 : vector<8x128xf32>
    %39 = math.tanh %38 : vector<8x128xf32>
    %40 = arith.mulf %32, %39 : vector<8x128xf32>
    %c0_24 = arith.constant 0 : index
    %c0_25 = arith.constant 0 : index
    %41 = vector.load %arg9[%c0_24, %c0_25] : memref<8x128xf32, #tpu.memory_space<vmem>>, vector<8x128xf32>
    tpu.vector_store %arg9[%c0_24, %c0_25], %38 {strides = array<i32>} : memref<8x128xf32, #tpu.memory_space<vmem>>, vector<8x128xf32>,
    %c0_26 = arith.constant 0 : index
    %c0_27 = arith.constant 0 : index
    %42 = vector.load %arg8[%c0_26, %c0_27] : memref<8x128xf32, #tpu.memory_space<vmem>>, vector<8x128xf32>
    tpu.vector_store %arg8[%c0_26, %c0_27], %40 {strides = array<i32>} : memref<8x128xf32, #tpu.memory_space<vmem>>, vector<8x128xf32>,
    %c0_28 = arith.constant 0 : index
    %43 = arith.index_cast %15 : i32 to index
    %c0_29 = arith.constant 0 : index
    %c0_30 = arith.constant 0 : index
    %44 = vector.load %arg6[%c0_28, %43, %c0_29, %c0_30] : memref<1x8x8x128xf32, #tpu.memory_space<vmem>>, vector<1x1x8x128xf32>
    %45 = vector.shape_cast %44 : vector<1x1x8x128xf32> to vector<8x128xf32>
    %46 = vector.shape_cast %40 : vector<8x128xf32> to vector<1x1x8x128xf32>
    tpu.vector_store %arg6[%c0_28, %43, %c0_29, %c0_30], %46 {strides = array<i32>} : memref<1x8x8x128xf32, #tpu.memory_space<vmem>>, vector<1x1x8x128xf32>,
    %c5_i32 = arith.constant 5 : i32
    %47 = arith.muli %arg0, %c5_i32 : i32
    %c1_i32 = arith.constant 1 : i32
    %48 = arith.addi %c1_i32, %47 : i32
    %49 = arith.index_cast %48 : i32 to index
    %c0_31 = arith.constant 0 : index
    %c0_32 = arith.constant 0 : index
    %50 = vector.load %arg7[%49, %c0_31, %c0_32] : memref<8x8x512xf32, #tpu.memory_space<vmem>>, vector<1x8x512xf32>
    %51 = vector.shape_cast %50 : vector<1x8x512xf32> to vector<8x512xf32>
    %c0_33 = arith.constant 0 : index
    %c0_34 = arith.constant 0 : index
    %52 = vector.load %arg8[%c0_33, %c0_34] : memref<8x128xf32, #tpu.memory_space<vmem>>, vector<8x128xf32>
    %c0_35 = arith.constant 0 : index
    %c0_36 = arith.constant 0 : index
    %c0_37 = arith.constant 0 : index
    %53 = vector.load %arg4[%c0_35, %c0_36, %c0_37] : memref<1x128x512xf32, #tpu.memory_space<vmem>>, vector<1x128x512xf32>
    %54 = vector.shape_cast %53 : vector<1x128x512xf32> to vector<128x512xf32>
    %cst_38 = arith.constant dense<0.000000e+00> : vector<8x512xf32>
    %55 = tpu.matmul %52, %54, %cst_38 {dimension_numbers = #tpu.dot_dimension_numbers<[1], [0], [0], [1], [0, 0, 1, 1], [], []>} : vector<8x128xf32>, vector<128x512xf32>, vector<8x512xf32> -> vector<8x512xf32>
    %56 = arith.addf %51, %55 : vector<8x512xf32>
    %57 = vector.extract_strided_slice %56 {offsets = [0, 0], sizes = [8, 384], strides = [1, 1]} : vector<8x512xf32> to vector<8x384xf32>
    %58 = arith.negf %57 : vector<8x384xf32>
    %59 = math.exp %58 : vector<8x384xf32>
    %cst_39 = arith.constant 1.000000e+00 : f32
    %60 = vector.broadcast %cst_39 : f32 to vector<8x384xf32>
    %61 = arith.addf %60, %59 : vector<8x384xf32>
    %62 = arith.divf %60, %61 : vector<8x384xf32>
    %63 = vector.extract_strided_slice %62 {offsets = [0, 0], sizes = [8, 128], strides = [1, 1]} : vector<8x384xf32> to vector<8x128xf32>
    %64 = vector.extract_strided_slice %62 {offsets = [0, 128], sizes = [8, 128], strides = [1, 1]} : vector<8x384xf32> to vector<8x128xf32>
    %65 = vector.extract_strided_slice %62 {offsets = [0, 256], sizes = [8, 128], strides = [1, 1]} : vector<8x384xf32> to vector<8x128xf32>
    %66 = vector.extract_strided_slice %56 {offsets = [0, 384], sizes = [8, 128], strides = [1, 1]} : vector<8x512xf32> to vector<8x128xf32>
    %67 = math.tanh %66 : vector<8x128xf32>
    %c0_40 = arith.constant 0 : index
    %c0_41 = arith.constant 0 : index
    %68 = vector.load %arg9[%c0_40, %c0_41] : memref<8x128xf32, #tpu.memory_space<vmem>>, vector<8x128xf32>
    %69 = arith.mulf %64, %68 : vector<8x128xf32>
    %70 = arith.mulf %63, %67 : vector<8x128xf32>
    %71 = arith.addf %69, %70 : vector<8x128xf32>
    %72 = math.tanh %71 : vector<8x128xf32>
    %73 = arith.mulf %65, %72 : vector<8x128xf32>
    %c0_42 = arith.constant 0 : index
    %c0_43 = arith.constant 0 : index
    %74 = vector.load %arg9[%c0_42, %c0_43] : memref<8x128xf32, #tpu.memory_space<vmem>>, vector<8x128xf32>
    tpu.vector_store %arg9[%c0_42, %c0_43], %71 {strides = array<i32>} : memref<8x128xf32, #tpu.memory_space<vmem>>, vector<8x128xf32>,
    %c0_44 = arith.constant 0 : index
    %c0_45 = arith.constant 0 : index
    %75 = vector.load %arg8[%c0_44, %c0_45] : memref<8x128xf32, #tpu.memory_space<vmem>>, vector<8x128xf32>
    tpu.vector_store %arg8[%c0_44, %c0_45], %73 {strides = array<i32>} : memref<8x128xf32, #tpu.memory_space<vmem>>, vector<8x128xf32>,
    %c0_46 = arith.constant 0 : index
    %76 = arith.index_cast %48 : i32 to index
    %c0_47 = arith.constant 0 : index
    %c0_48 = arith.constant 0 : index
    %77 = vector.load %arg6[%c0_46, %76, %c0_47, %c0_48] : memref<1x8x8x128xf32, #tpu.memory_space<vmem>>, vector<1x1x8x128xf32>
    %78 = vector.shape_cast %77 : vector<1x1x8x128xf32> to vector<8x128xf32>
    %79 = vector.shape_cast %73 : vector<8x128xf32> to vector<1x1x8x128xf32>
    tpu.vector_store %arg6[%c0_46, %76, %c0_47, %c0_48], %79 {strides = array<i32>} : memref<1x8x8x128xf32, #tpu.memory_space<vmem>>, vector<1x1x8x128xf32>,
    %c3_i32 = arith.constant 3 : i32
    %80 = arith.muli %arg0, %c3_i32 : i32
    %c2_i32 = arith.constant 2 : i32
    %81 = arith.addi %c2_i32, %80 : i32
    %82 = arith.index_cast %81 : i32 to index
    %c0_49 = arith.constant 0 : index
    %c0_50 = arith.constant 0 : index
    %83 = vector.load %arg7[%82, %c0_49, %c0_50] : memref<8x8x512xf32, #tpu.memory_space<vmem>>, vector<1x8x512xf32>
    %84 = vector.shape_cast %83 : vector<1x8x512xf32> to vector<8x512xf32>
    %c0_51 = arith.constant 0 : index
    %c0_52 = arith.constant 0 : index
    %85 = vector.load %arg8[%c0_51, %c0_52] : memref<8x128xf32, #tpu.memory_space<vmem>>, vector<8x128xf32>
    %c0_53 = arith.constant 0 : index
    %c0_54 = arith.constant 0 : index
    %c0_55 = arith.constant 0 : index
    %86 = vector.load %arg4[%c0_53, %c0_54, %c0_55] : memref<1x128x512xf32, #tpu.memory_space<vmem>>, vector<1x128x512xf32>
    %87 = vector.shape_cast %86 : vector<1x128x512xf32> to vector<128x512xf32>
    %cst_56 = arith.constant dense<0.000000e+00> : vector<8x512xf32>
    %88 = tpu.matmul %85, %87, %cst_56 {dimension_numbers = #tpu.dot_dimension_numbers<[1], [0], [0], [1], [0, 0, 1, 1], [], []>} : vector<8x128xf32>, vector<128x512xf32>, vector<8x512xf32> -> vector<8x512xf32>
    %89 = arith.addf %84, %88 : vector<8x512xf32>
    %90 = vector.extract_strided_slice %89 {offsets = [0, 0], sizes = [8, 384], strides = [1, 1]} : vector<8x512xf32> to vector<8x384xf32>
    %91 = arith.negf %90 : vector<8x384xf32>
    %92 = math.exp %91 : vector<8x384xf32>
    %cst_57 = arith.constant 1.000000e+00 : f32
    %93 = vector.broadcast %cst_57 : f32 to vector<8x384xf32>
    %94 = arith.addf %93, %92 : vector<8x384xf32>
    %95 = arith.divf %93, %94 : vector<8x384xf32>
    %96 = vector.extract_strided_slice %95 {offsets = [0, 0], sizes = [8, 128], strides = [1, 1]} : vector<8x384xf32> to vector<8x128xf32>
    %97 = vector.extract_strided_slice %95 {offsets = [0, 128], sizes = [8, 128], strides = [1, 1]} : vector<8x384xf32> to vector<8x128xf32>
    %98 = vector.extract_strided_slice %95 {offsets = [0, 256], sizes = [8, 128], strides = [1, 1]} : vector<8x384xf32> to vector<8x128xf32>
    %99 = vector.extract_strided_slice %89 {offsets = [0, 384], sizes = [8, 128], strides = [1, 1]} : vector<8x512xf32> to vector<8x128xf32>
    %100 = math.tanh %99 : vector<8x128xf32>
    %c0_58 = arith.constant 0 : index
    %c0_59 = arith.constant 0 : index
    %101 = vector.load %arg9[%c0_58, %c0_59] : memref<8x128xf32, #tpu.memory_space<vmem>>, vector<8x128xf32>
    %102 = arith.mulf %97, %101 : vector<8x128xf32>
    %103 = arith.mulf %96, %100 : vector<8x128xf32>
    %104 = arith.addf %102, %103 : vector<8x128xf32>
    %105 = math.tanh %104 : vector<8x128xf32>
    %106 = arith.mulf %98, %105 : vector<8x128xf32>
    %c0_60 = arith.constant 0 : index
    %c0_61 = arith.constant 0 : index
    %107 = vector.load %arg9[%c0_60, %c0_61] : memref<8x128xf32, #tpu.memory_space<vmem>>, vector<8x128xf32>
    tpu.vector_store %arg9[%c0_60, %c0_61], %104 {strides = array<i32>} : memref<8x128xf32, #tpu.memory_space<vmem>>, vector<8x128xf32>,
    %c0_62 = arith.constant 0 : index
    %c0_63 = arith.constant 0 : index
    %108 = vector.load %arg8[%c0_62, %c0_63] : memref<8x128xf32, #tpu.memory_space<vmem>>, vector<8x128xf32>
    tpu.vector_store %arg8[%c0_62, %c0_63], %106 {strides = array<i32>} : memref<8x128xf32, #tpu.memory_space<vmem>>, vector<8x128xf32>,
    %c0_64 = arith.constant 0 : index
    %109 = arith.index_cast %81 : i32 to index
    %c0_65 = arith.constant 0 : index
    %c0_66 = arith.constant 0 : index
    %110 = vector.load %arg6[%c0_64, %109, %c0_65, %c0_66] : memref<1x8x8x128xf32, #tpu.memory_space<vmem>>, vector<1x1x8x128xf32>
    %111 = vector.shape_cast %110 : vector<1x1x8x128xf32> to vector<8x128xf32>
    %112 = vector.shape_cast %106 : vector<8x128xf32> to vector<1x1x8x128xf32>
    tpu.vector_store %arg6[%c0_64, %109, %c0_65, %c0_66], %112 {strides = array<i32>} : memref<1x8x8x128xf32, #tpu.memory_space<vmem>>, vector<1x1x8x128xf32>,
    %c1_i32_67 = arith.constant 1 : i32
    %113 = arith.muli %arg0, %c1_i32_67 : i32
    %c3_i32_68 = arith.constant 3 : i32
    %114 = arith.addi %c3_i32_68, %113 : i32
    %115 = arith.index_cast %114 : i32 to index
    %c0_69 = arith.constant 0 : index
    %c0_70 = arith.constant 0 : index
    %116 = vector.load %arg7[%115, %c0_69, %c0_70] : memref<8x8x512xf32, #tpu.memory_space<vmem>>, vector<1x8x512xf32>
    %117 = vector.shape_cast %116 : vector<1x8x512xf32> to vector<8x512xf32>
    %c0_71 = arith.constant 0 : index
    %c0_72 = arith.constant 0 : index
    %118 = vector.load %arg8[%c0_71, %c0_72] : memref<8x128xf32, #tpu.memory_space<vmem>>, vector<8x128xf32>
    %c0_73 = arith.constant 0 : index
    %c0_74 = arith.constant 0 : index
    %c0_75 = arith.constant 0 : index
    %119 = vector.load %arg4[%c0_73, %c0_74, %c0_75] : memref<1x128x512xf32, #tpu.memory_space<vmem>>, vector<1x128x512xf32>
    %120 = vector.shape_cast %119 : vector<1x128x512xf32> to vector<128x512xf32>
    %cst_76 = arith.constant dense<0.000000e+00> : vector<8x512xf32>
    %121 = tpu.matmul %118, %120, %cst_76 {dimension_numbers = #tpu.dot_dimension_numbers<[1], [0], [0], [1], [0, 0, 1, 1], [], []>} : vector<8x128xf32>, vector<128x512xf32>, vector<8x512xf32> -> vector<8x512xf32>
    %122 = arith.addf %117, %121 : vector<8x512xf32>
    %123 = vector.extract_strided_slice %122 {offsets = [0, 0], sizes = [8, 384], strides = [1, 1]} : vector<8x512xf32> to vector<8x384xf32>
    %124 = arith.negf %123 : vector<8x384xf32>
    %125 = math.exp %124 : vector<8x384xf32>
    %cst_77 = arith.constant 1.000000e+00 : f32
    %126 = vector.broadcast %cst_77 : f32 to vector<8x384xf32>
    %127 = arith.addf %126, %125 : vector<8x384xf32>
    %128 = arith.divf %126, %127 : vector<8x384xf32>
    %129 = vector.extract_strided_slice %128 {offsets = [0, 0], sizes = [8, 128], strides = [1, 1]} : vector<8x384xf32> to vector<8x128xf32>
    %130 = vector.extract_strided_slice %128 {offsets = [0, 128], sizes = [8, 128], strides = [1, 1]} : vector<8x384xf32> to vector<8x128xf32>
    %131 = vector.extract_strided_slice %128 {offsets = [0, 256], sizes = [8, 128], strides = [1, 1]} : vector<8x384xf32> to vector<8x128xf32>
    %132 = vector.extract_strided_slice %122 {offsets = [0, 384], sizes = [8, 128], strides = [1, 1]} : vector<8x512xf32> to vector<8x128xf32>
    %133 = math.tanh %132 : vector<8x128xf32>
    %c0_78 = arith.constant 0 : index
    %c0_79 = arith.constant 0 : index
    %134 = vector.load %arg9[%c0_78, %c0_79] : memref<8x128xf32, #tpu.memory_space<vmem>>, vector<8x128xf32>
    %135 = arith.mulf %130, %134 : vector<8x128xf32>
    %136 = arith.mulf %129, %133 : vector<8x128xf32>
    %137 = arith.addf %135, %136 : vector<8x128xf32>
    %138 = math.tanh %137 : vector<8x128xf32>
    %139 = arith.mulf %131, %138 : vector<8x128xf32>
    %c0_80 = arith.constant 0 : index
    %c0_81 = arith.constant 0 : index
    %140 = vector.load %arg9[%c0_80, %c0_81] : memref<8x128xf32, #tpu.memory_space<vmem>>, vector<8x128xf32>
    tpu.vector_store %arg9[%c0_80, %c0_81], %137 {strides = array<i32>} : memref<8x128xf32, #tpu.memory_space<vmem>>, vector<8x128xf32>,
    %c0_82 = arith.constant 0 : index
    %c0_83 = arith.constant 0 : index
    %141 = vector.load %arg8[%c0_82, %c0_83] : memref<8x128xf32, #tpu.memory_space<vmem>>, vector<8x128xf32>
    tpu.vector_store %arg8[%c0_82, %c0_83], %139 {strides = array<i32>} : memref<8x128xf32, #tpu.memory_space<vmem>>, vector<8x128xf32>,
    %c0_84 = arith.constant 0 : index
    %142 = arith.index_cast %114 : i32 to index
    %c0_85 = arith.constant 0 : index
    %c0_86 = arith.constant 0 : index
    %143 = vector.load %arg6[%c0_84, %142, %c0_85, %c0_86] : memref<1x8x8x128xf32, #tpu.memory_space<vmem>>, vector<1x1x8x128xf32>
    %144 = vector.shape_cast %143 : vector<1x1x8x128xf32> to vector<8x128xf32>
    %145 = vector.shape_cast %139 : vector<8x128xf32> to vector<1x1x8x128xf32>
    tpu.vector_store %arg6[%c0_84, %142, %c0_85, %c0_86], %145 {strides = array<i32>} : memref<1x8x8x128xf32, #tpu.memory_space<vmem>>, vector<1x1x8x128xf32>,
    %c-1_i32 = arith.constant -1 : i32
    %146 = arith.muli %arg0, %c-1_i32 : i32
    %c4_i32 = arith.constant 4 : i32
    %147 = arith.addi %c4_i32, %146 : i32
    %148 = arith.index_cast %147 : i32 to index
    %c0_87 = arith.constant 0 : index
    %c0_88 = arith.constant 0 : index
    %149 = vector.load %arg7[%148, %c0_87, %c0_88] : memref<8x8x512xf32, #tpu.memory_space<vmem>>, vector<1x8x512xf32>
    %150 = vector.shape_cast %149 : vector<1x8x512xf32> to vector<8x512xf32>
    %c0_89 = arith.constant 0 : index
    %c0_90 = arith.constant 0 : index
    %151 = vector.load %arg8[%c0_89, %c0_90] : memref<8x128xf32, #tpu.memory_space<vmem>>, vector<8x128xf32>
    %c0_91 = arith.constant 0 : index
    %c0_92 = arith.constant 0 : index
    %c0_93 = arith.constant 0 : index
    %152 = vector.load %arg4[%c0_91, %c0_92, %c0_93] : memref<1x128x512xf32, #tpu.memory_space<vmem>>, vector<1x128x512xf32>
    %153 = vector.shape_cast %152 : vector<1x128x512xf32> to vector<128x512xf32>
    %cst_94 = arith.constant dense<0.000000e+00> : vector<8x512xf32>
    %154 = tpu.matmul %151, %153, %cst_94 {dimension_numbers = #tpu.dot_dimension_numbers<[1], [0], [0], [1], [0, 0, 1, 1], [], []>} : vector<8x128xf32>, vector<128x512xf32>, vector<8x512xf32> -> vector<8x512xf32>
    %155 = arith.addf %150, %154 : vector<8x512xf32>
    %156 = vector.extract_strided_slice %155 {offsets = [0, 0], sizes = [8, 384], strides = [1, 1]} : vector<8x512xf32> to vector<8x384xf32>
    %157 = arith.negf %156 : vector<8x384xf32>
    %158 = math.exp %157 : vector<8x384xf32>
    %cst_95 = arith.constant 1.000000e+00 : f32
    %159 = vector.broadcast %cst_95 : f32 to vector<8x384xf32>
    %160 = arith.addf %159, %158 : vector<8x384xf32>
    %161 = arith.divf %159, %160 : vector<8x384xf32>
    %162 = vector.extract_strided_slice %161 {offsets = [0, 0], sizes = [8, 128], strides = [1, 1]} : vector<8x384xf32> to vector<8x128xf32>
    %163 = vector.extract_strided_slice %161 {offsets = [0, 128], sizes = [8, 128], strides = [1, 1]} : vector<8x384xf32> to vector<8x128xf32>
    %164 = vector.extract_strided_slice %161 {offsets = [0, 256], sizes = [8, 128], strides = [1, 1]} : vector<8x384xf32> to vector<8x128xf32>
    %165 = vector.extract_strided_slice %155 {offsets = [0, 384], sizes = [8, 128], strides = [1, 1]} : vector<8x512xf32> to vector<8x128xf32>
    %166 = math.tanh %165 : vector<8x128xf32>
    %c0_96 = arith.constant 0 : index
    %c0_97 = arith.constant 0 : index
    %167 = vector.load %arg9[%c0_96, %c0_97] : memref<8x128xf32, #tpu.memory_space<vmem>>, vector<8x128xf32>
    %168 = arith.mulf %163, %167 : vector<8x128xf32>
    %169 = arith.mulf %162, %166 : vector<8x128xf32>
    %170 = arith.addf %168, %169 : vector<8x128xf32>
    %171 = math.tanh %170 : vector<8x128xf32>
    %172 = arith.mulf %164, %171 : vector<8x128xf32>
    %c0_98 = arith.constant 0 : index
    %c0_99 = arith.constant 0 : index
    %173 = vector.load %arg9[%c0_98, %c0_99] : memref<8x128xf32, #tpu.memory_space<vmem>>, vector<8x128xf32>
    tpu.vector_store %arg9[%c0_98, %c0_99], %170 {strides = array<i32>} : memref<8x128xf32, #tpu.memory_space<vmem>>, vector<8x128xf32>,
    %c0_100 = arith.constant 0 : index
    %c0_101 = arith.constant 0 : index
    %174 = vector.load %arg8[%c0_100, %c0_101] : memref<8x128xf32, #tpu.memory_space<vmem>>, vector<8x128xf32>
    tpu.vector_store %arg8[%c0_100, %c0_101], %172 {strides = array<i32>} : memref<8x128xf32, #tpu.memory_space<vmem>>, vector<8x128xf32>,
    %c0_102 = arith.constant 0 : index
    %175 = arith.index_cast %147 : i32 to index
    %c0_103 = arith.constant 0 : index
    %c0_104 = arith.constant 0 : index
    %176 = vector.load %arg6[%c0_102, %175, %c0_103, %c0_104] : memref<1x8x8x128xf32, #tpu.memory_space<vmem>>, vector<1x1x8x128xf32>
    %177 = vector.shape_cast %176 : vector<1x1x8x128xf32> to vector<8x128xf32>
    %178 = vector.shape_cast %172 : vector<8x128xf32> to vector<1x1x8x128xf32>
    tpu.vector_store %arg6[%c0_102, %175, %c0_103, %c0_104], %178 {strides = array<i32>} : memref<1x8x8x128xf32, #tpu.memory_space<vmem>>, vector<1x1x8x128xf32>,
    %c-3_i32 = arith.constant -3 : i32
    %179 = arith.muli %arg0, %c-3_i32 : i32
    %c5_i32_105 = arith.constant 5 : i32
    %180 = arith.addi %c5_i32_105, %179 : i32
    %181 = arith.index_cast %180 : i32 to index
    %c0_106 = arith.constant 0 : index
    %c0_107 = arith.constant 0 : index
    %182 = vector.load %arg7[%181, %c0_106, %c0_107] : memref<8x8x512xf32, #tpu.memory_space<vmem>>, vector<1x8x512xf32>
    %183 = vector.shape_cast %182 : vector<1x8x512xf32> to vector<8x512xf32>
    %c0_108 = arith.constant 0 : index
    %c0_109 = arith.constant 0 : index
    %184 = vector.load %arg8[%c0_108, %c0_109] : memref<8x128xf32, #tpu.memory_space<vmem>>, vector<8x128xf32>
    %c0_110 = arith.constant 0 : index
    %c0_111 = arith.constant 0 : index
    %c0_112 = arith.constant 0 : index
    %185 = vector.load %arg4[%c0_110, %c0_111, %c0_112] : memref<1x128x512xf32, #tpu.memory_space<vmem>>, vector<1x128x512xf32>
    %186 = vector.shape_cast %185 : vector<1x128x512xf32> to vector<128x512xf32>
    %cst_113 = arith.constant dense<0.000000e+00> : vector<8x512xf32>
    %187 = tpu.matmul %184, %186, %cst_113 {dimension_numbers = #tpu.dot_dimension_numbers<[1], [0], [0], [1], [0, 0, 1, 1], [], []>} : vector<8x128xf32>, vector<128x512xf32>, vector<8x512xf32> -> vector<8x512xf32>
    %188 = arith.addf %183, %187 : vector<8x512xf32>
    %189 = vector.extract_strided_slice %188 {offsets = [0, 0], sizes = [8, 384], strides = [1, 1]} : vector<8x512xf32> to vector<8x384xf32>
    %190 = arith.negf %189 : vector<8x384xf32>
    %191 = math.exp %190 : vector<8x384xf32>
    %cst_114 = arith.constant 1.000000e+00 : f32
    %192 = vector.broadcast %cst_114 : f32 to vector<8x384xf32>
    %193 = arith.addf %192, %191 : vector<8x384xf32>
    %194 = arith.divf %192, %193 : vector<8x384xf32>
    %195 = vector.extract_strided_slice %194 {offsets = [0, 0], sizes = [8, 128], strides = [1, 1]} : vector<8x384xf32> to vector<8x128xf32>
    %196 = vector.extract_strided_slice %194 {offsets = [0, 128], sizes = [8, 128], strides = [1, 1]} : vector<8x384xf32> to vector<8x128xf32>
    %197 = vector.extract_strided_slice %194 {offsets = [0, 256], sizes = [8, 128], strides = [1, 1]} : vector<8x384xf32> to vector<8x128xf32>
    %198 = vector.extract_strided_slice %188 {offsets = [0, 384], sizes = [8, 128], strides = [1, 1]} : vector<8x512xf32> to vector<8x128xf32>
    %199 = math.tanh %198 : vector<8x128xf32>
    %c0_115 = arith.constant 0 : index
    %c0_116 = arith.constant 0 : index
    %200 = vector.load %arg9[%c0_115, %c0_116] : memref<8x128xf32, #tpu.memory_space<vmem>>, vector<8x128xf32>
    %201 = arith.mulf %196, %200 : vector<8x128xf32>
    %202 = arith.mulf %195, %199 : vector<8x128xf32>
    %203 = arith.addf %201, %202 : vector<8x128xf32>
    %204 = math.tanh %203 : vector<8x128xf32>
    %205 = arith.mulf %197, %204 : vector<8x128xf32>
    %c0_117 = arith.constant 0 : index
    %c0_118 = arith.constant 0 : index
    %206 = vector.load %arg9[%c0_117, %c0_118] : memref<8x128xf32, #tpu.memory_space<vmem>>, vector<8x128xf32>
    tpu.vector_store %arg9[%c0_117, %c0_118], %203 {strides = array<i32>} : memref<8x128xf32, #tpu.memory_space<vmem>>, vector<8x128xf32>,
    %c0_119 = arith.constant 0 : index
    %c0_120 = arith.constant 0 : index
    %207 = vector.load %arg8[%c0_119, %c0_120] : memref<8x128xf32, #tpu.memory_space<vmem>>, vector<8x128xf32>
    tpu.vector_store %arg8[%c0_119, %c0_120], %205 {strides = array<i32>} : memref<8x128xf32, #tpu.memory_space<vmem>>, vector<8x128xf32>,
    %c0_121 = arith.constant 0 : index
    %208 = arith.index_cast %180 : i32 to index
    %c0_122 = arith.constant 0 : index
    %c0_123 = arith.constant 0 : index
    %209 = vector.load %arg6[%c0_121, %208, %c0_122, %c0_123] : memref<1x8x8x128xf32, #tpu.memory_space<vmem>>, vector<1x1x8x128xf32>
    %210 = vector.shape_cast %209 : vector<1x1x8x128xf32> to vector<8x128xf32>
    %211 = vector.shape_cast %205 : vector<8x128xf32> to vector<1x1x8x128xf32>
    tpu.vector_store %arg6[%c0_121, %208, %c0_122, %c0_123], %211 {strides = array<i32>} : memref<1x8x8x128xf32, #tpu.memory_space<vmem>>, vector<1x1x8x128xf32>,
    %c-5_i32 = arith.constant -5 : i32
    %212 = arith.muli %arg0, %c-5_i32 : i32
    %c6_i32 = arith.constant 6 : i32
    %213 = arith.addi %c6_i32, %212 : i32
    %214 = arith.index_cast %213 : i32 to index
    %c0_124 = arith.constant 0 : index
    %c0_125 = arith.constant 0 : index
    %215 = vector.load %arg7[%214, %c0_124, %c0_125] : memref<8x8x512xf32, #tpu.memory_space<vmem>>, vector<1x8x512xf32>
    %216 = vector.shape_cast %215 : vector<1x8x512xf32> to vector<8x512xf32>
    %c0_126 = arith.constant 0 : index
    %c0_127 = arith.constant 0 : index
    %217 = vector.load %arg8[%c0_126, %c0_127] : memref<8x128xf32, #tpu.memory_space<vmem>>, vector<8x128xf32>
    %c0_128 = arith.constant 0 : index
    %c0_129 = arith.constant 0 : index
    %c0_130 = arith.constant 0 : index
    %218 = vector.load %arg4[%c0_128, %c0_129, %c0_130] : memref<1x128x512xf32, #tpu.memory_space<vmem>>, vector<1x128x512xf32>
    %219 = vector.shape_cast %218 : vector<1x128x512xf32> to vector<128x512xf32>
    %cst_131 = arith.constant dense<0.000000e+00> : vector<8x512xf32>
    %220 = tpu.matmul %217, %219, %cst_131 {dimension_numbers = #tpu.dot_dimension_numbers<[1], [0], [0], [1], [0, 0, 1, 1], [], []>} : vector<8x128xf32>, vector<128x512xf32>, vector<8x512xf32> -> vector<8x512xf32>
    %221 = arith.addf %216, %220 : vector<8x512xf32>
    %222 = vector.extract_strided_slice %221 {offsets = [0, 0], sizes = [8, 384], strides = [1, 1]} : vector<8x512xf32> to vector<8x384xf32>
    %223 = arith.negf %222 : vector<8x384xf32>
    %224 = math.exp %223 : vector<8x384xf32>
    %cst_132 = arith.constant 1.000000e+00 : f32
    %225 = vector.broadcast %cst_132 : f32 to vector<8x384xf32>
    %226 = arith.addf %225, %224 : vector<8x384xf32>
    %227 = arith.divf %225, %226 : vector<8x384xf32>
    %228 = vector.extract_strided_slice %227 {offsets = [0, 0], sizes = [8, 128], strides = [1, 1]} : vector<8x384xf32> to vector<8x128xf32>
    %229 = vector.extract_strided_slice %227 {offsets = [0, 128], sizes = [8, 128], strides = [1, 1]} : vector<8x384xf32> to vector<8x128xf32>
    %230 = vector.extract_strided_slice %227 {offsets = [0, 256], sizes = [8, 128], strides = [1, 1]} : vector<8x384xf32> to vector<8x128xf32>
    %231 = vector.extract_strided_slice %221 {offsets = [0, 384], sizes = [8, 128], strides = [1, 1]} : vector<8x512xf32> to vector<8x128xf32>
    %232 = math.tanh %231 : vector<8x128xf32>
    %c0_133 = arith.constant 0 : index
    %c0_134 = arith.constant 0 : index
    %233 = vector.load %arg9[%c0_133, %c0_134] : memref<8x128xf32, #tpu.memory_space<vmem>>, vector<8x128xf32>
    %234 = arith.mulf %229, %233 : vector<8x128xf32>
    %235 = arith.mulf %228, %232 : vector<8x128xf32>
    %236 = arith.addf %234, %235 : vector<8x128xf32>
    %237 = math.tanh %236 : vector<8x128xf32>
    %238 = arith.mulf %230, %237 : vector<8x128xf32>
    %c0_135 = arith.constant 0 : index
    %c0_136 = arith.constant 0 : index
    %239 = vector.load %arg9[%c0_135, %c0_136] : memref<8x128xf32, #tpu.memory_space<vmem>>, vector<8x128xf32>
    tpu.vector_store %arg9[%c0_135, %c0_136], %236 {strides = array<i32>} : memref<8x128xf32, #tpu.memory_space<vmem>>, vector<8x128xf32>,
    %c0_137 = arith.constant 0 : index
    %c0_138 = arith.constant 0 : index
    %240 = vector.load %arg8[%c0_137, %c0_138] : memref<8x128xf32, #tpu.memory_space<vmem>>, vector<8x128xf32>
    tpu.vector_store %arg8[%c0_137, %c0_138], %238 {strides = array<i32>} : memref<8x128xf32, #tpu.memory_space<vmem>>, vector<8x128xf32>,
    %c0_139 = arith.constant 0 : index
    %241 = arith.index_cast %213 : i32 to index
    %c0_140 = arith.constant 0 : index
    %c0_141 = arith.constant 0 : index
    %242 = vector.load %arg6[%c0_139, %241, %c0_140, %c0_141] : memref<1x8x8x128xf32, #tpu.memory_space<vmem>>, vector<1x1x8x128xf32>
    %243 = vector.shape_cast %242 : vector<1x1x8x128xf32> to vector<8x128xf32>
    %244 = vector.shape_cast %238 : vector<8x128xf32> to vector<1x1x8x128xf32>
    tpu.vector_store %arg6[%c0_139, %241, %c0_140, %c0_141], %244 {strides = array<i32>} : memref<1x8x8x128xf32, #tpu.memory_space<vmem>>, vector<1x1x8x128xf32>,
    %c-7_i32 = arith.constant -7 : i32
    %245 = arith.muli %arg0, %c-7_i32 : i32
    %c7_i32_142 = arith.constant 7 : i32
    %246 = arith.addi %c7_i32_142, %245 : i32
    %247 = arith.index_cast %246 : i32 to index
    %c0_143 = arith.constant 0 : index
    %c0_144 = arith.constant 0 : index
    %248 = vector.load %arg7[%247, %c0_143, %c0_144] : memref<8x8x512xf32, #tpu.memory_space<vmem>>, vector<1x8x512xf32>
    %249 = vector.shape_cast %248 : vector<1x8x512xf32> to vector<8x512xf32>
    %c0_145 = arith.constant 0 : index
    %c0_146 = arith.constant 0 : index
    %250 = vector.load %arg8[%c0_145, %c0_146] : memref<8x128xf32, #tpu.memory_space<vmem>>, vector<8x128xf32>
    %c0_147 = arith.constant 0 : index
    %c0_148 = arith.constant 0 : index
    %c0_149 = arith.constant 0 : index
    %251 = vector.load %arg4[%c0_147, %c0_148, %c0_149] : memref<1x128x512xf32, #tpu.memory_space<vmem>>, vector<1x128x512xf32>
    %252 = vector.shape_cast %251 : vector<1x128x512xf32> to vector<128x512xf32>
    %cst_150 = arith.constant dense<0.000000e+00> : vector<8x512xf32>
    %253 = tpu.matmul %250, %252, %cst_150 {dimension_numbers = #tpu.dot_dimension_numbers<[1], [0], [0], [1], [0, 0, 1, 1], [], []>} : vector<8x128xf32>, vector<128x512xf32>, vector<8x512xf32> -> vector<8x512xf32>
    %254 = arith.addf %249, %253 : vector<8x512xf32>
    %255 = vector.extract_strided_slice %254 {offsets = [0, 0], sizes = [8, 384], strides = [1, 1]} : vector<8x512xf32> to vector<8x384xf32>
    %256 = arith.negf %255 : vector<8x384xf32>
    %257 = math.exp %256 : vector<8x384xf32>
    %cst_151 = arith.constant 1.000000e+00 : f32
    %258 = vector.broadcast %cst_151 : f32 to vector<8x384xf32>
    %259 = arith.addf %258, %257 : vector<8x384xf32>
    %260 = arith.divf %258, %259 : vector<8x384xf32>
    %261 = vector.extract_strided_slice %260 {offsets = [0, 0], sizes = [8, 128], strides = [1, 1]} : vector<8x384xf32> to vector<8x128xf32>
    %262 = vector.extract_strided_slice %260 {offsets = [0, 128], sizes = [8, 128], strides = [1, 1]} : vector<8x384xf32> to vector<8x128xf32>
    %263 = vector.extract_strided_slice %260 {offsets = [0, 256], sizes = [8, 128], strides = [1, 1]} : vector<8x384xf32> to vector<8x128xf32>
    %264 = vector.extract_strided_slice %254 {offsets = [0, 384], sizes = [8, 128], strides = [1, 1]} : vector<8x512xf32> to vector<8x128xf32>
    %265 = math.tanh %264 : vector<8x128xf32>
    %c0_152 = arith.constant 0 : index
    %c0_153 = arith.constant 0 : index
    %266 = vector.load %arg9[%c0_152, %c0_153] : memref<8x128xf32, #tpu.memory_space<vmem>>, vector<8x128xf32>
    %267 = arith.mulf %262, %266 : vector<8x128xf32>
    %268 = arith.mulf %261, %265 : vector<8x128xf32>
    %269 = arith.addf %267, %268 : vector<8x128xf32>
    %270 = math.tanh %269 : vector<8x128xf32>
    %271 = arith.mulf %263, %270 : vector<8x128xf32>
    %c0_154 = arith.constant 0 : index
    %c0_155 = arith.constant 0 : index
    %272 = vector.load %arg9[%c0_154, %c0_155] : memref<8x128xf32, #tpu.memory_space<vmem>>, vector<8x128xf32>
    tpu.vector_store %arg9[%c0_154, %c0_155], %269 {strides = array<i32>} : memref<8x128xf32, #tpu.memory_space<vmem>>, vector<8x128xf32>,
    %c0_156 = arith.constant 0 : index
    %c0_157 = arith.constant 0 : index
    %273 = vector.load %arg8[%c0_156, %c0_157] : memref<8x128xf32, #tpu.memory_space<vmem>>, vector<8x128xf32>
    tpu.vector_store %arg8[%c0_156, %c0_157], %271 {strides = array<i32>} : memref<8x128xf32, #tpu.memory_space<vmem>>, vector<8x128xf32>,
    %c0_158 = arith.constant 0 : index
    %274 = arith.index_cast %246 : i32 to index
    %c0_159 = arith.constant 0 : index
    %c0_160 = arith.constant 0 : index
    %275 = vector.load %arg6[%c0_158, %274, %c0_159, %c0_160] : memref<1x8x8x128xf32, #tpu.memory_space<vmem>>, vector<1x1x8x128xf32>
    %276 = vector.shape_cast %275 : vector<1x1x8x128xf32> to vector<8x128xf32>
    %277 = vector.shape_cast %271 : vector<8x128xf32> to vector<1x1x8x128xf32>
    tpu.vector_store %arg6[%c0_158, %274, %c0_159, %c0_160], %277 {strides = array<i32>} : memref<1x8x8x128xf32, #tpu.memory_space<vmem>>, vector<1x1x8x128xf32>,
    return
  }
  func.func @transform_0(%arg0: i32, %arg1: i32) -> (i32, i32, i32) {
    %c2_i32 = arith.constant 2 : i32
    %0 = arith.muli %c2_i32, %arg1 : i32
    %c0_i32 = arith.constant 0 : i32
    %1 = arith.subi %c0_i32, %0 : i32
    %2 = arith.muli %arg0, %1 : i32
    %3 = arith.addi %arg1, %2 : i32
    %c0_i32_0 = arith.constant 0 : i32
    %c0_i32_1 = arith.constant 0 : i32
    %c0_i32_2 = arith.constant 0 : i32
    return %3, %c0_i32_0, %c0_i32_1 : i32, i32, i32
  }
  func.func @transform_1(%arg0: i32, %arg1: i32) -> (i32, i32, i32) {
    %c0_i32 = arith.constant 0 : i32
    %c0_i32_0 = arith.constant 0 : i32
    %c0_i32_1 = arith.constant 0 : i32
    return %arg0, %c0_i32, %c0_i32_0 : i32, i32, i32
  }
  func.func @transform_2(%arg0: i32, %arg1: i32) -> (i32, i32, i32) {
    %c0_i32 = arith.constant 0 : i32
    %c0_i32_0 = arith.constant 0 : i32
    %c0_i32_1 = arith.constant 0 : i32
    return %arg0, %c0_i32, %c0_i32_0 : i32, i32, i32
  }
  func.func @transform_3(%arg0: i32, %arg1: i32) -> (i32, i32, i32) {
    %c0_i32 = arith.constant 0 : i32
    %c0_i32_0 = arith.constant 0 : i32
    %c0_i32_1 = arith.constant 0 : i32
    return %arg0, %c0_i32, %c0_i32_0 : i32, i32, i32
  }
  func.func @transform_4(%arg0: i32, %arg1: i32) -> (i32, i32, i32, i32) {
    %c2_i32 = arith.constant 2 : i32
    %0 = arith.muli %c2_i32, %arg1 : i32
    %c0_i32 = arith.constant 0 : i32
    %1 = arith.subi %c0_i32, %0 : i32
    %2 = arith.muli %arg0, %1 : i32
    %3 = arith.addi %arg1, %2 : i32
    %c0_i32_0 = arith.constant 0 : i32
    %c0_i32_1 = arith.constant 0 : i32
    %c0_i32_2 = arith.constant 0 : i32
    return %arg0, %3, %c0_i32_0, %c0_i32_1 : i32, i32, i32, i32
  }
}

</mosaic_0001>

<bundles_post_ra>
// kernel: tpu_custom_call.1
= control target key start
LH: loop header
LB: loop body
LE: loop exit
PB: predicated region body
PF: predicated region fallthrough
CT: control target
= control target key end

     0   :  { %s4805_s0 = inlined_call_operand.hbm [shape: f32[8,8,16], index: 0, kind: input, shape index: {}]   ;;  %s4806_s1 = inlined_call_operand.hbm [shape: f32[2,16,512], index: 1, kind: input, shape index: {}]   ;;  %s4807_s2 = inlined_call_operand.hbm [shape: f32[2,128,512], index: 2, kind: input, shape index: {}]   ;;  %s4808_s3 = inlined_call_operand.hbm [shape: f32[2,1,512], index: 3, kind: input, shape index: {}]   ;;  %s4809_s4 = inlined_call_operand.hbm [shape: f32[2,8,8,128], index: 4, kind: output, shape index: {}]  }
   0x1   :  { %4838 = sst [smem:[#allocation31_spill]] %s4805_s0 }
   0x2   :  { %4839 = sst [smem:[#allocation32_spill]] %s4806_s1 }
   0x3   :  { %9 = vsyncpa [#allocation6], 0 }
   0x4   :  { %11 = vsyncpa [#allocation6 + $0x1], 0 }
   0x5   :  { %12 = vsyncpa [#allocation9], 0 }
   0x6   :  { %14 = vsyncpa [#allocation9 + $0x1], 0 }
   0x7   :  { %15 = vsyncpa [#allocation12], 0 }
   0x8   :  { %17 = vsyncpa [#allocation12 + $0x1], 0 }
   0x9   :  { %18 = vsyncpa [#allocation7], 0 }
   0xa   :  { %20 = vsyncpa [#allocation7 + $0x1], 0  ;;  %s3271_s15 = smov 0   ;;  %s3273_s16 = smov 0  }
   0xb   :  { %s3275_s17 = smov 0   ;;  %s3277_s18 = smov 0  }
   0xc   :  { %s3279_s19 = smov 0   ;;  %s3281_s20 = smov 0  }
   0xd LB: > { %4840 = sst [smem:[#allocation18_spill]] %s3216_s15  ;;  %s3302_s21 = sadd.s32 4294967295, %s3236_s20   ;;  %s3236_s20 = sphi %s3281_s20, %s26_s20   ;;  %s3232_s19 = sphi %s3279_s19, %s4895_s19   ;;  %s3228_s18 = sphi %s3277_s18, %s4894_s18   ;;  %s3224_s17 = sphi %s3275_s17, %s4890_s17   ;;  %s3220_s16 = sphi %s3273_s16, %s4893_s16   ;;  %s3216_s15 = sphi %s3271_s15, %s4892_s15  }
   0xe   : > { %4841 = sst [smem:[#allocation19_spill]] %s3224_s17  ;;  %s2677_s22 = sadd.s32 4294967294, %s3236_s20  }
   0xf   : > { %4842 = sst [smem:[#allocation20_spill]] %s3236_s20  ;;  %s38_s23 = sadd.s32 1, %s3232_s19 }
  0x10   : > { %s79_s24 = sadd.s32 1, %s3224_s17  ;;  %p40_p0 = scmp.ge.s32.totalorder %s38_s23, 2 }
  0x11   : > { %p86_p1 = scmp.ne.s32.totalorder %s3224_s17, %s3220_s16  ;;  %p87_p2 = scmp.eq.s32.totalorder %s3236_s20, 0 }
  0x12   : > { %p92_p3 = scmp.ne.s32.totalorder %s3220_s16, %s3216_s15  ;;  %s4897_s23 = smov (%p40_p0, %s38_s23), 0 }
  0x13   : > { %4843 = sst [smem:[#allocation21_spill]] %s4897_s23  ;;  %p3316_p4 = por %p87_p2, %p86_p1 }
  0x14   : > { %p93_p5 = scmp.eq.s32.totalorder %s3302_s21, 0  ;;  %s76_s26 = ssub.s32 %s3232_s19, %s4897_s23 }
  0x15   : > { %p178_p6 = scmp.eq.s32.totalorder %s3302_s21, 1  ;;  %p77_p7 = scmp.eq.s32.totalorder %s76_s26, 0 }
  0x16   : > { %p3326_p8 = por %p93_p5, %p92_p3  ;;  %p184_p10 = scmp.eq.s32.totalorder %s2677_s22, 1 }
  0x17   : > { %p3330_p9 = por %p178_p6, %p86_p1  ;;  %p2679_p12 = scmp.ge.s32.totalorder %s3236_s20, 2 }
  0x18   : > { %s3335_s29 = scalar_select %p77_p7, %s3224_s17, %s79_s24  }
  0x19   : > { %p3337_p11 = por %p184_p10, %p92_p3  ;;  %p2838_p13 = scmp.lt.s32.totalorder %s3236_s20, 2 }
  0x1a   : > { %4847 = sst [smem:[#allocation22_spill]] %s3335_s29  ;;  %s230_s5 = sand.u32 1, %s3236_s20  }
  0x1b   : > { %s4848_s30 = scalar_select %p3337_p11, 1, 0 }
  0x1c   : > { %s3345_s6 = sand.u32 1, %s3224_s17   ;;  %s2804_s8 = sshll.u32 %s3232_s19, 6 }
  0x1d   : > { %4849 = sst [smem:[#allocation23_spill]] %s4848_s30  ;;  %s2681_s7 = sshll.u32 %s3345_s6, 6 }
  0x1e   : > { %s4850_s1 = sld [smem:[#allocation32_spill]]  ;;  %s234_s12 = scalar_lea.vmem [#allocation8], %s2681_s7 }
  0x1f   : > { %s242_s13 = sshll.u32 %s234_s12, 4  ;;  %p3356_p0 = pnand %p2838_p13, %p3316_p4  ;;  %s243_s13 = int_to_ptr.vmem [resolvable:$true] %s242_s13 }
  0x20   : > { %p2689_p1 = scmp.ge.s32.totalorder %s3236_s20, 1  ;;  %s231_s24 = scalar_lea.sflag [#allocation9], %s230_s5 }
  0x21   : > { %s3238_s26 = smov 512   ;;  %p291_p3 = scmp.lt.s32.totalorder %s3236_s20, 3 }
  0x22   : > { %s4852_s0 = sld [smem:[#allocation31_spill]]  ;;  %p2822_p4 = pnand %p2838_p13, %p87_p2 }
  0x23   : > { %p3367_p6 = pnand %p2689_p1, %p291_p3  ;;  %s3240_s5 = smov [#allocation5]  }
  0x24   : > { %s239_s11 = scalar_lea.hbm %s4850_s1, %s2804_s8  ;;  %s3239_s8 = smov 32  }
  0x25   : > { %s240_s14 = sshll.u32 %s239_s11, 4  ;;  %s220_s11 = sshll.u32 %s3240_s5, 4  ;;  %s241_s14 = int_to_ptr.hbm [resolvable:$true] %s240_s14  ;;  %s221_s11 = int_to_ptr.vmem [resolvable:$true] %s220_s11 }
  0x26   : > { %2827 = dma.hbm_to_vmem [thread:$0]  (!%p3356_p0), %s241_s14, 1024, %s243_s13, %s231_s24, %s3238_s26, %s3238_s26, %s3239_s8  }
  0x27   : > { %s2684_s12 = sshll.u32 %s3345_s6, 9  ;;  %s3241_s13 = smov 128  }
  0x28   : > { %s218_s10 = sshll.u32 %s4852_s0, 4  ;;  %s3242_s14 = smov 8   ;;  %s219_s10 = int_to_ptr.hbm [resolvable:$true] %s218_s10 }
  0x29   : > { %2824 = dma.hbm_to_vmem [thread:$0]  (!%p2822_p4), %s219_s10, 1024, %s221_s11, [#allocation6], %s3241_s13, %s3241_s13, %s3242_s14  }
  0x2a   : > { %s2805_s7 = sshll.u32 %s3232_s19, 9  ;;  %s256_s23 = scalar_lea.vmem [#allocation10], %s2684_s12 }
  0x2b   : > { %s261_s1 = scalar_lea.hbm %s4807_s2, %s2805_s7  ;;  %s264_s29 = sshll.u32 %s256_s23, 4  ;;  %s265_s29 = int_to_ptr.vmem [resolvable:$true] %s264_s29 }
  0x2c   : > { %s262_s17 = sshll.u32 %s261_s1, 4  ;;  %s2687_s5 = sshll.u32 %s3345_s6, 2  ;;  %s263_s17 = int_to_ptr.hbm [resolvable:$true] %s262_s17 }
  0x2d   : > { %2830 = dma.hbm_to_vmem [thread:$0]  (!%p3356_p0), %s263_s17, 8192, %s265_s29, %s231_s24, %s3238_s26, %s3238_s26, %s3239_s8  }
  0x2e   : > { %s2688_s20 = sshll.u32 %s3232_s19, 2  ;;  %s278_s13 = scalar_lea.vmem [#allocation11], %s2687_s5 }
  0x2f   : > { %s282_s10 = scalar_lea.hbm %s4808_s3, %s2688_s20  ;;  %s286_s14 = sshll.u32 %s278_s13, 4  ;;  %s287_s14 = int_to_ptr.vmem [resolvable:$true] %s286_s14 }
  0x30   : > { %s284_s11 = sshll.u32 %s282_s10, 4  ;;  %s275_s0 = scalar_lea.sflag [#allocation12], %s3345_s6  ;;  %s285_s11 = int_to_ptr.hbm [resolvable:$true] %s284_s11 }
  0x31   : > { %2833 = dma.hbm_to_vmem [thread:$0]  (!%p3356_p0), %s285_s11, 64, %s287_s14, %s275_s0  }
  0x32   : > { %295 = sbr.rel (%p3367_p6) target bundleno = 1506 (0x5e2), region = 36 }
  0x37   : > { %3199 = dma.done.wait (%p93_p5), [#allocation6], 1024  }
  0x38   : > { %3201 = vsyncadd (%p93_p5), [#allocation6], 4294966272  ;;  %s307_s1 = sand.u32 1, %s3302_s21   ;;  %s3398_s15 = sand.u32 1, %s3220_s16  }
  0x39   : > { %s2691_s17 = sshll.u32 %s3398_s15, 6  ;;  %s308_s20 = scalar_lea.sflag [#allocation9], %s307_s1 }
  0x3a   : > { %s311_s23 = scalar_lea.vmem [#allocation8], %s2691_s17 }
  0x3b   : > { %3203 = dma.done.wait (%p3326_p8), %s308_s20, 9216  }
  0x3c   : > { %3205 = vsyncadd (%p3326_p8), %s308_s20, 4294958080  ;;  %s2692_s29 = sshll.u32 %s3398_s15, 9  ;;  %s2693_s30 = sshll.u32 %s3398_s15, 2 }
  0x3d   : > { %s3409_s21 = scalar_lea.vmem [#allocation10], %s2692_s29  ;;  %s328_s6 = scalar_lea.sflag [#allocation12], %s3398_s15 }
  0x3e   : > { %s3412_s22 = scalar_lea.vmem [#allocation11], %s2693_s30 }
  0x3f   : > { %3207 = dma.done.wait (%p3326_p8), %s328_s6, 64  }
  0x40   : > { %3209 = vsyncadd (%p3326_p8), %s328_s6, 4294967232  ;;  %v402_v0 = vld [vmem:[%s311_s23 + $0x30] sm:$0xff]  ;;  %v403_v1 = vld [vmem:[%s311_s23 + $0x38] sm:$0xff]  ;;  %vm414_vm0 = vcmask 130048   ;;  %s2806_s27 = smul.u32 224, %s3228_s18  ;;  %s3818_s8 = scalar_lea.vmem [#allocation13], %s2691_s17 }
  0x41   : > { %v398_v2 = vld [vmem:[%s311_s23 + $0x10] sm:$0xff]  ;;  %535 = vmatpush.msra.mxu2 %v402_v0  ;;  %576 = vmatpush.msra.mxu3 %v403_v1  ;;  %v399_v3 = vld [vmem:[%s311_s23 + $0x18] sm:$0xff]  ;;  %v388_v4 = vld [vmem:[#allocation5] sm:$0xff]  ;;  %s2732_s26 = smul.u32 56, %s3228_s18  ;;  %s2753_s0 = sshll.u32 %s3228_s18, 5 }
  0x42   : > { %v400_v5 = vld [vmem:[%s311_s23 + $0x20] sm:$0xff]  ;;  %v401_v6 = vld [vmem:[%s311_s23 + $0x28] sm:$0xff]  ;;  %v3424_v10 = vld [vmem:[%s3409_s21 + $0x1f0] sm:$0xff]  ;;  %s638_s24 = scalar_lea.vmem [#allocation2], %s2806_s27  ;;  %s2733_s12 = smul.u32 160, %s3228_s18 }
  0x43   : > { %453 = vmatpush.msra.mxu0 %v400_v5  ;;  %v396_v7 = vld [vmem:[%s311_s23] sm:$0xff]  ;;  %536 = vmatpush.msra.mxu2 %v398_v2  ;;  %v397_v8 = vld [vmem:[%s311_s23 + $0x8] sm:$0xff]  ;;  %v3435_v13 = vld [vmem:[%s3409_s21 + $0x1d0] sm:$0xff]  ;;  %s859_s25 = scalar_lea.vmem %s3818_s8, %s2732_s26 [#allocation13]  ;;  %s2741_s9 = smul.u32 40, %s3228_s18 }
  0x44   : > { %577 = vmatpush.msra.mxu3 %v399_v3  ;;  %2711 = vmatmul.msk.f32.vlgmr.msra.gmra.mxu2 %vm414_vm0, %v388_v4  ;;  %v3421_v9 = vld [vmem:[%s3409_s21 + $0x1e0] sm:$0xff]  ;;  %v3428_v11 = vld [vmem:[%s3409_s21 + $0x1e8] sm:$0xff]  ;;  %v3439_v14 = vld [vmem:[%s3409_s21 + $0x1b0] sm:$0xff]  ;;  %s3944_s7 = scalar_lea.vmem [#allocation2], %s2733_s12  ;;  %s2743_s10 = smul.u32 96, %s3228_s18 }
  0x45   : > { %2719 = vmatmul.msk.f32.vlgmr.msra.gmra.mxu3 %vm414_vm0, %v388_v4  ;;  %494 = vmatpush.msra.mxu1 %v401_v6  ;;  %v3431_v12 = vld [vmem:[%s3409_s21 + $0x1c0] sm:$0xff]  ;;  %v3442_v15 = vld [vmem:[%s3409_s21 + $0x1f8] sm:$0xff]  ;;  %v3446_v16 = vld [vmem:[%s3409_s21 + $0x1c8] sm:$0xff]  ;;  %s2561_s5 = scalar_lea.vmem %s3818_s8, %s2741_s9 [#allocation13]  ;;  %s2751_s13 = smul.u32 24, %s3228_s18 }
  0x46   : > { %454 = vmatpush.msra.mxu0 %v396_v7  ;;  %748 = vmatpush.msrb.mxu2 %v3424_v10  ;;  %v3449_v17 = vld [vmem:[%s3409_s21 + $0x1a0] sm:$0xff]  ;;  %v389_v18 = vld [vmem:[#allocation5 + $0x8] sm:$0xff]  ;;  %v3465_v21 = vld [vmem:[%s3409_s21 + $0x190] sm:$0xff]  ;;  %s4117_s11 = scalar_lea.vmem [#allocation2], %s2743_s10  ;;  %s2572_s1 = scalar_lea.vmem [#allocation2], %s2753_s0 }
  0x47   : > { %2695 = vmatmul.msk.f32.vlgmr.msra.gmra.mxu0 %vm414_vm0, %v388_v4  ;;  %495 = vmatpush.msra.mxu1 %v397_v8  ;;  %v3455_v19 = vld [vmem:[%s3409_s21 + $0x1a8] sm:$0xff]  ;;  %v3458_v20 = vld [vmem:[%s3409_s21 + $0x180] sm:$0xff]  ;;  %v3478_v24 = vld [vmem:[%s3409_s21 + $0x1d8] sm:$0xff]  ;;  %s2569_s14 = scalar_lea.vmem %s3818_s8, %s2751_s13 [#allocation13]  ;;  %s2761_s17 = sshll.u32 %s3228_s18, 3 }
  0x48   : > { %708 = vmatpush.msrb.mxu0 %v3421_v9  ;;  %2703 = vmatmul.msk.f32.vlgmr.msra.gmra.mxu1 %vm414_vm0, %v388_v4  ;;  %v3470_v22 = vld [vmem:[%s3409_s21 + $0x188] sm:$0xff]  ;;  %v3473_v23 = vld [vmem:[%s3409_s21 + $0x160] sm:$0xff]  ;;  %v3491_v27 = vld [vmem:[%s3409_s21 + $0x170] sm:$0xff]  ;;  %s2575_s20 = scalar_lea.vmem %s3818_s8, %s2761_s17 [#allocation13]  ;;  %s1541_s23 = ssub.s32 4, %s3228_s18 }
  0x49   : > { %749 = vmatpush.msrb.mxu2 %v3435_v13  ;;  %728 = vmatpush.msrb.mxu1 %v3428_v11  ;;  %v3482_v25 = vld [vmem:[%s3409_s21 + $0x168] sm:$0xff]  ;;  %v3486_v26 = vld [vmem:[%s3409_s21 + $0x140] sm:$0xff]  ;;  %v3494_v28 = vld [vmem:[%s3409_s21 + $0x1b8] sm:$0xff]  ;;  %s2807_s29 = sshll.u32 %s1541_s23, 5  ;;  %s2768_s6 = sshll.u32 %s1541_s23, 3 }
  0x4a   : > { %709 = vmatpush.msrb.mxu0 %v3431_v12  ;;  %768 = vmatpush.msrb.mxu3 %v3442_v15  ;;  %v3499_v29 = vld [vmem:[%s3409_s21 + $0x148] sm:$0xff]  ;;  %v3502_v30 = vld [vmem:[%s3409_s21 + $0x120] sm:$0xff]  ;;  %v390_v31 = vld [vmem:[#allocation5 + $0x10] sm:$0xff]  ;;  %s4415_s30 = scalar_lea.vmem [#allocation2], %s2807_s29  ;;  %s2769_s27 = smul.u32 4294967200, %s3228_s18 }
  0x4b   : > { %750 = vmatpush.msrb.mxu2 %v3439_v14  ;;  %729 = vmatpush.msrb.mxu1 %v3446_v16  ;;  %v3509_v32 = vld [vmem:[%s3409_s21 + $0x128] sm:$0xff]  ;;  %v3512_v33 = vld [vmem:[%s3409_s21 + $0x150] sm:$0xff]  ;;  %v3517_v34 = vld [vmem:[%s3409_s21 + $0x198] sm:$0xff]  ;;  %s2467_s17 = sshll.u32 %s3818_s8, 4  ;;  %s2449_s29 = scalar_lea.sflag [#allocation7], %s3398_s15  ;;  %s2468_s17 = int_to_ptr.vmem [resolvable:$true] %s2467_s17 }
  0x4c   : > { %710 = vmatpush.msrb.mxu0 %v3449_v17  ;;  %2712 = vmatmul.msk.f32.gmra.mxu2 %vm414_vm0, %v389_v18  ;;  %v3522_v35 = vld [vmem:[%s3409_s21 + $0x100] sm:$0xff]  ;;  %v3525_v36 = vld [vmem:[%s3409_s21 + $0x108] sm:$0xff]  ;;  %v3530_v37 = vld [vmem:[%s3409_s21 + $0x130] sm:$0xff] }
  0x4d   : > { %2720 = vmatmul.msk.f32.gmra.mxu3 %vm414_vm0, %v389_v18  ;;  %730 = vmatpush.msrb.mxu1 %v3455_v19  ;;  %v3535_v38 = vld [vmem:[%s3409_s21 + $0x178] sm:$0xff]  ;;  %v3538_v39 = vld [vmem:[%s3409_s21 + $0xe0] sm:$0xff]  ;;  %v3543_v40 = vld [vmem:[%s3409_s21 + $0xe8] sm:$0xff] }
  0x4e   : > { %711 = vmatpush.msrb.mxu0 %v3458_v20  ;;  %751 = vmatpush.msrb.mxu2 %v3465_v21  ;;  %v3546_v41 = vld [vmem:[%s3409_s21 + $0x110] sm:$0xff]  ;;  %v3551_v42 = vld [vmem:[%s3409_s21 + $0x158] sm:$0xff]  ;;  %v3554_v43 = vld [vmem:[%s3409_s21 + $0xc0] sm:$0xff] }
  0x4f   : > { %2696 = vmatmul.msk.f32.gmra.mxu0 %vm414_vm0, %v389_v18  ;;  %731 = vmatpush.msrb.mxu1 %v3470_v22  ;;  %v391_v44 = vld [vmem:[#allocation5 + $0x18] sm:$0xff]  ;;  %v3561_v45 = vld [vmem:[%s3409_s21 + $0xc8] sm:$0xff]  ;;  %v3564_v46 = vld [vmem:[%s3409_s21 + $0xf0] sm:$0xff] }
  0x50   : > { %712 = vmatpush.msrb.mxu0 %v3473_v23  ;;  %2704 = vmatmul.msk.f32.gmra.mxu1 %vm414_vm0, %v389_v18  ;;  %v3569_v47 = vld [vmem:[%s3409_s21 + $0x138] sm:$0xff]  ;;  %v3574_v48 = vld [vmem:[%s3409_s21 + $0xa0] sm:$0xff]  ;;  %v3577_v49 = vld [vmem:[%s3409_s21 + $0xa8] sm:$0xff] }
  0x51   : > { %769 = vmatpush.msrb.mxu3 %v3478_v24  ;;  %732 = vmatpush.msrb.mxu1 %v3482_v25  ;;  %v3582_v50 = vld [vmem:[%s3409_s21 + $0xd0] sm:$0xff]  ;;  %v3587_v51 = vld [vmem:[%s3409_s21 + $0x118] sm:$0xff]  ;;  %v3590_v52 = vld [vmem:[%s3409_s21 + $0x80] sm:$0xff] }
  0x52   : > { %713 = vmatpush.msrb.mxu0 %v3486_v26  ;;  %752 = vmatpush.msrb.mxu2 %v3491_v27  ;;  %v3595_v53 = vld [vmem:[%s3409_s21 + $0x88] sm:$0xff]  ;;  %v3598_v54 = vld [vmem:[%s3409_s21 + $0xb0] sm:$0xff]  ;;  %v3603_v55 = vld [vmem:[%s3409_s21 + $0xf8] sm:$0xff] }
  0x53   : > { %770 = vmatpush.msrb.mxu3 %v3494_v28  ;;  %733 = vmatpush.msrb.mxu1 %v3499_v29  ;;  %v3606_v56 = vld [vmem:[%s3409_s21 + $0x60] sm:$0xff]  ;;  %v3613_v58 = vld [vmem:[%s3409_s21 + $0xd8] sm:$0xff]  ;;  %v3616_v59 = vld [vmem:[%s3409_s21 + $0x68] sm:$0xff] }
  0x54   : > { %714 = vmatpush.msrb.mxu0 %v3502_v30  ;;  %2713 = vmatmul.msk.f32.gmra.mxu2 %vm414_vm0, %v390_v31  ;;  %v392_v57 = vld [vmem:[#allocation5 + $0x20] sm:$0xff]  ;;  %v3621_v60 = vld [vmem:[%s3409_s21 + $0x90] sm:$0xff]  ;;  %v3626_v61 = vld [vmem:[%s3409_s21 + $0xb8] sm:$0xff] }
  0x55   : > { %2721 = vmatmul.msk.f32.gmra.mxu3 %vm414_vm0, %v390_v31  ;;  %734 = vmatpush.msrb.mxu1 %v3509_v32  ;;  %v3629_v62 = vld [vmem:[%s3409_s21 + $0x40] sm:$0xff]  ;;  %v3634_v63 = vld [vmem:[%s3409_s21 + $0x70] sm:$0xff]  ;;  %v3639_v0 = vld [vmem:[%s3409_s21 + $0x98] sm:$0xff] }
  0x56   : > { %753 = vmatpush.msrb.mxu2 %v3512_v33  ;;  %771 = vmatpush.msrb.mxu3 %v3517_v34  ;;  %v3642_v1 = vld [vmem:[%s3409_s21 + $0x48] sm:$0xff]  ;;  %v3647_v2 = vld [vmem:[%s3409_s21 + $0x50] sm:$0xff]  ;;  %v3650_v3 = vld [vmem:[%s3409_s21 + $0x20] sm:$0xff] }
  0x57   : > { %2697 = vmatmul.msk.f32.gmra.mxu0 %vm414_vm0, %v390_v31  ;;  %735 = vmatpush.msrb.mxu1 %v3525_v36  ;;  %4854 = vst [vmem:[#allocation24_spill] sm:$0xff] %v3650_v3  ;;  %v3655_v4 = vld [vmem:[%s3409_s21 + $0x78] sm:$0xff]  ;;  %v3658_v5 = vld [vmem:[%s3409_s21 + $0x28] sm:$0xff]  ;;  %v3667_v8 = vld [vmem:[%s3409_s21 + $0x30] sm:$0xff] }
  0x58   : > { %715 = vmatpush.msrb.mxu0 %v3522_v35  ;;  %2705 = vmatmul.msk.f32.gmra.mxu1 %vm414_vm0, %v390_v31  ;;  %4855 = vst [vmem:[#allocation25_spill] sm:$0xff] %v3658_v5  ;;  %v393_v6 = vld [vmem:[#allocation5 + $0x28] sm:$0xff]  ;;  %v3664_v7 = vld [vmem:[%s3409_s21 + $0x58] sm:$0xff] }
  0x59   : > { %754 = vmatpush.msrb.mxu2 %v3530_v37  ;;  %772 = vmatpush.msrb.mxu3 %v3535_v38  ;;  %v3673_v18 = vld [vmem:[%s3409_s21 + $0x8] sm:$0xff]  ;;  %v3678_v31 = vld [vmem:[%s3409_s21 + $0x38] sm:$0xff] }
  0x5a   : > { %716 = vmatpush.msrb.mxu0 %v3538_v39  ;;  %736 = vmatpush.msrb.mxu1 %v3543_v40 }
  0x5b   : > { %755 = vmatpush.msrb.mxu2 %v3546_v41  ;;  %773 = vmatpush.msrb.mxu3 %v3551_v42 }
  0x5c   : > { %717 = vmatpush.msrb.mxu0 %v3554_v43  ;;  %2714 = vmatmul.msk.f32.gmra.mxu2 %vm414_vm0, %v391_v44 }
  0x5d   : > { %2722 = vmatmul.msk.f32.gmra.mxu3 %vm414_vm0, %v391_v44  ;;  %737 = vmatpush.msrb.mxu1 %v3561_v45 }
  0x5e   : > { %756 = vmatpush.msrb.mxu2 %v3564_v46  ;;  %774 = vmatpush.msrb.mxu3 %v3569_v47 }
  0x5f   : > { %2698 = vmatmul.msk.f32.gmra.mxu0 %vm414_vm0, %v391_v44  ;;  %738 = vmatpush.msrb.mxu1 %v3577_v49 }
  0x60   : > { %718 = vmatpush.msrb.mxu0 %v3574_v48  ;;  %2706 = vmatmul.msk.f32.gmra.mxu1 %vm414_vm0, %v391_v44  ;;  %v3681_v44 = vld [vmem:[%s3409_s21 + $0x10] sm:$0xff] }
  0x61   : > { %757 = vmatpush.msrb.mxu2 %v3582_v50  ;;  %775 = vmatpush.msrb.mxu3 %v3587_v51 }
  0x62   : > { %719 = vmatpush.msrb.mxu0 %v3590_v52  ;;  %739 = vmatpush.msrb.mxu1 %v3595_v53 }
  0x63   : > { %758 = vmatpush.msrb.mxu2 %v3598_v54  ;;  %776 = vmatpush.msrb.mxu3 %v3603_v55 }
  0x64   : > { %720 = vmatpush.msrb.mxu0 %v3606_v56  ;;  %2715 = vmatmul.msk.f32.gmra.mxu2 %vm414_vm0, %v392_v57 }
  0x65   : > { %2723 = vmatmul.msk.f32.gmra.mxu3 %vm414_vm0, %v392_v57  ;;  %740 = vmatpush.msrb.mxu1 %v3616_v59 }
  0x66   : > { %777 = vmatpush.msrb.mxu3 %v3613_v58  ;;  %759 = vmatpush.msrb.mxu2 %v3621_v60 }
  0x67   : > { %2699 = vmatmul.msk.f32.gmra.mxu0 %vm414_vm0, %v392_v57  ;;  %741 = vmatpush.msrb.mxu1 %v3642_v1 }
  0x68   : > { %778 = vmatpush.msrb.mxu3 %v3626_v61  ;;  %721 = vmatpush.msrb.mxu0 %v3629_v62 }
  0x69   : > { %2707 = vmatmul.msk.f32.gmra.mxu1 %vm414_vm0, %v392_v57  ;;  %760 = vmatpush.msrb.mxu2 %v3634_v63  ;;  %v3686_v57 = vld [vmem:[%s3409_s21] sm:$0xff] }
  0x6a   : > { %779 = vmatpush.msrb.mxu3 %v3639_v0  ;;  %722 = vmatpush.msrb.mxu0 %v3650_v3  ;;  %v3690_v3 = vld [vmem:[%s3409_s21 + $0x18] sm:$0xff] }
  0x6b   : > { %761 = vmatpush.msrb.mxu2 %v3647_v2  ;;  %742 = vmatpush.msrb.mxu1 %v3658_v5  ;;  %v394_v5 = vld [vmem:[#allocation5 + $0x30] sm:$0xff] }
  0x6c   : > { %780 = vmatpush.msrb.mxu3 %v3655_v4  ;;  %2716 = vmatmul.msk.f32.gmra.mxu2 %vm414_vm0, %v393_v6 }
  0x6d   : > { %2724 = vmatmul.msk.f32.gmra.mxu3 %vm414_vm0, %v393_v6  ;;  %762 = vmatpush.msrb.mxu2 %v3667_v8 }
  0x6e   : > { %781 = vmatpush.msrb.mxu3 %v3664_v7  ;;  %743 = vmatpush.msrb.mxu1 %v3673_v18 }
  0x6f   : > { %2700 = vmatmul.msk.f32.gmra.mxu0 %vm414_vm0, %v393_v6  ;;  %763 = vmatpush.msrb.mxu2 %v3681_v44 }
  0x70   : > { %782 = vmatpush.msrb.mxu3 %v3678_v31  ;;  %723 = vmatpush.msrb.mxu0 %v3686_v57 }
  0x71   : > { %2708 = vmatmul.msk.f32.gmra.mxu1 %vm414_vm0, %v393_v6  ;;  %975 = vmatpush.msra.mxu2 %v3424_v10  ;;  %v3243_v10 = vmov 0.0  }
  0x72   : > { %783 = vmatpush.msrb.mxu3 %v3690_v3  ;;  %935 = vmatpush.msra.mxu0 %v3421_v9  ;;  %v395_v9 = vld [vmem:[#allocation5 + $0x38] sm:$0xff] }
  0x73   : > { %955 = vmatpush.msra.mxu1 %v3428_v11  ;;  %976 = vmatpush.msra.mxu2 %v3435_v13  ;;  %v4856_v11 = vld [vmem:[#allocation24_spill] sm:$0xff]  ;;  %v404_v13 = vld [vmem:[%s3412_s22] sm:$0xf]  ;;  %s1765_s22 = scalar_lea.vmem %s3818_s8, %s2768_s6 [#allocation13] }
  0x74   : > { %995 = vmatpush.msra.mxu3 %v3442_v15  ;;  %936 = vmatpush.msra.mxu0 %v3431_v12  ;;  %v4857_v12 = vld [vmem:[#allocation25_spill] sm:$0xff]  ;;  %v3773_v15 = vperm.slane %v404_v13, 1 }
  0x75   : > { %2717 = vmatmul.msk.f32.gmra.mxu2 %vm414_vm0, %v394_v5  ;;  %2725 = vmatmul.msk.f32.gmra.mxu3 %vm414_vm0, %v394_v5 }
  0x76   : > { %956 = vmatpush.msra.mxu1 %v3446_v16  ;;  %996 = vmatpush.msra.mxu3 %v3478_v24 }
  0x77   : > { %2701 = vmatmul.msk.f32.gmra.mxu0 %vm414_vm0, %v394_v5  ;;  %977 = vmatpush.msra.mxu2 %v3439_v14  ;;  %v3771_v14 = vperm.slane %v404_v13, 0 }
  0x78   : > { %937 = vmatpush.msra.mxu0 %v3449_v17  ;;  %957 = vmatpush.msra.mxu1 %v3455_v19  ;;  %v3776_v19 = vperm.slane %v404_v13, 2 }
  0x79   : > { %2709 = vmatmul.msk.f32.gmra.mxu1 %vm414_vm0, %v394_v5  ;;  %997 = vmatpush.msra.mxu3 %v3494_v28 }
  0x7a   : > { %938 = vmatpush.msra.mxu0 %v3458_v20  ;;  %958 = vmatpush.msra.mxu1 %v3470_v22  ;;  %v3778_v20 = vperm.slane %v404_v13, 3 }
  0x7b   : > { %978 = vmatpush.msra.mxu2 %v3465_v21  ;;  %998 = vmatpush.msra.mxu3 %v3517_v34 }
  0x7c   : > { %939 = vmatpush.msra.mxu0 %v3473_v23  ;;  %959 = vmatpush.msra.mxu1 %v3482_v25 }
  0x7d   : > { %2718 = vmatmul.msk.f32.gmra.mxu2 %vm414_vm0, %v395_v9  ;;  %2726 = vmatmul.msk.f32.gmra.mxu3 %vm414_vm0, %v395_v9 }
  0x7e   : > { %979 = vmatpush.msra.mxu2 %v3491_v27  ;;  %999 = vmatpush.msra.mxu3 %v3535_v38 }
  0x7f   : > { %2702 = vmatmul.msk.f32.gmra.mxu0 %vm414_vm0, %v395_v9  ;;  %960 = vmatpush.msra.mxu1 %v3499_v29 }
  0x80   : > { %940 = vmatpush.msra.mxu0 %v3486_v26  ;;  %980 = vmatpush.msra.mxu2 %v3512_v33 }
  0x81   : > { %2710 = vmatmul.msk.f32.gmra.mxu1 %vm414_vm0, %v395_v9  ;;  %1000 = vmatpush.msra.mxu3 %v3551_v42 }
  0x82   : > { %941 = vmatpush.msra.mxu0 %v3502_v30  ;;  %961 = vmatpush.msra.mxu1 %v3509_v32 }
  0x83   : > { %981 = vmatpush.msra.mxu2 %v3530_v37  ;;  %1001 = vmatpush.msra.mxu3 %v3569_v47 }
  0x84   : > { %942 = vmatpush.msra.mxu0 %v3522_v35  ;;  %962 = vmatpush.msra.mxu1 %v3525_v36 }
  0x85   : > { %764 = vmatmul.f32.vlgmr.msrb.gmra.mxu2 %v3243_v10  ;;  %784 = vmatmul.f32.vlgmr.msrb.gmra.mxu3 %v3243_v10 }
  0x86   : > { %982 = vmatpush.msra.mxu2 %v3546_v41  ;;  %1002 = vmatpush.msra.mxu3 %v3587_v51 }
  0x87   : > { %724 = vmatmul.f32.vlgmr.msrb.gmra.mxu0 %v3243_v10  ;;  %963 = vmatpush.msra.mxu1 %v3543_v40 }
  0x88   : > { %943 = vmatpush.msra.mxu0 %v3538_v39  ;;  %983 = vmatpush.msra.mxu2 %v3564_v46 }
  0x89   : > { %744 = vmatmul.f32.vlgmr.msrb.gmra.mxu1 %v3243_v10  ;;  %1003 = vmatpush.msra.mxu3 %v3603_v55 }
  0x8a   : > { %944 = vmatpush.msra.mxu0 %v3554_v43  ;;  %964 = vmatpush.msra.mxu1 %v3561_v45 }
  0x8b   : > { %984 = vmatpush.msra.mxu2 %v3582_v50  ;;  %1004 = vmatpush.msra.mxu3 %v3613_v58 }
  0x8c   : > { %945 = vmatpush.msra.mxu0 %v3574_v48  ;;  %965 = vmatpush.msra.mxu1 %v3577_v49 }
  0x8d   : > { %985 = vmatpush.msra.mxu2 %v3598_v54  ;;  %1005 = vmatpush.msra.mxu3 %v3626_v61 }
  0x8e   : > { %946 = vmatpush.msra.mxu0 %v3590_v52  ;;  %966 = vmatpush.msra.mxu1 %v3595_v53 }
  0x8f   : > { %986 = vmatpush.msra.mxu2 %v3621_v60  ;;  %1006 = vmatpush.msra.mxu3 %v3639_v0 }
  0x90   : > { %947 = vmatpush.msra.mxu0 %v3606_v56  ;;  %967 = vmatpush.msra.mxu1 %v3616_v59 }
  0x91   : > { %987 = vmatpush.msra.mxu2 %v3634_v63  ;;  %1007 = vmatpush.msra.mxu3 %v3655_v4 }
  0x92   : > { %948 = vmatpush.msra.mxu0 %v3629_v62  ;;  %968 = vmatpush.msra.mxu1 %v3642_v1 }
  0x93   : > { %988 = vmatpush.msra.mxu2 %v3647_v2  ;;  %1008 = vmatpush.msra.mxu3 %v3664_v7 }
  0x94   : > { %949 = vmatpush.msra.mxu0 %v4856_v11  ;;  %969 = vmatpush.msra.mxu1 %v4857_v12 }
  0x95   : > { %989 = vmatpush.msra.mxu2 %v3667_v8  ;;  %1009 = vmatpush.msra.mxu3 %v3678_v31 }
  0x96   : > { %950 = vmatpush.msra.mxu0 %v3686_v57  ;;  %970 = vmatpush.msra.mxu1 %v3673_v18 }
  0x97   : > { %990 = vmatpush.msra.mxu2 %v3681_v44  ;;  %1010 = vmatpush.msra.mxu3 %v3690_v3 }
  0xc4   : > { %v456_v16 = vpop.f32.mrf.mxu0 }
  0xc5   : > { %v457_v17 = vadd.f32 %v456_v16, %v3771_v14  ;;  %v497_v21 = vpop.f32.mrf.mxu1 }
  0xc6   : > { %v498_v22 = vadd.f32 %v497_v21, %v3773_v15 }
  0xc7   : > { %603 = vst [vmem:[#allocation2] sm:$0xff] %v457_v17  ;;  %v538_v23 = vpop.f32.mrf.mxu2 }
  0xc8   : > { %v579_v24 = vpop.f32.mrf.mxu3  ;;  %604 = vst [vmem:[#allocation2 + $0x8] sm:$0xff] %v498_v22  ;;  %v539_v25 = vadd.f32 %v538_v23, %v3776_v19 }
  0xc9   : > { %v580_v26 = vadd.f32 %v579_v24, %v3778_v20 }
  0xca   : > { %605 = vst [vmem:[#allocation2 + $0x10] sm:$0xff] %v539_v25 }
  0xcb   : > { %606 = vst [vmem:[#allocation2 + $0x18] sm:$0xff] %v580_v26 }
  0xcc   : > { %v459_v27 = vpop.f32.mrf.mxu0 }
  0xcd   : > { %v460_v28 = vadd.f32 %v459_v27, %v3771_v14  ;;  %v500_v29 = vpop.f32.mrf.mxu1 }
  0xce   : > { %v501_v30 = vadd.f32 %v500_v29, %v3773_v15 }
  0xcf   : > { %607 = vst [vmem:[#allocation2 + $0x20] sm:$0xff] %v460_v28  ;;  %v541_v32 = vpop.f32.mrf.mxu2 }
  0xd0   : > { %v582_v33 = vpop.f32.mrf.mxu3  ;;  %608 = vst [vmem:[#allocation2 + $0x28] sm:$0xff] %v501_v30  ;;  %v542_v35 = vadd.f32 %v541_v32, %v3776_v19 }
  0xd1   : > { %v583_v36 = vadd.f32 %v582_v33, %v3778_v20 }
  0xd2   : > { %609 = vst [vmem:[#allocation2 + $0x30] sm:$0xff] %v542_v35 }
  0xd3   : > { %610 = vst [vmem:[#allocation2 + $0x38] sm:$0xff] %v583_v36 }
  0xd4   : > { %v462_v37 = vpop.f32.mrf.mxu0 }
  0xd5   : > { %v463_v39 = vadd.f32 %v462_v37, %v3771_v14  ;;  %v503_v40 = vpop.f32.mrf.mxu1 }
  0xd6   : > { %v504_v41 = vadd.f32 %v503_v40, %v3773_v15 }
  0xd7   : > { %611 = vst [vmem:[#allocation2 + $0x40] sm:$0xff] %v463_v39  ;;  %v544_v43 = vpop.f32.mrf.mxu2 }
  0xd8   : > { %v585_v45 = vpop.f32.mrf.mxu3  ;;  %612 = vst [vmem:[#allocation2 + $0x48] sm:$0xff] %v504_v41  ;;  %v545_v46 = vadd.f32 %v544_v43, %v3776_v19 }
  0xd9   : > { %v586_v48 = vadd.f32 %v585_v45, %v3778_v20 }
  0xda   : > { %613 = vst [vmem:[#allocation2 + $0x50] sm:$0xff] %v545_v46 }
  0xdb   : > { %614 = vst [vmem:[#allocation2 + $0x58] sm:$0xff] %v586_v48 }
  0xdc   : > { %v465_v49 = vpop.f32.mrf.mxu0 }
  0xdd   : > { %v466_v50 = vadd.f32 %v465_v49, %v3771_v14  ;;  %v506_v52 = vpop.f32.mrf.mxu1 }
  0xde   : > { %v507_v53 = vadd.f32 %v506_v52, %v3773_v15 }
  0xdf   : > { %615 = vst [vmem:[#allocation2 + $0x60] sm:$0xff] %v466_v50  ;;  %v547_v54 = vpop.f32.mrf.mxu2 }
  0xe0   : > { %v588_v56 = vpop.f32.mrf.mxu3  ;;  %616 = vst [vmem:[#allocation2 + $0x68] sm:$0xff] %v507_v53  ;;  %v548_v59 = vadd.f32 %v547_v54, %v3776_v19 }
  0xe1   : > { %v589_v3 = vadd.f32 %v588_v56, %v3778_v20 }
  0xe2   : > { %617 = vst [vmem:[#allocation2 + $0x70] sm:$0xff] %v548_v59 }
  0xe3   : > { %618 = vst [vmem:[#allocation2 + $0x78] sm:$0xff] %v589_v3 }
  0xe4   : > { %v468_v5 = vpop.f32.mrf.mxu0 }
  0xe5   : > { %v469_v6 = vadd.f32 %v468_v5, %v3771_v14 }
  0xe6   : > { %v509_v8 = vpop.f32.mrf.mxu1 }
  0xe7   : > { %619 = vst [vmem:[#allocation2 + $0x80] sm:$0xff] %v469_v6  ;;  %v510_v31 = vadd.f32 %v509_v8, %v3773_v15  ;;  %v550_v44 = vpop.f32.mrf.mxu2 }
  0xe8   : > { %v591_v9 = vpop.f32.mrf.mxu3  ;;  %v551_v10 = vadd.f32 %v550_v44, %v3776_v19 }
  0xe9   : > { %620 = vst [vmem:[#allocation2 + $0x88] sm:$0xff] %v510_v31  ;;  %v592_v13 = vadd.f32 %v591_v9, %v3778_v20 }
  0xea   : > { %621 = vst [vmem:[#allocation2 + $0x90] sm:$0xff] %v551_v10 }
  0xeb   : > { %622 = vst [vmem:[#allocation2 + $0x98] sm:$0xff] %v592_v13 }
  0xec   : > { %v471_v16 = vpop.f32.mrf.mxu0 }
  0xed   : > { %v472_v17 = vadd.f32 %v471_v16, %v3771_v14 }
  0xee   : > { %v512_v21 = vpop.f32.mrf.mxu1 }
  0xef   : > { %623 = vst [vmem:[#allocation2 + $0xa0] sm:$0xff] %v472_v17  ;;  %v513_v22 = vadd.f32 %v512_v21, %v3773_v15  ;;  %v553_v23 = vpop.f32.mrf.mxu2 }
  0xf0   : > { %v594_v24 = vpop.f32.mrf.mxu3  ;;  %v554_v25 = vadd.f32 %v553_v23, %v3776_v19 }
  0xf1   : > { %624 = vst [vmem:[#allocation2 + $0xa8] sm:$0xff] %v513_v22  ;;  %v595_v26 = vadd.f32 %v594_v24, %v3778_v20 }
  0xf2   : > { %625 = vst [vmem:[#allocation2 + $0xb0] sm:$0xff] %v554_v25 }
  0xf3   : > { %626 = vst [vmem:[#allocation2 + $0xb8] sm:$0xff] %v595_v26 }
  0xf4   : > { %v474_v27 = vpop.f32.mrf.mxu0 }
  0xf5   : > { %v475_v28 = vadd.f32 %v474_v27, %v3771_v14 }
  0xf6   : > { %v515_v29 = vpop.f32.mrf.mxu1 }
  0xf7   : > { %627 = vst [vmem:[#allocation2 + $0xc0] sm:$0xff] %v475_v28  ;;  %v516_v30 = vadd.f32 %v515_v29, %v3773_v15 }
  0xf8   : > { %v556_v32 = vpop.f32.mrf.mxu2  ;;  %v597_v33 = vpop.f32.mrf.mxu3 }
  0xf9   : > { %628 = vst [vmem:[#allocation2 + $0xc8] sm:$0xff] %v516_v30  ;;  %v557_v35 = vadd.f32 %v556_v32, %v3776_v19  ;;  %v598_v36 = vadd.f32 %v597_v33, %v3778_v20 }
  0xfb   : > { %629 = vst [vmem:[#allocation2 + $0xd0] sm:$0xff] %v557_v35 }
  0xfc   : > { %630 = vst [vmem:[#allocation2 + $0xd8] sm:$0xff] %v598_v36  ;;  %v477_v37 = vpop.f32.mrf.mxu0 }
  0xfd   : > { %v478_v39 = vadd.f32 %v477_v37, %v3771_v14 }
  0xfe   : > { %v518_v40 = vpop.f32.mrf.mxu1 }
  0xff   : > { %631 = vst [vmem:[#allocation2 + $0xe0] sm:$0xff] %v478_v39  ;;  %v519_v41 = vadd.f32 %v518_v40, %v3773_v15 }
 0x100   : > { %v559_v43 = vpop.f32.mrf.mxu2  ;;  %v600_v45 = vpop.f32.mrf.mxu3 }
 0x101   : > { %632 = vst [vmem:[#allocation2 + $0xe8] sm:$0xff] %v519_v41  ;;  %v560_v46 = vadd.f32 %v559_v43, %v3776_v19  ;;  %v601_v48 = vadd.f32 %v600_v45, %v3778_v20 }
 0x103   : > { %633 = vst [vmem:[#allocation2 + $0xf0] sm:$0xff] %v560_v46 }
 0x104   : > { %634 = vst [vmem:[#allocation2 + $0xf8] sm:$0xff] %v601_v48  ;;  %v725_v49 = vpop.f32.mrf.mxu0 }
 0x106   : > { %v745_v50 = vpop.f32.mrf.mxu1 }
 0x108   : > { %v765_v52 = vpop.f32.mrf.mxu2  ;;  %v785_v13 = vpop.f32.mrf.mxu3 }
 0x10b   : > { %v639_v53 = vld [vmem:[%s638_s24] sm:$0xff]  ;;  %v640_v14 = vld [vmem:[%s638_s24 + $0x8] sm:$0xff]  ;;  %v641_v54 = vld [vmem:[%s638_s24 + $0x10] sm:$0xff] }
 0x10c   : > { %v788_v56 = vadd.f32 %v725_v49, %v639_v53  ;;  %v789_v59 = vadd.f32 %v745_v50, %v640_v14  ;;  %v790_v15 = vadd.f32 %v765_v52, %v641_v54  ;;  %v642_v10 = vld [vmem:[%s638_s24 + $0x18] sm:$0xff]  ;;  %s4588_s24 = scalar_lea.vmem [#allocation2], %s2769_s27  ;;  %s3166_s27 = scalar_lea.hbm %s4809_s4, 128 }
 0x10d   : > { %v791_v17 = vadd.f32 %v785_v13, %v642_v10  ;;  %v3841_v10 = vld [vmem:[%s3409_s21 + $0x1c8] sm:$0xff]  ;;  %v3844_v13 = vld [vmem:[%s3409_s21 + $0x1d0] sm:$0xff] }
 0x10e   : > { %v2729_v3 = vmul.f32 -1.442695, %v788_v56  ;;  %v2730_v5 = vmul.f32 -1.442695, %v789_v59  ;;  %v2731_v6 = vmul.f32 -1.442695, %v790_v15 }
 0x110   : > { %2898 = vpow2.f32 %v2729_v3 }
 0x111   : > { %2900 = vpow2.f32 %v2730_v5 }
 0x112   : > { %2902 = vpow2.f32 %v2731_v6 }
 0x116   : > { %v2899_v19 = vpop.eup %2898 }
 0x117   : > { %v2901_v20 = vpop.eup %2900  ;;  %v801_v8 = vadd.f32 1.0, %v2899_v19 }
 0x118   : > { %v2903_v31 = vpop.eup %2902  ;;  %v802_v44 = vadd.f32 1.0, %v2901_v20  ;;  %v3822_v20 = vld [vmem:[%s3409_s21 + $0x1e0] sm:$0xff] }
 0x119   : > { %2904 = vrcp.f32 %v801_v8  ;;  %v803_v9 = vadd.f32 1.0, %v2903_v31  ;;  %v815_v28 = vand.u32 2147483648, %v801_v8  ;;  %v813_v32 = vand.u32 2147483647, %v801_v8  ;;  %v3828_v31 = vld [vmem:[%s3409_s21 + $0x1f0] sm:$0xff]  ;;  %1162 = vmatpush.msrb.mxu0 %v3822_v20 }
 0x11a   : > { %2906 = vrcp.f32 %v802_v44  ;;  %v830_v29 = vand.u32 2147483648, %v802_v44  ;;  %v828_v35 = vand.u32 2147483647, %v802_v44  ;;  %vm809_vm3 = vweird.f32 %v801_v8  ;;  %1202 = vmatpush.msrb.mxu2 %v3828_v31 }
 0x11b   : > { %2908 = vrcp.f32 %v803_v9  ;;  %vm824_vm4 = vweird.f32 %v802_v44  ;;  %v816_v39 = vor.u32 1.1754944e-38, %v815_v28  ;;  %vm814_vm6 = vcmp.eq.f32.partialorder %v813_v32, 8.507059e+37  ;;  %v3886_v28 = vld [vmem:[%s3409_s21 + $0x168] sm:$0xff]  ;;  %v3903_v32 = vld [vmem:[%s3409_s21 + $0x150] sm:$0xff] }
 0x11c   : > { %2910 = vtanh.f32 %v791_v17  ;;  %v831_v41 = vor.u32 1.1754944e-38, %v830_v29  ;;  %vm829_vm8 = vcmp.eq.f32.partialorder %v828_v35, 8.507059e+37  ;;  %v845_v56 = vand.u32 2147483648, %v803_v9  ;;  %1203 = vmatpush.msrb.mxu2 %v3844_v13  ;;  %v3854_v17 = vld [vmem:[%s3409_s21 + $0x1a0] sm:$0xff]  ;;  %v3889_v29 = vld [vmem:[%s3409_s21 + $0x170] sm:$0xff] }
 0x11d   : > { %vm839_vm10 = vweird.f32 %v803_v9  ;;  %v843_v59 = vand.u32 2147483647, %v803_v9  ;;  %v3916_v35 = vld [vmem:[%s3409_s21 + $0x130] sm:$0xff] }
 0x11e   : > { %v846_v3 = vor.u32 1.1754944e-38, %v845_v56 }
 0x11f   : > { %v2905_v16 = vpop.eup %2904  ;;  %vm844_vm12 = vcmp.eq.f32.partialorder %v843_v59, 8.507059e+37 }
 0x120   : > { %v2907_v21 = vpop.eup %2906  ;;  %v805_v22 = vmul.f32 %v2905_v16, %v801_v8  ;;  %vm810_vm1 = vweird.f32 %v2905_v16  ;;  %v3825_v8 = vld [vmem:[%s3409_s21 + $0x1e8] sm:$0xff] }
 0x121   : > { %v2909_v23 = vpop.eup %2908  ;;  %v820_v24 = vmul.f32 %v2907_v21, %v802_v44  ;;  %vm825_vm2 = vweird.f32 %v2907_v21  ;;  %vm811_vm5 = vmor %vm809_vm3, %vm810_vm1  ;;  %1182 = vmatpush.msrb.mxu1 %v3825_v8  ;;  %v3833_v44 = vld [vmem:[%s3409_s21 + $0x1f8] sm:$0xff] }
 0x122   : > { %v806_v25 = vsub.f32 1.0, %v805_v22  ;;  %v835_v26 = vmul.f32 %v2909_v23, %v803_v9  ;;  %vm826_vm7 = vmor %vm824_vm4, %vm825_vm2  ;;  %v2911_v45 = vpop.eup %2910  ;;  %vm840_vm9 = vweird.f32 %v2909_v23  ;;  %1222 = vmatpush.msrb.mxu3 %v3833_v44  ;;  %v3838_v9 = vld [vmem:[%s3409_s21 + $0x1c0] sm:$0xff]  ;;  %v3860_v22 = vld [vmem:[%s3409_s21 + $0x1b0] sm:$0xff] }
 0x123   : > { %v821_v27 = vsub.f32 1.0, %v820_v24  ;;  %vm841_vm11 = vmor %vm839_vm10, %vm840_vm9  ;;  %1163 = vmatpush.msrb.mxu0 %v3838_v9  ;;  %1183 = vmatpush.msrb.mxu1 %v3841_v10  ;;  %v3870_v24 = vld [vmem:[%s3409_s21 + $0x180] sm:$0xff] }
 0x124   : > { %v807_v30 = vmul.f32 %v2905_v16, %v806_v25  ;;  %v836_v36 = vsub.f32 1.0, %v835_v26  ;;  %1204 = vmatpush.msrb.mxu2 %v3860_v22  ;;  %v3873_v25 = vld [vmem:[%s3409_s21 + $0x188] sm:$0xff]  ;;  %v3876_v26 = vld [vmem:[%s3409_s21 + $0x190] sm:$0xff] }
 0x125   : > { %v822_v33 = vmul.f32 %v2907_v21, %v821_v27  ;;  %1164 = vmatpush.msrb.mxu0 %v3854_v17  ;;  %v3883_v27 = vld [vmem:[%s3409_s21 + $0x160] sm:$0xff] }
 0x126   : > { %v808_v37 = vadd.f32 %v2905_v16, %v807_v30  ;;  %v837_v49 = vmul.f32 %v2909_v23, %v836_v36  ;;  %1205 = vmatpush.msrb.mxu2 %v3876_v26  ;;  %v3900_v30 = vld [vmem:[%s3409_s21 + $0x148] sm:$0xff]  ;;  %v3923_v36 = vld [vmem:[%s3409_s21 + $0x100] sm:$0xff] }
 0x127   : > { %v823_v40 = vadd.f32 %v2907_v21, %v822_v33  ;;  %1165 = vmatpush.msrb.mxu0 %v3870_v24  ;;  %v3910_v33 = vld [vmem:[%s3409_s21 + $0x120] sm:$0xff] }
 0x128   : > { %v812_v43 = vsel %vm811_vm5, %v2905_v16, %v808_v37  ;;  %v838_v54 = vadd.f32 %v2909_v23, %v837_v49  ;;  %v3849_v16 = vld [vmem:[%s3409_s21 + $0x1d8] sm:$0xff]  ;;  %1206 = vmatpush.msrb.mxu2 %v3889_v29  ;;  %v3926_v37 = vld [vmem:[%s3409_s21 + $0x108] sm:$0xff]  ;;  %v3959_v49 = vld [vmem:[%s3409_s21 + $0xd0] sm:$0xff] }
 0x129   : > { %v817_v46 = vsel %vm814_vm6, %v816_v39, %v812_v43  ;;  %v827_v48 = vsel %vm826_vm7, %v2907_v21, %v823_v40  ;;  %1223 = vmatpush.msrb.mxu3 %v3849_v16  ;;  %v3857_v21 = vld [vmem:[%s3409_s21 + $0x1a8] sm:$0xff]  ;;  %1166 = vmatpush.msrb.mxu0 %v3883_v27  ;;  %v3936_v39 = vld [vmem:[%s3409_s21 + $0xe0] sm:$0xff]  ;;  %v3942_v40 = vld [vmem:[%s3409_s21 + $0xf0] sm:$0xff] }
 0x12a   : > { %v832_v50 = vsel %vm829_vm8, %v831_v41, %v827_v48  ;;  %v852_v52 = vmul.f32 %v2911_v45, %v817_v46  ;;  %v842_v15 = vsel %vm841_vm11, %v2909_v23, %v838_v54  ;;  %1184 = vmatpush.msrb.mxu1 %v3857_v21  ;;  %v3865_v23 = vld [vmem:[%s3409_s21 + $0x1b8] sm:$0xff]  ;;  %1207 = vmatpush.msrb.mxu2 %v3903_v32  ;;  %v2734_v41 = vld [vmem:[%s3944_s7 + $0x20] sm:$0xff]  ;;  %v2735_v43 = vld [vmem:[%s3944_s7 + $0x28] sm:$0xff] }
 0x12b   : > { %v851_v53 = vmul.f32 0.0, %v832_v50  ;;  %v847_v6 = vsel %vm844_vm12, %v846_v3, %v842_v15  ;;  %1224 = vmatpush.msrb.mxu3 %v3865_v23  ;;  %v3953_v46 = vld [vmem:[%s3409_s21 + $0xc0] sm:$0xff]  ;;  %v3956_v48 = vld [vmem:[%s3409_s21 + $0xc8] sm:$0xff]  ;;  %v3972_v54 = vld [vmem:[%s3409_s21 + $0xb0] sm:$0xff] }
 0x12c   : > { %1185 = vmatpush.msrb.mxu1 %v3873_v25  ;;  %1208 = vmatpush.msrb.mxu2 %v3916_v35  ;;  %v3979_v15 = vld [vmem:[%s3409_s21 + $0x80] sm:$0xff] }
 0x12d   : > { %v3812_v14 = vadd.f32 %v852_v52, %v851_v53  ;;  %1225 = vmatpush.msrb.mxu3 %v3517_v34  ;;  %v3897_v34 = vld [vmem:[%s3409_s21 + $0x140] sm:$0xff]  ;;  %v3969_v53 = vld [vmem:[%s3409_s21 + $0xa8] sm:$0xff] }
 0x12e   : > { %1186 = vmatpush.msrb.mxu1 %v3886_v28  ;;  %1167 = vmatpush.msrb.mxu0 %v3897_v34  ;;  %v3985_v3 = vld [vmem:[%s3409_s21 + $0x60] sm:$0xff] }
 0x12f   : > { %2912 = vtanh.f32 %v3812_v14  ;;  %1226 = vmatpush.msrb.mxu3 %v3535_v38  ;;  %v3913_v38 = vld [vmem:[%s3409_s21 + $0x128] sm:$0xff]  ;;  %4859 = vst [vmem:[#allocation25_spill] sm:$0xff] %v3985_v3 }
 0x130   : > { %1187 = vmatpush.msrb.mxu1 %v3900_v30  ;;  %4858 = vst [vmem:[#allocation24_spill] sm:$0xff] %v3913_v38  ;;  %1168 = vmatpush.msrb.mxu0 %v3910_v33 }
 0x131   : > { %1227 = vmatpush.msrb.mxu3 %v3551_v42  ;;  %v3929_v42 = vld [vmem:[%s3409_s21 + $0x110] sm:$0xff] }
 0x132   : > { %1188 = vmatpush.msrb.mxu1 %v3913_v38  ;;  %1169 = vmatpush.msrb.mxu0 %v3923_v36 }
 0x133   : > { %1228 = vmatpush.msrb.mxu3 %v3569_v47  ;;  %1209 = vmatpush.msrb.mxu2 %v3929_v42  ;;  %v3939_v47 = vld [vmem:[%s3409_s21 + $0xe8] sm:$0xff] }
 0x134   : > { %1189 = vmatpush.msrb.mxu1 %v3926_v37  ;;  %1170 = vmatpush.msrb.mxu0 %v3936_v39 }
 0x135   : > { %v2913_v5 = vpop.eup %2912  ;;  %1229 = vmatpush.msrb.mxu3 %v3587_v51  ;;  %1210 = vmatpush.msrb.mxu2 %v3942_v40 }
 0x136   : > { %v855_v19 = vmul.f32 %v2913_v5, %v847_v6  ;;  %1190 = vmatpush.msrb.mxu1 %v3939_v47  ;;  %1171 = vmatpush.msrb.mxu0 %v3953_v46  ;;  %v3990_v5 = vld [vmem:[%s3409_s21 + $0x68] sm:$0xff] }
 0x137   : > { %1230 = vmatpush.msrb.mxu3 %v3603_v55  ;;  %1211 = vmatpush.msrb.mxu2 %v3959_v49  ;;  %v3966_v55 = vld [vmem:[%s3409_s21 + $0xa0] sm:$0xff]  ;;  %4860 = vst [vmem:[#allocation26_spill] sm:$0xff] %v3990_v5 }
 0x138   : > { %860 = vst [vmem:[%s859_s25] sm:$0xff] %v855_v19  ;;  %951 = vmatmul.f32.vlgmr.msra.gmra.mxu0 %v855_v19  ;;  %971 = vmatmul.f32.vlgmr.msra.gmra.mxu1 %v855_v19  ;;  %s2779_s25 = smul.u32 4294967136, %s3228_s18 }
 0x139   : > { %991 = vmatmul.f32.vlgmr.msra.gmra.mxu2 %v855_v19  ;;  %1011 = vmatmul.f32.vlgmr.msra.gmra.mxu3 %v855_v19 }
 0x13a   : > { %1191 = vmatpush.msrb.mxu1 %v3956_v48  ;;  %1231 = vmatpush.msrb.mxu3 %v3613_v58  ;;  %v3982_v58 = vld [vmem:[%s3409_s21 + $0x88] sm:$0xff]  ;;  %s2591_s12 = scalar_lea.vmem [#allocation2], %s2779_s25 }
 0x13b   : > { %1172 = vmatpush.msrb.mxu0 %v3966_v55  ;;  %1212 = vmatpush.msrb.mxu2 %v3972_v54 }
 0x13c   : > { %1192 = vmatpush.msrb.mxu1 %v3969_v53  ;;  %1232 = vmatpush.msrb.mxu3 %v3626_v61  ;;  %v2736_v61 = vld [vmem:[%s3944_s7 + $0x30] sm:$0xff] }
 0x13d   : > { %1173 = vmatpush.msrb.mxu0 %v3979_v15  ;;  %1213 = vmatpush.msrb.mxu2 %v3621_v60  ;;  %v4002_v60 = vld [vmem:[%s3409_s21 + $0x30] sm:$0xff] }
 0x13e   : > { %1193 = vmatpush.msrb.mxu1 %v3982_v58  ;;  %1233 = vmatpush.msrb.mxu3 %v3639_v0  ;;  %v4005_v0 = vld [vmem:[%s3409_s21 + $0x38] sm:$0xff] }
 0x13f   : > { %1174 = vmatpush.msrb.mxu0 %v3985_v3  ;;  %1214 = vmatpush.msrb.mxu2 %v3634_v63  ;;  %v4012_v63 = vld [vmem:[%s3409_s21 + $0x10] sm:$0xff] }
 0x140   : > { %1194 = vmatpush.msrb.mxu1 %v3990_v5  ;;  %1234 = vmatpush.msrb.mxu3 %v3655_v4  ;;  %v4015_v4 = vld [vmem:[%s3409_s21 + $0x18] sm:$0xff] }
 0x141   : > { %1175 = vmatpush.msrb.mxu0 %v3629_v62  ;;  %1215 = vmatpush.msrb.mxu2 %v3647_v2 }
 0x142   : > { %1195 = vmatpush.msrb.mxu1 %v3642_v1  ;;  %1235 = vmatpush.msrb.mxu3 %v3664_v7 }
 0x143   : > { %1176 = vmatpush.msrb.mxu0 %v4856_v11  ;;  %1216 = vmatpush.msrb.mxu2 %v4002_v60  ;;  %v2737_v11 = vld [vmem:[%s3944_s7 + $0x38] sm:$0xff]  ;;  %s2787_s7 = smul.u32 4294967256, %s3228_s18 }
 0x144   : > { %1196 = vmatpush.msrb.mxu1 %v4857_v12  ;;  %1236 = vmatpush.msrb.mxu3 %v4005_v0 }
 0x145   : > { %1177 = vmatpush.msrb.mxu0 %v3686_v57  ;;  %1217 = vmatpush.msrb.mxu2 %v4012_v63  ;;  %s2595_s9 = scalar_lea.vmem %s3818_s8, %s2787_s7 [#allocation13] }
 0x146   : > { %1197 = vmatpush.msrb.mxu1 %v3673_v18  ;;  %1237 = vmatpush.msrb.mxu3 %v4015_v4 }
 0x147   : > { %1388 = vmatpush.msra.mxu0 %v3822_v20  ;;  %1428 = vmatpush.msra.mxu2 %v3828_v31 }
 0x148   : > { %1408 = vmatpush.msra.mxu1 %v3825_v8  ;;  %1448 = vmatpush.msra.mxu3 %v3833_v44 }
 0x149   : > { %1389 = vmatpush.msra.mxu0 %v3838_v9  ;;  %1429 = vmatpush.msra.mxu2 %v3844_v13 }
 0x14a   : > { %1409 = vmatpush.msra.mxu1 %v3841_v10  ;;  %1449 = vmatpush.msra.mxu3 %v3849_v16 }
 0x14b   : > { %1390 = vmatpush.msra.mxu0 %v3854_v17  ;;  %1430 = vmatpush.msra.mxu2 %v3860_v22 }
 0x14c   : > { %1410 = vmatpush.msra.mxu1 %v3857_v21  ;;  %1450 = vmatpush.msra.mxu3 %v3865_v23 }
 0x14d   : > { %1391 = vmatpush.msra.mxu0 %v3870_v24  ;;  %1431 = vmatpush.msra.mxu2 %v3876_v26 }
 0x14e   : > { %1411 = vmatpush.msra.mxu1 %v3873_v25 }
 0x14f   : > { %1392 = vmatpush.msra.mxu0 %v3883_v27  ;;  %1432 = vmatpush.msra.mxu2 %v3889_v29 }
 0x150   : > { %1412 = vmatpush.msra.mxu1 %v3886_v28 }
 0x151   : > { %1393 = vmatpush.msra.mxu0 %v3897_v34  ;;  %1433 = vmatpush.msra.mxu2 %v3903_v32 }
 0x152   : > { %1413 = vmatpush.msra.mxu1 %v3900_v30 }
 0x153   : > { %1394 = vmatpush.msra.mxu0 %v3910_v33  ;;  %1434 = vmatpush.msra.mxu2 %v3916_v35 }
 0x154   : > { %1414 = vmatpush.msra.mxu1 %v3913_v38 }
 0x155   : > { %1395 = vmatpush.msra.mxu0 %v3923_v36  ;;  %1435 = vmatpush.msra.mxu2 %v3929_v42 }
 0x156   : > { %1415 = vmatpush.msra.mxu1 %v3926_v37 }
 0x157   : > { %1396 = vmatpush.msra.mxu0 %v3936_v39  ;;  %1436 = vmatpush.msra.mxu2 %v3942_v40 }
 0x158   : > { %1416 = vmatpush.msra.mxu1 %v3939_v47 }
 0x159   : > { %1397 = vmatpush.msra.mxu0 %v3953_v46  ;;  %1437 = vmatpush.msra.mxu2 %v3959_v49 }
 0x15a   : > { %1417 = vmatpush.msra.mxu1 %v3956_v48 }
 0x15b   : > { %1398 = vmatpush.msra.mxu0 %v3966_v55  ;;  %1438 = vmatpush.msra.mxu2 %v3972_v54 }
 0x15c   : > { %1418 = vmatpush.msra.mxu1 %v3969_v53 }
 0x15d   : > { %1399 = vmatpush.msra.mxu0 %v3979_v15 }
 0x15e   : > { %1419 = vmatpush.msra.mxu1 %v3982_v58 }
 0x15f   : > { %1400 = vmatpush.msra.mxu0 %v3985_v3  ;;  %v4167_v3 = vld [vmem:[%s3409_s21] sm:$0xff] }
 0x160   : > { %1420 = vmatpush.msra.mxu1 %v3990_v5  ;;  %v4164_v5 = vld [vmem:[%s3409_s21 + $0x28] sm:$0xff] }
 0x1b5   : > { %v952_v51 = vpop.f32.mrf.mxu0  ;;  %v972_v45 = vpop.f32.mrf.mxu1 }
 0x1b6   : > { %v1015_v50 = vadd.f32 %v2734_v41, %v952_v51  ;;  %v1016_v52 = vadd.f32 %v2735_v43, %v972_v45 }
 0x1b8   : > { %v2738_v56 = vmul.f32 -1.442695, %v1015_v50  ;;  %v2739_v59 = vmul.f32 -1.442695, %v1016_v52 }
 0x1ba   : > { %2914 = vpow2.f32 %v2738_v56 }
 0x1bb   : > { %2916 = vpow2.f32 %v2739_v59 }
 0x1bc   : > { %v992_v6 = vpop.f32.mrf.mxu2  ;;  %v1012_v7 = vpop.f32.mrf.mxu3 }
 0x1bd   : > { %v1017_v19 = vadd.f32 %v2736_v61, %v992_v6  ;;  %v1018_v51 = vadd.f32 %v2737_v11, %v1012_v7 }
 0x1bf   : > { %v2740_v41 = vmul.f32 -1.442695, %v1017_v19 }
 0x1c0   : > { %v2915_v43 = vpop.eup %2914 }
 0x1c1   : > { %v2917_v62 = vpop.eup %2916  ;;  %v4017_v1 = vadd.f32 1.0, %v2915_v43  ;;  %2918 = vpow2.f32 %v2740_v41 }
 0x1c2   : > { %v4021_v2 = vadd.f32 1.0, %v2917_v62 }
 0x1c3   : > { %2920 = vrcp.f32 %v4017_v1  ;;  %v1042_v61 = vand.u32 2147483648, %v4017_v1  ;;  %v1040_v41 = vand.u32 2147483647, %v4017_v1  ;;  %vm1036_vm15 = vweird.f32 %v4017_v1 }
 0x1c4   : > { %2922 = vrcp.f32 %v4021_v2  ;;  %v1057_v6 = vand.u32 2147483648, %v4021_v2  ;;  %v1055_v62 = vand.u32 2147483647, %v4021_v2  ;;  %vm1051_vm0 = vweird.f32 %v4021_v2 }
 0x1c5   : > { %vm1041_vm3 = vcmp.eq.f32.partialorder %v1040_v41, 8.507059e+37 }
 0x1c6   : > { %vm1056_vm4 = vcmp.eq.f32.partialorder %v1055_v62, 8.507059e+37 }
 0x1c7   : > { %v2919_v18 = vpop.eup %2918 }
 0x1c8   : > { %v4037_v57 = vadd.f32 1.0, %v2919_v18 }
 0x1c9   : > { %v2921_v12 = vpop.eup %2920 }
 0x1ca   : > { %v2923_v45 = vpop.eup %2922  ;;  %v1032_v50 = vmul.f32 %v2921_v12, %v4017_v1  ;;  %2924 = vrcp.f32 %v4037_v57  ;;  %vm1037_vm13 = vweird.f32 %v2921_v12  ;;  %vm1066_vm6 = vweird.f32 %v4037_v57 }
 0x1cb   : > { %v1047_v52 = vmul.f32 %v2923_v45, %v4021_v2  ;;  %2926 = vtanh.f32 %v1018_v51  ;;  %vm1052_vm14 = vweird.f32 %v2923_v45  ;;  %vm1038_vm1 = vmor %vm1036_vm15, %vm1037_vm13  ;;  %v1043_v51 = vor.u32 1.1754944e-38, %v1042_v61 }
 0x1cc   : > { %v1033_v56 = vsub.f32 1.0, %v1032_v50  ;;  %vm1053_vm2 = vmor %vm1051_vm0, %vm1052_vm14 }
 0x1cd   : > { %v1048_v59 = vsub.f32 1.0, %v1047_v52  ;;  %v1058_v52 = vor.u32 1.1754944e-38, %v1057_v6 }
 0x1ce   : > { %v1034_v19 = vmul.f32 %v2921_v12, %v1033_v56 }
 0x1cf   : > { %v1049_v43 = vmul.f32 %v2923_v45, %v1048_v59 }
 0x1d0   : > { %v2925_v7 = vpop.eup %2924  ;;  %v1035_v18 = vadd.f32 %v2921_v12, %v1034_v19 }
 0x1d1   : > { %v1062_v11 = vmul.f32 %v2925_v7, %v4037_v57  ;;  %v1050_v50 = vadd.f32 %v2923_v45, %v1049_v43  ;;  %v2927_v1 = vpop.eup %2926  ;;  %vm1067_vm5 = vweird.f32 %v2925_v7  ;;  %v1072_v43 = vand.u32 2147483648, %v4037_v57 }
 0x1d2   : > { %v1039_v56 = vsel %vm1038_vm1, %v2921_v12, %v1035_v18  ;;  %vm1068_vm7 = vmor %vm1066_vm6, %vm1067_vm5 }
 0x1d3   : > { %v1063_v59 = vsub.f32 1.0, %v1062_v11  ;;  %v1044_v19 = vsel %vm1041_vm3, %v1043_v51, %v1039_v56  ;;  %v1054_v2 = vsel %vm1053_vm2, %v2923_v45, %v1050_v50  ;;  %v1073_v62 = vor.u32 1.1754944e-38, %v1072_v43  ;;  %v4097_v51 = vld [vmem:[%s3409_s21 + $0x178] sm:$0xff] }
 0x1d4   : > { %v1059_v38 = vsel %vm1056_vm4, %v1058_v52, %v1054_v2  ;;  %v1079_v61 = vmul.f32 %v2927_v1, %v1044_v19  ;;  %v4101_v50 = vld [vmem:[%s3409_s21 + $0x158] sm:$0xff]  ;;  %v2745_v2 = vld [vmem:[%s4117_s11 + $0x48] sm:$0xff] }
 0x1d5   : > { %v1064_v6 = vmul.f32 %v2925_v7, %v1063_v59  ;;  %v1078_v12 = vmul.f32 %v1059_v38, %v3812_v14  ;;  %v1070_v14 = vand.u32 2147483647, %v4037_v57  ;;  %v4106_v52 = vld [vmem:[%s3409_s21 + $0x138] sm:$0xff]  ;;  %v2744_v59 = vld [vmem:[%s4117_s11 + $0x40] sm:$0xff] }
 0x1d6   : > { %v4110_v56 = vld [vmem:[%s3409_s21 + $0x118] sm:$0xff] }
 0x1d7   : > { %v4076_v45 = vadd.f32 %v1079_v61, %v1078_v12  ;;  %v1065_v41 = vadd.f32 %v2925_v7, %v1064_v6  ;;  %vm1071_vm8 = vcmp.eq.f32.partialorder %v1070_v14, 8.507059e+37  ;;  %v4114_v1 = vld [vmem:[%s3409_s21 + $0xf8] sm:$0xff] }
 0x1d8   : > { %v4122_v6 = vld [vmem:[%s3409_s21 + $0xd8] sm:$0xff] }
 0x1d9   : > { %2928 = vtanh.f32 %v4076_v45  ;;  %v1069_v38 = vsel %vm1068_vm7, %v2925_v7, %v1065_v41  ;;  %v4093_v7 = vld [vmem:[%s3409_s21 + $0x198] sm:$0xff] }
 0x1da   : > { %v1074_v57 = vsel %vm1071_vm8, %v1073_v62, %v1069_v38  ;;  %1451 = vmatpush.msra.mxu3 %v4093_v7  ;;  %v4126_v43 = vld [vmem:[%s3409_s21 + $0xb8] sm:$0xff]  ;;  %v4130_v62 = vld [vmem:[%s3409_s21 + $0x90] sm:$0xff] }
 0x1db   : > { %1439 = vmatpush.msra.mxu2 %v4130_v62 }
 0x1dc   : > { %1452 = vmatpush.msra.mxu3 %v4097_v51 }
 0x1de   : > { %1453 = vmatpush.msra.mxu3 %v4101_v50 }
 0x1df   : > { %v2929_v18 = vpop.eup %2928 }
 0x1e0   : > { %v1082_v11 = vmul.f32 %v2929_v18, %v1074_v57  ;;  %1454 = vmatpush.msra.mxu3 %v4106_v52  ;;  %v4133_v18 = vld [vmem:[%s3409_s21 + $0x98] sm:$0xff]  ;;  %v4136_v57 = vld [vmem:[%s3409_s21 + $0x70] sm:$0xff] }
 0x1e1   : > { %4861 = vst [vmem:[#allocation27_spill] sm:$0xff] %v4136_v57  ;;  %1440 = vmatpush.msra.mxu2 %v4136_v57 }
 0x1e2   : > { %2742 = vst [vmem:[%s2561_s5 + $0x8] sm:$0xff] %v1082_v11  ;;  %1178 = vmatmul.f32.vlgmr.msrb.gmra.mxu0 %v1082_v11  ;;  %1198 = vmatmul.f32.vlgmr.msrb.gmra.mxu1 %v1082_v11  ;;  %s2789_s5 = smul.u32 4294967072, %s3228_s18 }
 0x1e3   : > { %1218 = vmatmul.f32.vlgmr.msrb.gmra.mxu2 %v1082_v11  ;;  %1238 = vmatmul.f32.vlgmr.msrb.gmra.mxu3 %v1082_v11  ;;  %v2746_v11 = vld [vmem:[%s4117_s11 + $0x50] sm:$0xff] }
 0x1e4   : > { %1455 = vmatpush.msra.mxu3 %v4110_v56  ;;  %s2599_s10 = scalar_lea.vmem [#allocation2], %s2789_s5 }
 0x1e6   : > { %1456 = vmatpush.msra.mxu3 %v4114_v1 }
 0x1e8   : > { %1457 = vmatpush.msra.mxu3 %v4122_v6 }
 0x1ea   : > { %1458 = vmatpush.msra.mxu3 %v4126_v43 }
 0x1ec   : > { %1459 = vmatpush.msra.mxu3 %v4133_v18 }
 0x25f   : > { %v1179_v19 = vpop.f32.mrf.mxu0  ;;  %v1199_v61 = vpop.f32.mrf.mxu1 }
 0x260   : > { %v1242_v12 = vadd.f32 %v2744_v59, %v1179_v19  ;;  %v1243_v41 = vadd.f32 %v2745_v2, %v1199_v61  ;;  %v4142_v59 = vld [vmem:[%s3409_s21 + $0x78] sm:$0xff]  ;;  %v4145_v19 = vld [vmem:[%s3409_s21 + $0x40] sm:$0xff]  ;;  %v4148_v2 = vld [vmem:[%s3409_s21 + $0x48] sm:$0xff] }
 0x261   : > { %4862 = vst [vmem:[#allocation28_spill] sm:$0xff] %v4142_v59  ;;  %1401 = vmatpush.msra.mxu0 %v4145_v19  ;;  %1421 = vmatpush.msra.mxu1 %v4148_v2  ;;  %v4153_v61 = vld [vmem:[%s3409_s21 + $0x50] sm:$0xff] }
 0x262   : > { %v2748_v14 = vmul.f32 -1.442695, %v1242_v12  ;;  %v2749_v38 = vmul.f32 -1.442695, %v1243_v41  ;;  %4863 = vst [vmem:[#allocation29_spill] sm:$0xff] %v4145_v19  ;;  %v4156_v12 = vld [vmem:[%s3409_s21 + $0x58] sm:$0xff]  ;;  %1460 = vmatpush.msra.mxu3 %v4142_v59  ;;  %1441 = vmatpush.msra.mxu2 %v4153_v61 }
 0x263   : > { %4864 = vst [vmem:[#allocation30_spill] sm:$0xff] %v4148_v2  ;;  %v4159_v41 = vld [vmem:[%s3409_s21 + $0x20] sm:$0xff]  ;;  %1422 = vmatpush.msra.mxu1 %v4164_v5 }
 0x264   : > { %2930 = vpow2.f32 %v2748_v14  ;;  %1402 = vmatpush.msra.mxu0 %v4159_v41  ;;  %1461 = vmatpush.msra.mxu3 %v4156_v12 }
 0x265   : > { %2932 = vpow2.f32 %v2749_v38  ;;  %v4170_v38 = vld [vmem:[%s3409_s21 + $0x8] sm:$0xff]  ;;  %1442 = vmatpush.msra.mxu2 %v4002_v60 }
 0x266   : > { %v1219_v14 = vpop.f32.mrf.mxu2  ;;  %1403 = vmatpush.msra.mxu0 %v4167_v3  ;;  %1423 = vmatpush.msra.mxu1 %v4170_v38 }
 0x267   : > { %v1244_v19 = vadd.f32 %v2746_v11, %v1219_v14  ;;  %1462 = vmatpush.msra.mxu3 %v4005_v0  ;;  %1443 = vmatpush.msra.mxu2 %v4012_v63 }
 0x268   : > { %1614 = vmatpush.msrb.mxu0 %v3822_v20  ;;  %1634 = vmatpush.msrb.mxu1 %v3825_v8  ;;  %v1239_v20 = vpop.f32.mrf.mxu3 }
 0x269   : > { %v2750_v2 = vmul.f32 -1.442695, %v1244_v19  ;;  %1463 = vmatpush.msra.mxu3 %v4015_v4  ;;  %1654 = vmatpush.msrb.mxu2 %v3828_v31 }
 0x26a   : > { %v2931_v59 = vpop.eup %2930  ;;  %1615 = vmatpush.msrb.mxu0 %v3838_v9  ;;  %1635 = vmatpush.msrb.mxu1 %v3841_v10 }
 0x26b   : > { %v2933_v57 = vpop.eup %2932  ;;  %v4180_v11 = vadd.f32 1.0, %v2931_v59  ;;  %2934 = vpow2.f32 %v2750_v2  ;;  %1674 = vmatpush.msrb.mxu3 %v3833_v44  ;;  %1655 = vmatpush.msrb.mxu2 %v3844_v13  ;;  %v2747_v44 = vld [vmem:[%s4117_s11 + $0x58] sm:$0xff]  ;;  %s2808_s11 = sshll.u32 %s3228_s18, 6 }
 0x26c   : > { %v4184_v14 = vadd.f32 1.0, %v2933_v57  ;;  %1616 = vmatpush.msrb.mxu0 %v3854_v17  ;;  %1636 = vmatpush.msrb.mxu1 %v3857_v21  ;;  %v1245_v10 = vadd.f32 %v2747_v44, %v1239_v20  ;;  %s2466_s0 = scalar_lea.hbm %s4809_s4, %s2808_s11 }
 0x26d   : > { %2936 = vrcp.f32 %v4180_v11  ;;  %1675 = vmatpush.msrb.mxu3 %v3849_v16  ;;  %1656 = vmatpush.msrb.mxu2 %v3860_v22  ;;  %vm1263_vm11 = vweird.f32 %v4180_v11 }
 0x26e   : > { %2938 = vrcp.f32 %v4184_v14  ;;  %1617 = vmatpush.msrb.mxu0 %v3870_v24  ;;  %1637 = vmatpush.msrb.mxu1 %v3873_v25  ;;  %v1284_v24 = vand.u32 2147483648, %v4184_v14  ;;  %vm1278_vm12 = vweird.f32 %v4184_v14 }
 0x26f   : > { %1676 = vmatpush.msrb.mxu3 %v3865_v23  ;;  %1657 = vmatpush.msrb.mxu2 %v3876_v26  ;;  %v1269_v23 = vand.u32 2147483648, %v4180_v11  ;;  %v1267_v26 = vand.u32 2147483647, %v4180_v11 }
 0x270   : > { %1618 = vmatpush.msrb.mxu0 %v3883_v27  ;;  %1638 = vmatpush.msrb.mxu1 %v3886_v28  ;;  %v4865_v27 = vld [vmem:[#allocation24_spill] sm:$0xff]  ;;  %v1285_v57 = vor.u32 1.1754944e-38, %v1284_v24 }
 0x271   : > { %v2935_v8 = vpop.eup %2934  ;;  %1677 = vmatpush.msrb.mxu3 %v4093_v7  ;;  %1658 = vmatpush.msrb.mxu2 %v3889_v29  ;;  %v1282_v29 = vand.u32 2147483647, %v4184_v14  ;;  %vm1268_vm15 = vcmp.eq.f32.partialorder %v1267_v26, 8.507059e+37 }
 0x272   : > { %v4200_v31 = vadd.f32 1.0, %v2935_v8  ;;  %1619 = vmatpush.msrb.mxu0 %v3897_v34  ;;  %1639 = vmatpush.msrb.mxu1 %v3900_v30 }
 0x273   : > { %v2937_v9 = vpop.eup %2936  ;;  %1678 = vmatpush.msrb.mxu3 %v4097_v51  ;;  %1659 = vmatpush.msrb.mxu2 %v3903_v32  ;;  %vm1283_vm0 = vcmp.eq.f32.partialorder %v1282_v29, 8.507059e+37 }
 0x274   : > { %v2939_v13 = vpop.eup %2938  ;;  %v1259_v16 = vmul.f32 %v2937_v9, %v4180_v11  ;;  %2940 = vrcp.f32 %v4200_v31  ;;  %vm1264_vm9 = vweird.f32 %v2937_v9  ;;  %1620 = vmatpush.msrb.mxu0 %v3910_v33  ;;  %1640 = vmatpush.msrb.mxu1 %v4865_v27  ;;  %v1270_v33 = vor.u32 1.1754944e-38, %v1269_v23 }
 0x275   : > { %v1274_v17 = vmul.f32 %v2939_v13, %v4184_v14  ;;  %2942 = vtanh.f32 %v1245_v10  ;;  %1679 = vmatpush.msrb.mxu3 %v4101_v50  ;;  %vm1279_vm10 = vweird.f32 %v2939_v13  ;;  %1660 = vmatpush.msrb.mxu2 %v3916_v35  ;;  %vm1265_vm13 = vmor %vm1263_vm11, %vm1264_vm9  ;;  %vm1293_vm2 = vweird.f32 %v4200_v31  ;;  %v2755_v10 = vld [vmem:[%s2572_s1 + $0x68] sm:$0xff] }
 0x276   : > { %v1260_v21 = vsub.f32 1.0, %v1259_v16  ;;  %1621 = vmatpush.msrb.mxu0 %v3923_v36  ;;  %1641 = vmatpush.msrb.mxu1 %v3926_v37  ;;  %vm1280_vm14 = vmor %vm1278_vm12, %vm1279_vm10 }
 0x277   : > { %v1275_v22 = vsub.f32 1.0, %v1274_v17  ;;  %1680 = vmatpush.msrb.mxu3 %v4106_v52  ;;  %1661 = vmatpush.msrb.mxu2 %v3929_v42 }
 0x278   : > { %v1261_v25 = vmul.f32 %v2937_v9, %v1260_v21  ;;  %1622 = vmatpush.msrb.mxu0 %v3936_v39  ;;  %1642 = vmatpush.msrb.mxu1 %v3939_v47 }
 0x279   : > { %v1276_v28 = vmul.f32 %v2939_v13, %v1275_v22  ;;  %1681 = vmatpush.msrb.mxu3 %v4110_v56  ;;  %1662 = vmatpush.msrb.mxu2 %v3942_v40 }
 0x27a   : > { %v4226_v34 = vpop.eup %2940  ;;  %v1262_v30 = vadd.f32 %v2937_v9, %v1261_v25  ;;  %1623 = vmatpush.msrb.mxu0 %v3953_v46  ;;  %1643 = vmatpush.msrb.mxu1 %v3956_v48  ;;  %v1299_v46 = vand.u32 2147483648, %v4200_v31  ;;  %v1297_v48 = vand.u32 2147483647, %v4200_v31 }
 0x27b   : > { %v1289_v32 = vmul.f32 %v4226_v34, %v4200_v31  ;;  %v1277_v35 = vadd.f32 %v2939_v13, %v1276_v28  ;;  %v2943_v36 = vpop.eup %2942  ;;  %1682 = vmatpush.msrb.mxu3 %v4114_v1  ;;  %1663 = vmatpush.msrb.mxu2 %v3959_v49  ;;  %vm1294_vm1 = vweird.f32 %v4226_v34  ;;  %v4866_v49 = vld [vmem:[#allocation25_spill] sm:$0xff] }
 0x27c   : > { %v1266_v59 = vsel %vm1265_vm13, %v2937_v9, %v1262_v30  ;;  %1624 = vmatpush.msrb.mxu0 %v3966_v55  ;;  %1644 = vmatpush.msrb.mxu1 %v3969_v53  ;;  %v4867_v55 = vld [vmem:[#allocation26_spill] sm:$0xff]  ;;  %vm1295_vm3 = vmor %vm1293_vm2, %vm1294_vm1  ;;  %v4868_v53 = vld [vmem:[#allocation27_spill] sm:$0xff]  ;;  %v1300_v20 = vor.u32 1.1754944e-38, %v1299_v46  ;;  %vm1298_vm4 = vcmp.eq.f32.partialorder %v1297_v48, 8.507059e+37 }
 0x27d   : > { %v1290_v37 = vsub.f32 1.0, %v1289_v32  ;;  %v1271_v19 = vsel %vm1268_vm15, %v1270_v33, %v1266_v59  ;;  %v1281_v2 = vsel %vm1280_vm14, %v2939_v13, %v1277_v35  ;;  %1683 = vmatpush.msrb.mxu3 %v4122_v6  ;;  %1664 = vmatpush.msrb.mxu2 %v3972_v54  ;;  %v4869_v54 = vld [vmem:[#allocation28_spill] sm:$0xff]  ;;  %v2754_v9 = vld [vmem:[%s2572_s1 + $0x60] sm:$0xff]  ;;  %v2757_v30 = vld [vmem:[%s2572_s1 + $0x78] sm:$0xff] }
 0x27e   : > { %v1286_v42 = vsel %vm1283_vm0, %v1285_v57, %v1281_v2  ;;  %v1306_v11 = vmul.f32 %v2943_v36, %v1271_v19  ;;  %1625 = vmatpush.msrb.mxu0 %v3979_v15  ;;  %1645 = vmatpush.msrb.mxu1 %v3982_v58  ;;  %v4870_v58 = vld [vmem:[#allocation29_spill] sm:$0xff] }
 0x27f   : > { %v1291_v14 = vmul.f32 %v4226_v34, %v1290_v37  ;;  %v1305_v39 = vmul.f32 %v1286_v42, %v4076_v45  ;;  %1684 = vmatpush.msrb.mxu3 %v4126_v43  ;;  %1665 = vmatpush.msrb.mxu2 %v4130_v62  ;;  %v4871_v45 = vld [vmem:[#allocation30_spill] sm:$0xff] }
 0x280   : > { %1626 = vmatpush.msrb.mxu0 %v4866_v49  ;;  %1646 = vmatpush.msrb.mxu1 %v4867_v55 }
 0x281   : > { %v4250_v47 = vadd.f32 %v1306_v11, %v1305_v39  ;;  %v1292_v40 = vadd.f32 %v4226_v34, %v1291_v14  ;;  %1685 = vmatpush.msrb.mxu3 %v4133_v18  ;;  %1666 = vmatpush.msrb.mxu2 %v4868_v53 }
 0x282   : > { %1627 = vmatpush.msrb.mxu0 %v4870_v58  ;;  %1647 = vmatpush.msrb.mxu1 %v4871_v45 }
 0x283   : > { %2944 = vtanh.f32 %v4250_v47  ;;  %1686 = vmatpush.msrb.mxu3 %v4869_v54  ;;  %v1296_v15 = vsel %vm1295_vm3, %v4226_v34, %v1292_v40  ;;  %1667 = vmatpush.msrb.mxu2 %v4153_v61 }
 0x284   : > { %1628 = vmatpush.msrb.mxu0 %v4159_v41  ;;  %1648 = vmatpush.msrb.mxu1 %v4164_v5  ;;  %v1301_v31 = vsel %vm1298_vm4, %v1300_v20, %v1296_v15 }
 0x285   : > { %1687 = vmatpush.msrb.mxu3 %v4156_v12  ;;  %1668 = vmatpush.msrb.mxu2 %v4002_v60 }
 0x286   : > { %1629 = vmatpush.msrb.mxu0 %v4167_v3  ;;  %1649 = vmatpush.msrb.mxu1 %v4170_v38 }
 0x287   : > { %1688 = vmatpush.msrb.mxu3 %v4005_v0  ;;  %1669 = vmatpush.msrb.mxu2 %v4012_v63  ;;  %v2756_v63 = vld [vmem:[%s2572_s1 + $0x70] sm:$0xff]  ;;  %s2797_s1 = smul.u32 4294967240, %s3228_s18 }
 0x289   : > { %v2945_v8 = vpop.eup %2944  ;;  %1689 = vmatpush.msrb.mxu3 %v4015_v4  ;;  %s2603_s23 = scalar_lea.vmem %s3818_s8, %s2797_s1 [#allocation13] }
 0x28a   : > { %v1309_v44 = vmul.f32 %v2945_v8, %v1301_v31 }
 0x28c   : > { %2752 = vst [vmem:[%s2569_s14 + $0x10] sm:$0xff] %v1309_v44  ;;  %1404 = vmatmul.f32.vlgmr.msra.gmra.mxu0 %v1309_v44  ;;  %1424 = vmatmul.f32.vlgmr.msra.gmra.mxu1 %v1309_v44 }
 0x28d   : > { %1444 = vmatmul.f32.vlgmr.msra.gmra.mxu2 %v1309_v44  ;;  %1464 = vmatmul.f32.vlgmr.msra.gmra.mxu3 %v1309_v44 }
 0x309   : > { %v1405_v60 = vpop.f32.mrf.mxu0  ;;  %v1425_v0 = vpop.f32.mrf.mxu1 }
 0x30a   : > { %v1468_v13 = vadd.f32 %v2754_v9, %v1405_v60  ;;  %v1469_v16 = vadd.f32 %v2755_v10, %v1425_v0 }
 0x30c   : > { %v2758_v17 = vmul.f32 -1.442695, %v1468_v13  ;;  %v2759_v21 = vmul.f32 -1.442695, %v1469_v16 }
 0x30e   : > { %2946 = vpow2.f32 %v2758_v17 }
 0x30f   : > { %2948 = vpow2.f32 %v2759_v21 }
 0x310   : > { %v1445_v22 = vpop.f32.mrf.mxu2  ;;  %v1465_v28 = vpop.f32.mrf.mxu3 }
 0x311   : > { %v1470_v4 = vadd.f32 %v2756_v63, %v1445_v22  ;;  %v1471_v33 = vadd.f32 %v2757_v30, %v1465_v28  ;;  %v4302_v28 = vld [vmem:[%s3409_s21 + $0x1f8] sm:$0xff]  ;;  %v4313_v30 = vld [vmem:[%s3409_s21 + $0x1d0] sm:$0xff] }
 0x312   : > { %1901 = vmatpush.msra.mxu3 %v4302_v28 }
 0x313   : > { %v2760_v23 = vmul.f32 -1.442695, %v1470_v4 }
 0x314   : > { %v2947_v24 = vpop.eup %2946 }
 0x315   : > { %v2949_v25 = vpop.eup %2948  ;;  %v1481_v26 = vadd.f32 1.0, %v2947_v24  ;;  %2950 = vpow2.f32 %v2760_v23 }
 0x316   : > { %v1482_v27 = vadd.f32 1.0, %v2949_v25  ;;  %v4291_v25 = vld [vmem:[%s3409_s21 + $0x1e0] sm:$0xff] }
 0x317   : > { %2952 = vrcp.f32 %v1481_v26  ;;  %v1495_v19 = vand.u32 2147483648, %v1481_v26  ;;  %v1493_v11 = vand.u32 2147483647, %v1481_v26  ;;  %vm1489_vm7 = vweird.f32 %v1481_v26  ;;  %1841 = vmatpush.msra.mxu0 %v4291_v25 }
 0x318   : > { %2954 = vrcp.f32 %v1482_v27  ;;  %v1510_v2 = vand.u32 2147483648, %v1482_v27  ;;  %v1508_v39 = vand.u32 2147483647, %v1482_v27  ;;  %vm1504_vm8 = vweird.f32 %v1482_v27 }
 0x319   : > { %v1496_v49 = vor.u32 1.1754944e-38, %v1495_v19  ;;  %vm1494_vm11 = vcmp.eq.f32.partialorder %v1493_v11, 8.507059e+37  ;;  %v4345_v19 = vld [vmem:[%s3409_s21 + $0x190] sm:$0xff] }
 0x31a   : > { %v1511_v15 = vor.u32 1.1754944e-38, %v1510_v2  ;;  %vm1509_vm12 = vcmp.eq.f32.partialorder %v1508_v39, 8.507059e+37  ;;  %v4353_v2 = vld [vmem:[%s3409_s21 + $0x160] sm:$0xff]  ;;  %v4359_v11 = vld [vmem:[%s3409_s21 + $0x170] sm:$0xff] }
 0x31b   : > { %v2951_v29 = vpop.eup %2950  ;;  %v4372_v39 = vld [vmem:[%s3409_s21 + $0x150] sm:$0xff] }
 0x31c   : > { %v1483_v34 = vadd.f32 1.0, %v2951_v29  ;;  %v4307_v29 = vld [vmem:[%s3409_s21 + $0x1c0] sm:$0xff] }
 0x31d   : > { %v2953_v32 = vpop.eup %2952  ;;  %1842 = vmatpush.msra.mxu0 %v4307_v29 }
 0x31e   : > { %v2955_v35 = vpop.eup %2954  ;;  %v1485_v57 = vmul.f32 %v2953_v32, %v1481_v26  ;;  %2956 = vrcp.f32 %v1483_v34  ;;  %vm1490_vm5 = vweird.f32 %v2953_v32  ;;  %v1525_v21 = vand.u32 2147483648, %v1483_v34  ;;  %v4294_v26 = vld [vmem:[%s3409_s21 + $0x1e8] sm:$0xff] }
 0x31f   : > { %v1500_v59 = vmul.f32 %v2955_v35, %v1482_v27  ;;  %2958 = vtanh.f32 %v1471_v33  ;;  %vm1505_vm6 = vweird.f32 %v2955_v35  ;;  %vm1491_vm9 = vmor %vm1489_vm7, %vm1490_vm5  ;;  %vm1519_vm14 = vweird.f32 %v1483_v34  ;;  %v4297_v27 = vld [vmem:[%s3409_s21 + $0x1f0] sm:$0xff]  ;;  %1861 = vmatpush.msra.mxu1 %v4294_v26  ;;  %v4323_v33 = vld [vmem:[%s3409_s21 + $0x1a0] sm:$0xff] }
 0x320   : > { %v1486_v36 = vsub.f32 1.0, %v1485_v57  ;;  %vm1506_vm10 = vmor %vm1504_vm8, %vm1505_vm6  ;;  %v1523_v63 = vand.u32 2147483647, %v1483_v34  ;;  %v1526_v4 = vor.u32 1.1754944e-38, %v1525_v21  ;;  %1881 = vmatpush.msra.mxu2 %v4297_v27  ;;  %v4329_v57 = vld [vmem:[%s3409_s21 + $0x1b0] sm:$0xff]  ;;  %1843 = vmatpush.msra.mxu0 %v4323_v33  ;;  %v4440_v21 = vld [vmem:[%s3409_s21 + $0xa8] sm:$0xff] }
 0x321   : > { %v1501_v37 = vsub.f32 1.0, %v1500_v59  ;;  %v4334_v59 = vld [vmem:[%s3409_s21 + $0x1b8] sm:$0xff] }
 0x322   : > { %v1487_v42 = vmul.f32 %v2953_v32, %v1486_v36  ;;  %vm1524_vm0 = vcmp.eq.f32.partialorder %v1523_v63, 8.507059e+37  ;;  %1882 = vmatpush.msra.mxu2 %v4313_v30  ;;  %v4339_v36 = vld [vmem:[%s3409_s21 + $0x180] sm:$0xff]  ;;  %v4445_v63 = vld [vmem:[%s3409_s21 + $0xb0] sm:$0xff] }
 0x323   : > { %v1502_v14 = vmul.f32 %v2955_v35, %v1501_v37  ;;  %v4342_v37 = vld [vmem:[%s3409_s21 + $0x188] sm:$0xff]  ;;  %1844 = vmatpush.msra.mxu0 %v4339_v36 }
 0x324   : > { %v2957_v40 = vpop.eup %2956  ;;  %v1488_v46 = vadd.f32 %v2953_v32, %v1487_v42  ;;  %1883 = vmatpush.msra.mxu2 %v4329_v57  ;;  %v4356_v42 = vld [vmem:[%s3409_s21 + $0x168] sm:$0xff] }
 0x325   : > { %v1515_v48 = vmul.f32 %v2957_v40, %v1483_v34  ;;  %v1503_v55 = vadd.f32 %v2955_v35, %v1502_v14  ;;  %v2959_v8 = vpop.eup %2958  ;;  %vm1520_vm13 = vweird.f32 %v2957_v40  ;;  %v4310_v34 = vld [vmem:[%s3409_s21 + $0x1c8] sm:$0xff]  ;;  %1845 = vmatpush.msra.mxu0 %v4353_v2  ;;  %v4366_v14 = vld [vmem:[%s3409_s21 + $0x140] sm:$0xff] }
 0x326   : > { %v1492_v20 = vsel %vm1491_vm9, %v2953_v32, %v1488_v46  ;;  %vm1521_vm15 = vmor %vm1519_vm14, %vm1520_vm13  ;;  %1862 = vmatpush.msra.mxu1 %v4310_v34  ;;  %v4318_v32 = vld [vmem:[%s3409_s21 + $0x1d8] sm:$0xff]  ;;  %1884 = vmatpush.msra.mxu2 %v4345_v19  ;;  %v4387_v46 = vld [vmem:[%s3409_s21 + $0x130] sm:$0xff] }
 0x327   : > { %v1516_v31 = vsub.f32 1.0, %v1515_v48  ;;  %v1497_v44 = vsel %vm1494_vm11, %v1496_v49, %v1492_v20  ;;  %v1507_v9 = vsel %vm1506_vm10, %v2955_v35, %v1503_v55  ;;  %1902 = vmatpush.msra.mxu3 %v4318_v32  ;;  %v4326_v35 = vld [vmem:[%s3409_s21 + $0x1a8] sm:$0xff]  ;;  %1846 = vmatpush.msra.mxu0 %v4366_v14  ;;  %v4394_v48 = vld [vmem:[%s3409_s21 + $0x100] sm:$0xff] }
 0x328   : > { %v1512_v60 = vsel %vm1509_vm12, %v1511_v15, %v1507_v9  ;;  %v1532_v10 = vmul.f32 %v2959_v8, %v1497_v44  ;;  %1863 = vmatpush.msra.mxu1 %v4326_v35  ;;  %1885 = vmatpush.msra.mxu2 %v4359_v11  ;;  %v4397_v49 = vld [vmem:[%s3409_s21 + $0x108] sm:$0xff]  ;;  %v4407_v55 = vld [vmem:[%s3409_s21 + $0xe0] sm:$0xff]  ;;  %v4413_v15 = vld [vmem:[%s3409_s21 + $0xf0] sm:$0xff] }
 0x329   : > { %v1517_v0 = vmul.f32 %v2957_v40, %v1516_v31  ;;  %v1531_v13 = vmul.f32 %v1512_v60, %v4250_v47  ;;  %1903 = vmatpush.msra.mxu3 %v4334_v59  ;;  %v1545_v20 = vld [vmem:[%s4415_s30] sm:$0xff]  ;;  %v1546_v31 = vld [vmem:[%s4415_s30 + $0x8] sm:$0xff] }
 0x32a   : > { %1864 = vmatpush.msra.mxu1 %v4342_v37  ;;  %1886 = vmatpush.msra.mxu2 %v4372_v39  ;;  %v4424_v60 = vld [vmem:[%s3409_s21 + $0xc0] sm:$0xff] }
 0x32b   : > { %v4285_v16 = vadd.f32 %v1532_v10, %v1531_v13  ;;  %v1518_v17 = vadd.f32 %v2957_v40, %v1517_v0  ;;  %1904 = vmatpush.msra.mxu3 %v4093_v7  ;;  %v4369_v7 = vld [vmem:[%s3409_s21 + $0x148] sm:$0xff]  ;;  %v4430_v0 = vld [vmem:[%s3409_s21 + $0xd0] sm:$0xff] }
 0x32c   : > { %1865 = vmatpush.msra.mxu1 %v4356_v42  ;;  %1887 = vmatpush.msra.mxu2 %v4387_v46  ;;  %v4427_v10 = vld [vmem:[%s3409_s21 + $0xc8] sm:$0xff] }
 0x32d   : > { %2960 = vtanh.f32 %v4285_v16  ;;  %v1522_v22 = vsel %vm1521_vm15, %v2957_v40, %v1518_v17  ;;  %1905 = vmatpush.msra.mxu3 %v4097_v51  ;;  %v4381_v51 = vld [vmem:[%s3409_s21 + $0x120] sm:$0xff]  ;;  %v4384_v40 = vld [vmem:[%s3409_s21 + $0x128] sm:$0xff] }
 0x32e   : > { %v1527_v47 = vsel %vm1524_vm0, %v1526_v4, %v1522_v22  ;;  %1866 = vmatpush.msra.mxu1 %v4369_v7  ;;  %4872 = vst [vmem:[#allocation24_spill] sm:$0xff] %v4384_v40  ;;  %1847 = vmatpush.msra.mxu0 %v4381_v51  ;;  %v4448_v22 = vld [vmem:[%s3409_s21 + $0x80] sm:$0xff]  ;;  %v4451_v4 = vld [vmem:[%s3409_s21 + $0x88] sm:$0xff] }
 0x32f   : > { %1906 = vmatpush.msra.mxu3 %v4101_v50  ;;  %v4400_v50 = vld [vmem:[%s3409_s21 + $0x110] sm:$0xff] }
 0x330   : > { %1867 = vmatpush.msra.mxu1 %v4384_v40  ;;  %1848 = vmatpush.msra.mxu0 %v4394_v48 }
 0x331   : > { %1907 = vmatpush.msra.mxu3 %v4106_v52  ;;  %1888 = vmatpush.msra.mxu2 %v4400_v50  ;;  %v4410_v52 = vld [vmem:[%s3409_s21 + $0xe8] sm:$0xff] }
 0x332   : > { %1868 = vmatpush.msra.mxu1 %v4397_v49  ;;  %1849 = vmatpush.msra.mxu0 %v4407_v55 }
 0x333   : > { %v2961_v23 = vpop.eup %2960  ;;  %1908 = vmatpush.msra.mxu3 %v4110_v56  ;;  %1889 = vmatpush.msra.mxu2 %v4413_v15 }
 0x334   : > { %v1535_v24 = vmul.f32 %v2961_v23, %v1527_v47  ;;  %1869 = vmatpush.msra.mxu1 %v4410_v52  ;;  %1850 = vmatpush.msra.mxu0 %v4424_v60  ;;  %v4459_v23 = vld [vmem:[%s3409_s21 + $0x68] sm:$0xff]  ;;  %v1547_v47 = vld [vmem:[%s4415_s30 + $0x10] sm:$0xff] }
 0x335   : > { %1909 = vmatpush.msra.mxu3 %v4114_v1  ;;  %1890 = vmatpush.msra.mxu2 %v4430_v0  ;;  %v4437_v1 = vld [vmem:[%s3409_s21 + $0xa0] sm:$0xff]  ;;  %4874 = vst [vmem:[#allocation26_spill] sm:$0xff] %v4459_v23 }
 0x336   : > { %2762 = vst [vmem:[%s2575_s20 + $0x18] sm:$0xff] %v1535_v24  ;;  %1630 = vmatmul.f32.vlgmr.msrb.gmra.mxu0 %v1535_v24  ;;  %1650 = vmatmul.f32.vlgmr.msrb.gmra.mxu1 %v1535_v24  ;;  %s2469_s20 = sshll.u32 %s2466_s0, 4  ;;  %s2470_s20 = int_to_ptr.hbm [resolvable:$true] %s2469_s20 }
 0x337   : > { %1670 = vmatmul.f32.vlgmr.msrb.gmra.mxu2 %v1535_v24  ;;  %1690 = vmatmul.f32.vlgmr.msrb.gmra.mxu3 %v1535_v24 }
 0x338   : > { %1870 = vmatpush.msra.mxu1 %v4427_v10  ;;  %1910 = vmatpush.msra.mxu3 %v4122_v6  ;;  %v4456_v6 = vld [vmem:[%s3409_s21 + $0x60] sm:$0xff] }
 0x339   : > { %1851 = vmatpush.msra.mxu0 %v4437_v1  ;;  %1891 = vmatpush.msra.mxu2 %v4445_v63  ;;  %4873 = vst [vmem:[#allocation25_spill] sm:$0xff] %v4456_v6 }
 0x33a   : > { %1871 = vmatpush.msra.mxu1 %v4440_v21  ;;  %1911 = vmatpush.msra.mxu3 %v4126_v43 }
 0x33b   : > { %1852 = vmatpush.msra.mxu0 %v4448_v22  ;;  %1892 = vmatpush.msra.mxu2 %v4130_v62  ;;  %v4476_v62 = vld [vmem:[%s3409_s21 + $0x38] sm:$0xff] }
 0x33c   : > { %1872 = vmatpush.msra.mxu1 %v4451_v4  ;;  %1912 = vmatpush.msra.mxu3 %v4133_v18 }
 0x33d   : > { %1853 = vmatpush.msra.mxu0 %v4456_v6  ;;  %1893 = vmatpush.msra.mxu2 %v4868_v53  ;;  %v4485_v53 = vld [vmem:[%s3409_s21 + $0x10] sm:$0xff] }
 0x33e   : > { %1873 = vmatpush.msra.mxu1 %v4459_v23  ;;  %1913 = vmatpush.msra.mxu3 %v4869_v54  ;;  %v4488_v54 = vld [vmem:[%s3409_s21 + $0x18] sm:$0xff] }
 0x33f   : > { %1854 = vmatpush.msra.mxu0 %v4870_v58  ;;  %1894 = vmatpush.msra.mxu2 %v4153_v61 }
 0x340   : > { %1874 = vmatpush.msra.mxu1 %v4871_v45  ;;  %1914 = vmatpush.msra.mxu3 %v4156_v12  ;;  %v1548_v12 = vld [vmem:[%s4415_s30 + $0x18] sm:$0xff]  ;;  %s3160_s30 = sshra.s32 %s2470_s20, 4  ;;  %s3161_s30 = int_to_ptr.hbm [resolvable:$true] %s3160_s30 }
 0x341   : > { %1855 = vmatpush.msra.mxu0 %v4159_v41  ;;  %p3167_p8 = scmp.lt.s32.totalorder %s3161_s30, %s4809_s4 }
 0x342   : > { %1875 = vmatpush.msra.mxu1 %v4164_v5  ;;  %1915 = vmatpush.msra.mxu3 %v4476_v62 }
 0x343   : > { %1856 = vmatpush.msra.mxu0 %v4167_v3 }
 0x344   : > { %1876 = vmatpush.msra.mxu1 %v4170_v38  ;;  %1916 = vmatpush.msra.mxu3 %v4488_v54 }
 0x345   : > { %2068 = vmatpush.msrb.mxu0 %v4291_v25 }
 0x346   : > { %2088 = vmatpush.msrb.mxu1 %v4294_v26  ;;  %2128 = vmatpush.msrb.mxu3 %v4302_v28 }
 0x347   : > { %2069 = vmatpush.msrb.mxu0 %v4307_v29 }
 0x348   : > { %2089 = vmatpush.msrb.mxu1 %v4310_v34  ;;  %2129 = vmatpush.msrb.mxu3 %v4318_v32 }
 0x349   : > { %2070 = vmatpush.msrb.mxu0 %v4323_v33 }
 0x34a   : > { %2090 = vmatpush.msrb.mxu1 %v4326_v35  ;;  %2130 = vmatpush.msrb.mxu3 %v4334_v59 }
 0x34b   : > { %2071 = vmatpush.msrb.mxu0 %v4339_v36 }
 0x34c   : > { %2091 = vmatpush.msrb.mxu1 %v4342_v37 }
 0x34d   : > { %2072 = vmatpush.msrb.mxu0 %v4353_v2 }
 0x34e   : > { %2092 = vmatpush.msrb.mxu1 %v4356_v42 }
 0x34f   : > { %2073 = vmatpush.msrb.mxu0 %v4366_v14 }
 0x350   : > { %2093 = vmatpush.msrb.mxu1 %v4369_v7 }
 0x351   : > { %2074 = vmatpush.msrb.mxu0 %v4381_v51 }
 0x352   : > { %2094 = vmatpush.msrb.mxu1 %v4384_v40 }
 0x353   : > { %2075 = vmatpush.msrb.mxu0 %v4394_v48 }
 0x354   : > { %2095 = vmatpush.msrb.mxu1 %v4397_v49 }
 0x355   : > { %2076 = vmatpush.msrb.mxu0 %v4407_v55 }
 0x356   : > { %2096 = vmatpush.msrb.mxu1 %v4410_v52 }
 0x357   : > { %2077 = vmatpush.msrb.mxu0 %v4424_v60 }
 0x358   : > { %2097 = vmatpush.msrb.mxu1 %v4427_v10 }
 0x359   : > { %2078 = vmatpush.msrb.mxu0 %v4437_v1 }
 0x35a   : > { %2098 = vmatpush.msrb.mxu1 %v4440_v21 }
 0x35b   : > { %2079 = vmatpush.msrb.mxu0 %v4448_v22 }
 0x35c   : > { %2099 = vmatpush.msrb.mxu1 %v4451_v4 }
 0x35d   : > { %2080 = vmatpush.msrb.mxu0 %v4456_v6  ;;  %v4638_v6 = vld [vmem:[%s3409_s21] sm:$0xff] }
 0x35e   : > { %2100 = vmatpush.msrb.mxu1 %v4459_v23  ;;  %v4635_v23 = vld [vmem:[%s3409_s21 + $0x28] sm:$0xff] }
 0x3b3   : > { %v1631_v8 = vpop.f32.mrf.mxu0  ;;  %v1651_v44 = vpop.f32.mrf.mxu1 }
 0x3b4   : > { %v1694_v56 = vadd.f32 %v1631_v8, %v1545_v20  ;;  %v1695_v9 = vadd.f32 %v1651_v44, %v1546_v31  ;;  %v4473_v8 = vld [vmem:[%s3409_s21 + $0x30] sm:$0xff] }
 0x3b5   : > { %1895 = vmatpush.msra.mxu2 %v4473_v8 }
 0x3b6   : > { %v2765_v13 = vmul.f32 -1.442695, %v1694_v56  ;;  %v2766_v17 = vmul.f32 -1.442695, %v1695_v9 }
 0x3b7   : > { %1896 = vmatpush.msra.mxu2 %v4485_v53 }
 0x3b8   : > { %2962 = vpow2.f32 %v2765_v13 }
 0x3b9   : > { %2964 = vpow2.f32 %v2766_v17  ;;  %2108 = vmatpush.msrb.mxu2 %v4297_v27 }
 0x3ba   : > { %v1671_v24 = vpop.f32.mrf.mxu2  ;;  %v1691_v5 = vpop.f32.mrf.mxu3 }
 0x3bb   : > { %v1696_v20 = vadd.f32 %v1671_v24, %v1547_v47  ;;  %2109 = vmatpush.msrb.mxu2 %v4313_v30  ;;  %v1697_v38 = vadd.f32 %v1691_v5, %v1548_v12 }
 0x3bd   : > { %v2767_v43 = vmul.f32 -1.442695, %v1696_v20  ;;  %2110 = vmatpush.msrb.mxu2 %v4329_v57 }
 0x3be   : > { %v2963_v18 = vpop.eup %2962 }
 0x3bf   : > { %v2965_v31 = vpop.eup %2964  ;;  %v4480_v44 = vadd.f32 1.0, %v2963_v18  ;;  %2966 = vpow2.f32 %v2767_v43  ;;  %2111 = vmatpush.msrb.mxu2 %v4345_v19 }
 0x3c0   : > { %v4490_v58 = vadd.f32 1.0, %v2965_v31 }
 0x3c1   : > { %2968 = vrcp.f32 %v4480_v44  ;;  %v1721_v47 = vand.u32 2147483648, %v4480_v44  ;;  %v1719_v43 = vand.u32 2147483647, %v4480_v44  ;;  %2112 = vmatpush.msrb.mxu2 %v4359_v11  ;;  %vm1715_vm3 = vweird.f32 %v4480_v44 }
 0x3c2   : > { %2970 = vrcp.f32 %v4490_v58  ;;  %v1736_v24 = vand.u32 2147483648, %v4490_v58  ;;  %v1734_v31 = vand.u32 2147483647, %v4490_v58  ;;  %vm1730_vm4 = vweird.f32 %v4490_v58 }
 0x3c3   : > { %2113 = vmatpush.msrb.mxu2 %v4372_v39  ;;  %vm1720_vm7 = vcmp.eq.f32.partialorder %v1719_v43, 8.507059e+37 }
 0x3c4   : > { %vm1735_vm8 = vcmp.eq.f32.partialorder %v1734_v31, 8.507059e+37 }
 0x3c5   : > { %v2967_v61 = vpop.eup %2966  ;;  %2114 = vmatpush.msrb.mxu2 %v4387_v46 }
 0x3c6   : > { %v4506_v3 = vadd.f32 1.0, %v2967_v61 }
 0x3c7   : > { %v2969_v41 = vpop.eup %2968  ;;  %2115 = vmatpush.msrb.mxu2 %v4400_v50 }
 0x3c8   : > { %v2971_v45 = vpop.eup %2970  ;;  %v1711_v56 = vmul.f32 %v2969_v41, %v4480_v44  ;;  %2972 = vrcp.f32 %v4506_v3  ;;  %vm1716_vm1 = vweird.f32 %v2969_v41  ;;  %v1751_v43 = vand.u32 2147483648, %v4506_v3 }
 0x3c9   : > { %v1726_v9 = vmul.f32 %v2971_v45, %v4490_v58  ;;  %2974 = vtanh.f32 %v1697_v38  ;;  %vm1731_vm2 = vweird.f32 %v2971_v45  ;;  %vm1717_vm5 = vmor %vm1715_vm3, %vm1716_vm1  ;;  %v1722_v38 = vor.u32 1.1754944e-38, %v1721_v47  ;;  %2116 = vmatpush.msrb.mxu2 %v4413_v15 }
 0x3ca   : > { %v1712_v13 = vsub.f32 1.0, %v1711_v56  ;;  %vm1732_vm6 = vmor %vm1730_vm4, %vm1731_vm2  ;;  %vm1745_vm10 = vweird.f32 %v4506_v3  ;;  %v1752_v31 = vor.u32 1.1754944e-38, %v1751_v43 }
 0x3cb   : > { %v1727_v17 = vsub.f32 1.0, %v1726_v9  ;;  %v1737_v9 = vor.u32 1.1754944e-38, %v1736_v24  ;;  %2117 = vmatpush.msrb.mxu2 %v4430_v0 }
 0x3cc   : > { %v1713_v20 = vmul.f32 %v2969_v41, %v1712_v13 }
 0x3cd   : > { %v1728_v18 = vmul.f32 %v2971_v45, %v1727_v17  ;;  %2118 = vmatpush.msrb.mxu2 %v4445_v63 }
 0x3ce   : > { %v2973_v5 = vpop.eup %2972  ;;  %v1714_v61 = vadd.f32 %v2969_v41, %v1713_v20 }
 0x3cf   : > { %v1741_v12 = vmul.f32 %v2973_v5, %v4506_v3  ;;  %v1729_v56 = vadd.f32 %v2971_v45, %v1728_v18  ;;  %v2975_v44 = vpop.eup %2974  ;;  %vm1746_vm9 = vweird.f32 %v2973_v5 }
 0x3d0   : > { %v1718_v13 = vsel %vm1717_vm5, %v2969_v41, %v1714_v61  ;;  %vm1747_vm11 = vmor %vm1745_vm10, %vm1746_vm9 }
 0x3d1   : > { %v1742_v17 = vsub.f32 1.0, %v1741_v12  ;;  %v1723_v20 = vsel %vm1720_vm7, %v1722_v38, %v1718_v13  ;;  %v1733_v58 = vsel %vm1732_vm6, %v2971_v45, %v1729_v56  ;;  %v4569_v38 = vld [vmem:[%s3409_s21 + $0x178] sm:$0xff] }
 0x3d2   : > { %v1738_v47 = vsel %vm1735_vm8, %v1737_v9, %v1733_v58  ;;  %v1758_v18 = vmul.f32 %v2975_v44, %v1723_v20  ;;  %v4574_v56 = vld [vmem:[%s3409_s21 + $0x158] sm:$0xff]  ;;  %v2771_v58 = vld [vmem:[%s4588_s24 + $0xa8] sm:$0xff] }
 0x3d3   : > { %v1743_v40 = vmul.f32 %v2973_v5, %v1742_v17  ;;  %v1757_v24 = vmul.f32 %v1738_v47, %v4285_v16  ;;  %v1749_v16 = vand.u32 2147483647, %v4506_v3  ;;  %v4578_v9 = vld [vmem:[%s3409_s21 + $0x138] sm:$0xff]  ;;  %v2770_v17 = vld [vmem:[%s4588_s24 + $0xa0] sm:$0xff] }
 0x3d4   : > { %v4582_v13 = vld [vmem:[%s3409_s21 + $0x118] sm:$0xff] }
 0x3d5   : > { %v4545_v41 = vadd.f32 %v1758_v18, %v1757_v24  ;;  %v1744_v45 = vadd.f32 %v2973_v5, %v1743_v40  ;;  %vm1750_vm12 = vcmp.eq.f32.partialorder %v1749_v16, 8.507059e+37  ;;  %v4586_v44 = vld [vmem:[%s3409_s21 + $0xf8] sm:$0xff] }
 0x3d7   : > { %2976 = vtanh.f32 %v4545_v41  ;;  %v1748_v40 = vsel %vm1747_vm11, %v2973_v5, %v1744_v45  ;;  %v4565_v5 = vld [vmem:[%s3409_s21 + $0x198] sm:$0xff] }
 0x3d8   : > { %v1753_v61 = vsel %vm1750_vm12, %v1752_v31, %v1748_v40  ;;  %2131 = vmatpush.msrb.mxu3 %v4565_v5  ;;  %v4594_v45 = vld [vmem:[%s3409_s21 + $0xd8] sm:$0xff]  ;;  %v4602_v31 = vld [vmem:[%s3409_s21 + $0x90] sm:$0xff] }
 0x3d9   : > { %v4598_v40 = vld [vmem:[%s3409_s21 + $0xb8] sm:$0xff]  ;;  %2119 = vmatpush.msrb.mxu2 %v4602_v31 }
 0x3da   : > { %2132 = vmatpush.msrb.mxu3 %v4569_v38 }
 0x3dc   : > { %2133 = vmatpush.msrb.mxu3 %v4574_v56 }
 0x3dd   : > { %v2977_v3 = vpop.eup %2976 }
 0x3de   : > { %v1761_v12 = vmul.f32 %v2977_v3, %v1753_v61  ;;  %2134 = vmatpush.msrb.mxu3 %v4578_v9  ;;  %v4605_v3 = vld [vmem:[%s3409_s21 + $0x98] sm:$0xff]  ;;  %v4608_v61 = vld [vmem:[%s3409_s21 + $0x70] sm:$0xff] }
 0x3df   : > { %4875 = vst [vmem:[#allocation27_spill] sm:$0xff] %v4608_v61  ;;  %2120 = vmatpush.msrb.mxu2 %v4608_v61 }
 0x3e0   : > { %1766 = vst [vmem:[%s1765_s22] sm:$0xff] %v1761_v12  ;;  %1857 = vmatmul.f32.vlgmr.msra.gmra.mxu0 %v1761_v12  ;;  %1877 = vmatmul.f32.vlgmr.msra.gmra.mxu1 %v1761_v12 }
 0x3e1   : > { %1897 = vmatmul.f32.vlgmr.msra.gmra.mxu2 %v1761_v12  ;;  %1917 = vmatmul.f32.vlgmr.msra.gmra.mxu3 %v1761_v12  ;;  %v4612_v12 = vld [vmem:[%s3409_s21 + $0x78] sm:$0xff] }
 0x3e2   : > { %2135 = vmatpush.msrb.mxu3 %v4582_v13 }
 0x3e4   : > { %2136 = vmatpush.msrb.mxu3 %v4586_v44 }
 0x3e6   : > { %2137 = vmatpush.msrb.mxu3 %v4594_v45 }
 0x3e8   : > { %2138 = vmatpush.msrb.mxu3 %v4598_v40 }
 0x3ea   : > { %2139 = vmatpush.msrb.mxu3 %v4605_v3 }
 0x3ec   : > { %2140 = vmatpush.msrb.mxu3 %v4612_v12 }
 0x45d   : > { %v1858_v20 = vpop.f32.mrf.mxu0  ;;  %v1878_v47 = vpop.f32.mrf.mxu1 }
 0x45e   : > { %v1921_v18 = vadd.f32 %v2770_v17, %v1858_v20  ;;  %v1922_v24 = vadd.f32 %v2771_v58, %v1878_v47  ;;  %v4615_v17 = vld [vmem:[%s3409_s21 + $0x40] sm:$0xff]  ;;  %v4618_v20 = vld [vmem:[%s3409_s21 + $0x48] sm:$0xff]  ;;  %v2772_v58 = vld [vmem:[%s4588_s24 + $0xb0] sm:$0xff] }
 0x45f   : > { %4876 = vst [vmem:[#allocation28_spill] sm:$0xff] %v4615_v17  ;;  %2081 = vmatpush.msrb.mxu0 %v4615_v17  ;;  %v4624_v47 = vld [vmem:[%s3409_s21 + $0x50] sm:$0xff]  ;;  %2101 = vmatpush.msrb.mxu1 %v4618_v20  ;;  %v4643_v17 = vld [vmem:[%s3409_s21 + $0x8] sm:$0xff] }
 0x460   : > { %v2774_v43 = vmul.f32 -1.442695, %v1921_v18  ;;  %v2775_v16 = vmul.f32 -1.442695, %v1922_v24  ;;  %4877 = vst [vmem:[#allocation29_spill] sm:$0xff] %v4618_v20  ;;  %v4627_v18 = vld [vmem:[%s3409_s21 + $0x20] sm:$0xff]  ;;  %2121 = vmatpush.msrb.mxu2 %v4624_v47 }
 0x461   : > { %4878 = vst [vmem:[#allocation30_spill] sm:$0xff] %v4627_v18  ;;  %2082 = vmatpush.msrb.mxu0 %v4627_v18  ;;  %2102 = vmatpush.msrb.mxu1 %v4635_v23 }
 0x462   : > { %2978 = vpow2.f32 %v2774_v43  ;;  %v4632_v43 = vld [vmem:[%s3409_s21 + $0x58] sm:$0xff]  ;;  %2122 = vmatpush.msrb.mxu2 %v4473_v8  ;;  %s2777_s21 = smul.u32 4294967272, %s3228_s18  ;;  %s3162_s18 = scalar_lea.hbm %s3161_s30, 64 }
 0x463   : > { %2980 = vpow2.f32 %v2775_v16  ;;  %2141 = vmatpush.msrb.mxu3 %v4632_v43  ;;  %2083 = vmatpush.msrb.mxu0 %v4638_v6  ;;  %p3163_p2 = scmp.ne.s32.totalorder %s3161_s30, %s3162_s18  ;;  %p3168_p10 = scmp.lt.s32.totalorder %s3166_s27, %s3162_s18 }
 0x464   : > { %v1898_v24 = vpop.f32.mrf.mxu2  ;;  %2103 = vmatpush.msrb.mxu1 %v4643_v17  ;;  %2123 = vmatpush.msrb.mxu2 %v4485_v53  ;;  %s2587_s26 = scalar_lea.vmem %s3818_s8, %s2777_s21 [#allocation13] }
 0x465   : > { %v1923_v16 = vadd.f32 %v2772_v58, %v1898_v24  ;;  %2142 = vmatpush.msrb.mxu3 %v4476_v62  ;;  %2295 = vmatpush.msra.mxu0 %v4291_v25  ;;  %v1918_v25 = vpop.f32.mrf.mxu3  ;;  %p3164_p5 = pnand %p3163_p2, %p3330_p9  ;;  %p3169_p13 = por %p3168_p10, %p3167_p8 }
 0x466   : > { %2315 = vmatpush.msra.mxu1 %v4294_v26  ;;  %2335 = vmatpush.msra.mxu2 %v4297_v27 }
 0x467   : > { %v2776_v61 = vmul.f32 -1.442695, %v1923_v16  ;;  %2143 = vmatpush.msrb.mxu3 %v4488_v54  ;;  %2296 = vmatpush.msra.mxu0 %v4307_v29  ;;  %p3165_p7 = pneg %p3164_p5 }
 0x468   : > { %v2979_v20 = vpop.eup %2978  ;;  %2316 = vmatpush.msra.mxu1 %v4310_v34  ;;  %2336 = vmatpush.msra.mxu2 %v4313_v30 }
 0x469   : > { %v2981_v58 = vpop.eup %2980  ;;  %v4651_v24 = vadd.f32 1.0, %v2979_v20  ;;  %2982 = vpow2.f32 %v2776_v61  ;;  %2355 = vmatpush.msra.mxu3 %v4302_v28  ;;  %2297 = vmatpush.msra.mxu0 %v4323_v33  ;;  %v2773_v61 = vld [vmem:[%s4588_s24 + $0xb8] sm:$0xff]  ;;  %p3170_p0 = pnand %p3169_p13, %p3165_p7 }
 0x46a   : > { %v4655_v18 = vadd.f32 1.0, %v2981_v58  ;;  %2317 = vmatpush.msra.mxu1 %v4326_v35  ;;  %2337 = vmatpush.msra.mxu2 %v4329_v57  ;;  %v1924_v29 = vadd.f32 %v2773_v61, %v1918_v25  ;;  %v2783_v61 = vld [vmem:[%s2591_s12 + $0xd8] sm:$0xff] }
 0x46b   : > { %2984 = vrcp.f32 %v4651_v24  ;;  %2356 = vmatpush.msra.mxu3 %v4318_v32  ;;  %2298 = vmatpush.msra.mxu0 %v4339_v36  ;;  %v1948_v57 = vand.u32 2147483648, %v4651_v24  ;;  %vm1942_vm15 = vweird.f32 %v4651_v24 }
 0x46c   : > { %2986 = vrcp.f32 %v4655_v18  ;;  %2318 = vmatpush.msra.mxu1 %v4342_v37  ;;  %2338 = vmatpush.msra.mxu2 %v4345_v19  ;;  %v1946_v37 = vand.u32 2147483647, %v4651_v24  ;;  %vm1957_vm0 = vweird.f32 %v4655_v18 }
 0x46d   : > { %2357 = vmatpush.msra.mxu3 %v4334_v59  ;;  %2299 = vmatpush.msra.mxu0 %v4353_v2  ;;  %v1963_v59 = vand.u32 2147483648, %v4655_v18  ;;  %v1961_v2 = vand.u32 2147483647, %v4655_v18 }
 0x46e   : > { %2319 = vmatpush.msra.mxu1 %v4356_v42  ;;  %2339 = vmatpush.msra.mxu2 %v4359_v11  ;;  %v4879_v42 = vld [vmem:[#allocation24_spill] sm:$0xff]  ;;  %vm1947_vm3 = vcmp.eq.f32.partialorder %v1946_v37, 8.507059e+37 }
 0x46f   : > { %v2983_v26 = vpop.eup %2982  ;;  %2358 = vmatpush.msra.mxu3 %v4565_v5  ;;  %2300 = vmatpush.msra.mxu0 %v4366_v14  ;;  %vm1962_vm4 = vcmp.eq.f32.partialorder %v1961_v2, 8.507059e+37 }
 0x470   : > { %v4671_v27 = vadd.f32 1.0, %v2983_v26  ;;  %2320 = vmatpush.msra.mxu1 %v4369_v7  ;;  %2340 = vmatpush.msra.mxu2 %v4372_v39  ;;  %v1949_v39 = vor.u32 1.1754944e-38, %v1948_v57 }
 0x471   : > { %v2985_v28 = vpop.eup %2984  ;;  %2359 = vmatpush.msra.mxu3 %v4569_v38  ;;  %2301 = vmatpush.msra.mxu0 %v4381_v51 }
 0x472   : > { %v2987_v34 = vpop.eup %2986  ;;  %v1938_v30 = vmul.f32 %v2985_v28, %v4651_v24  ;;  %2988 = vrcp.f32 %v4671_v27  ;;  %vm1943_vm13 = vweird.f32 %v2985_v28  ;;  %2321 = vmatpush.msra.mxu1 %v4879_v42  ;;  %2341 = vmatpush.msra.mxu2 %v4387_v46  ;;  %v1964_v46 = vor.u32 1.1754944e-38, %v1963_v59 }
 0x473   : > { %v1953_v32 = vmul.f32 %v2987_v34, %v4655_v18  ;;  %2990 = vtanh.f32 %v1924_v29  ;;  %2360 = vmatpush.msra.mxu3 %v4574_v56  ;;  %vm1958_vm14 = vweird.f32 %v2987_v34  ;;  %2302 = vmatpush.msra.mxu0 %v4394_v48  ;;  %vm1944_vm1 = vmor %vm1942_vm15, %vm1943_vm13  ;;  %vm1972_vm6 = vweird.f32 %v4671_v27 }
 0x474   : > { %v1939_v33 = vsub.f32 1.0, %v1938_v30  ;;  %2322 = vmatpush.msra.mxu1 %v4397_v49  ;;  %2342 = vmatpush.msra.mxu2 %v4400_v50  ;;  %vm1959_vm2 = vmor %vm1957_vm0, %vm1958_vm14 }
 0x475   : > { %v1954_v35 = vsub.f32 1.0, %v1953_v32  ;;  %2361 = vmatpush.msra.mxu3 %v4578_v9  ;;  %2303 = vmatpush.msra.mxu0 %v4407_v55 }
 0x476   : > { %v1940_v36 = vmul.f32 %v2985_v28, %v1939_v33  ;;  %2323 = vmatpush.msra.mxu1 %v4410_v52  ;;  %2343 = vmatpush.msra.mxu2 %v4413_v15  ;;  %v1978_v15 = vand.u32 2147483648, %v4671_v27 }
 0x477   : > { %v1955_v19 = vmul.f32 %v2987_v34, %v1954_v35  ;;  %2362 = vmatpush.msra.mxu3 %v4582_v13  ;;  %2304 = vmatpush.msra.mxu0 %v4424_v60  ;;  %v1976_v60 = vand.u32 2147483647, %v4671_v27 }
 0x478   : > { %v4697_v11 = vpop.eup %2988  ;;  %v1941_v14 = vadd.f32 %v2985_v28, %v1940_v36  ;;  %2324 = vmatpush.msra.mxu1 %v4427_v10  ;;  %2344 = vmatpush.msra.mxu2 %v4430_v0  ;;  %v4880_v10 = vld [vmem:[#allocation25_spill] sm:$0xff]  ;;  %v4881_v0 = vld [vmem:[#allocation26_spill] sm:$0xff] }
 0x479   : > { %v1968_v7 = vmul.f32 %v4697_v11, %v4671_v27  ;;  %v1956_v51 = vadd.f32 %v2987_v34, %v1955_v19  ;;  %v2991_v48 = vpop.eup %2990  ;;  %2363 = vmatpush.msra.mxu3 %v4586_v44  ;;  %2305 = vmatpush.msra.mxu0 %v4437_v1  ;;  %vm1973_vm5 = vweird.f32 %v4697_v11  ;;  %v4882_v1 = vld [vmem:[#allocation27_spill] sm:$0xff]  ;;  %vm1977_vm8 = vcmp.eq.f32.partialorder %v1976_v60, 8.507059e+37 }
 0x47a   : > { %v1945_v5 = vsel %vm1944_vm1, %v2985_v28, %v1941_v14  ;;  %2325 = vmatpush.msra.mxu1 %v4440_v21  ;;  %2345 = vmatpush.msra.mxu2 %v4445_v63  ;;  %vm1974_vm7 = vmor %vm1972_vm6, %vm1973_vm5  ;;  %v4883_v63 = vld [vmem:[#allocation28_spill] sm:$0xff] }
 0x47b   : > { %v1969_v38 = vsub.f32 1.0, %v1968_v7  ;;  %v1950_v56 = vsel %vm1947_vm3, %v1949_v39, %v1945_v5  ;;  %v1960_v9 = vsel %vm1959_vm2, %v2987_v34, %v1956_v51  ;;  %2364 = vmatpush.msra.mxu3 %v4594_v45  ;;  %2306 = vmatpush.msra.mxu0 %v4448_v22  ;;  %v1979_v22 = vor.u32 1.1754944e-38, %v1978_v15 }
 0x47c   : > { %v1965_v49 = vsel %vm1962_vm4, %v1964_v46, %v1960_v9  ;;  %v1985_v50 = vmul.f32 %v2991_v48, %v1950_v56  ;;  %2326 = vmatpush.msra.mxu1 %v4451_v4  ;;  %2346 = vmatpush.msra.mxu2 %v4602_v31  ;;  %v4884_v4 = vld [vmem:[#allocation29_spill] sm:$0xff]  ;;  %v2781_v31 = vld [vmem:[%s2591_s12 + $0xc8] sm:$0xff] }
 0x47d   : > { %v1970_v20 = vmul.f32 %v4697_v11, %v1969_v38  ;;  %v1984_v13 = vmul.f32 %v1965_v49, %v4545_v41  ;;  %2365 = vmatpush.msra.mxu3 %v4598_v40  ;;  %2307 = vmatpush.msra.mxu0 %v4880_v10  ;;  %v4885_v41 = vld [vmem:[#allocation30_spill] sm:$0xff] }
 0x47e   : > { %2327 = vmatpush.msra.mxu1 %v4881_v0  ;;  %2347 = vmatpush.msra.mxu2 %v4882_v1 }
 0x47f   : > { %v4721_v55 = vadd.f32 %v1985_v50, %v1984_v13  ;;  %v1971_v52 = vadd.f32 %v4697_v11, %v1970_v20  ;;  %2366 = vmatpush.msra.mxu3 %v4605_v3  ;;  %2308 = vmatpush.msra.mxu0 %v4883_v63 }
 0x480   : > { %2328 = vmatpush.msra.mxu1 %v4884_v4  ;;  %2348 = vmatpush.msra.mxu2 %v4624_v47  ;;  %v2791_v4 = vld [vmem:[%s2599_s10 + $0xe8] sm:$0xff] }
 0x481   : > { %2992 = vtanh.f32 %v4721_v55  ;;  %v1975_v21 = vsel %vm1974_vm7, %v4697_v11, %v1971_v52  ;;  %2367 = vmatpush.msra.mxu3 %v4612_v12  ;;  %2309 = vmatpush.msra.mxu0 %v4885_v41 }
 0x482   : > { %v1980_v45 = vsel %vm1977_vm8, %v1979_v22, %v1975_v21  ;;  %2329 = vmatpush.msra.mxu1 %v4635_v23  ;;  %2349 = vmatpush.msra.mxu2 %v4473_v8  ;;  %v2780_v23 = vld [vmem:[%s2591_s12 + $0xc0] sm:$0xff] }
 0x483   : > { %2368 = vmatpush.msra.mxu3 %v4632_v43  ;;  %2310 = vmatpush.msra.mxu0 %v4638_v6 }
 0x484   : > { %2330 = vmatpush.msra.mxu1 %v4643_v17  ;;  %2350 = vmatpush.msra.mxu2 %v4485_v53  ;;  %v2782_v53 = vld [vmem:[%s2591_s12 + $0xd0] sm:$0xff] }
 0x485   : > { %2369 = vmatpush.msra.mxu3 %v4476_v62 }
 0x487   : > { %v2993_v44 = vpop.eup %2992  ;;  %2370 = vmatpush.msra.mxu3 %v4488_v54 }
 0x488   : > { %v1988_v40 = vmul.f32 %v2993_v44, %v1980_v45 }
 0x48a   : > { %2778 = vst [vmem:[%s2587_s26 + $0x28] sm:$0xff] %v1988_v40  ;;  %2084 = vmatmul.f32.vlgmr.msrb.gmra.mxu0 %v1988_v40  ;;  %2104 = vmatmul.f32.vlgmr.msrb.gmra.mxu1 %v1988_v40 }
 0x48b   : > { %2124 = vmatmul.f32.vlgmr.msrb.gmra.mxu2 %v1988_v40  ;;  %2144 = vmatmul.f32.vlgmr.msrb.gmra.mxu3 %v1988_v40 }
 0x507   : > { %v2085_v8 = vpop.f32.mrf.mxu0  ;;  %v2105_v3 = vpop.f32.mrf.mxu1 }
 0x508   : > { %v2148_v62 = vadd.f32 %v2780_v23, %v2085_v8  ;;  %v2149_v12 = vadd.f32 %v2781_v31, %v2105_v3  ;;  %v2792_v8 = vld [vmem:[%s2599_s10 + $0xf0] sm:$0xff] }
 0x50a   : > { %v2784_v6 = vmul.f32 -1.442695, %v2148_v62  ;;  %v2785_v47 = vmul.f32 -1.442695, %v2149_v12 }
 0x50c   : > { %2994 = vpow2.f32 %v2784_v6 }
 0x50d   : > { %2996 = vpow2.f32 %v2785_v47 }
 0x50e   : > { %v2125_v17 = vpop.f32.mrf.mxu2  ;;  %v2145_v25 = vpop.f32.mrf.mxu3 }
 0x50f   : > { %v2150_v18 = vadd.f32 %v2782_v53, %v2125_v17  ;;  %v2151_v29 = vadd.f32 %v2783_v61, %v2145_v25 }
 0x511   : > { %v2786_v43 = vmul.f32 -1.442695, %v2150_v18 }
 0x512   : > { %v2995_v16 = vpop.eup %2994 }
 0x513   : > { %v2997_v58 = vpop.eup %2996  ;;  %v2161_v24 = vadd.f32 1.0, %v2995_v16  ;;  %2998 = vpow2.f32 %v2786_v43  ;;  %v2793_v16 = vld [vmem:[%s2599_s10 + $0xf8] sm:$0xff] }
 0x514   : > { %v2162_v54 = vadd.f32 1.0, %v2997_v58 }
 0x515   : > { %3000 = vrcp.f32 %v2161_v24  ;;  %v2175_v57 = vand.u32 2147483648, %v2161_v24  ;;  %v2173_v37 = vand.u32 2147483647, %v2161_v24  ;;  %vm2169_vm11 = vweird.f32 %v2161_v24 }
 0x516   : > { %3002 = vrcp.f32 %v2162_v54  ;;  %v2190_v59 = vand.u32 2147483648, %v2162_v54  ;;  %v2188_v2 = vand.u32 2147483647, %v2162_v54  ;;  %vm2184_vm12 = vweird.f32 %v2162_v54 }
 0x517   : > { %v2176_v7 = vor.u32 1.1754944e-38, %v2175_v57  ;;  %vm2174_vm15 = vcmp.eq.f32.partialorder %v2173_v37, 8.507059e+37 }
 0x518   : > { %v2191_v51 = vor.u32 1.1754944e-38, %v2190_v59  ;;  %vm2189_vm0 = vcmp.eq.f32.partialorder %v2188_v2, 8.507059e+37 }
 0x519   : > { %v2999_v26 = vpop.eup %2998 }
 0x51a   : > { %v2163_v27 = vadd.f32 1.0, %v2999_v26 }
 0x51b   : > { %v3001_v28 = vpop.eup %3000 }
 0x51c   : > { %v3003_v34 = vpop.eup %3002  ;;  %v2165_v30 = vmul.f32 %v3001_v28, %v2161_v24  ;;  %3004 = vrcp.f32 %v2163_v27  ;;  %vm2170_vm9 = vweird.f32 %v3001_v28  ;;  %v2205_v15 = vand.u32 2147483648, %v2163_v27 }
 0x51d   : > { %v2180_v32 = vmul.f32 %v3003_v34, %v2162_v54  ;;  %3006 = vtanh.f32 %v2151_v29  ;;  %vm2185_vm10 = vweird.f32 %v3003_v34  ;;  %vm2171_vm13 = vmor %vm2169_vm11, %vm2170_vm9  ;;  %vm2199_vm2 = vweird.f32 %v2163_v27 }
 0x51e   : > { %v2166_v33 = vsub.f32 1.0, %v2165_v30  ;;  %vm2186_vm14 = vmor %vm2184_vm12, %vm2185_vm10  ;;  %v2203_v60 = vand.u32 2147483647, %v2163_v27  ;;  %v2206_v0 = vor.u32 1.1754944e-38, %v2205_v15 }
 0x51f   : > { %v2181_v35 = vsub.f32 1.0, %v2180_v32 }
 0x520   : > { %v2167_v36 = vmul.f32 %v3001_v28, %v2166_v33  ;;  %vm2204_vm4 = vcmp.eq.f32.partialorder %v2203_v60, 8.507059e+37 }
 0x521   : > { %v2182_v19 = vmul.f32 %v3003_v34, %v2181_v35 }
 0x522   : > { %v3005_v42 = vpop.eup %3004  ;;  %v2168_v11 = vadd.f32 %v3001_v28, %v2167_v36 }
 0x523   : > { %v2195_v14 = vmul.f32 %v3005_v42, %v2163_v27  ;;  %v2183_v39 = vadd.f32 %v3003_v34, %v2182_v19  ;;  %v3007_v5 = vpop.eup %3006  ;;  %vm2200_vm1 = vweird.f32 %v3005_v42 }
 0x524   : > { %v2172_v46 = vsel %vm2171_vm13, %v3001_v28, %v2168_v11  ;;  %vm2201_vm3 = vmor %vm2199_vm2, %vm2200_vm1 }
 0x525   : > { %v2196_v48 = vsub.f32 1.0, %v2195_v14  ;;  %v2177_v38 = vsel %vm2174_vm15, %v2176_v7, %v2172_v46  ;;  %v2187_v56 = vsel %vm2186_vm14, %v3003_v34, %v2183_v39 }
 0x526   : > { %v2192_v9 = vsel %vm2189_vm0, %v2191_v51, %v2187_v56  ;;  %v2212_v49 = vmul.f32 %v3007_v5, %v2177_v38 }
 0x527   : > { %v2197_v50 = vmul.f32 %v3005_v42, %v2196_v48  ;;  %v2211_v20 = vmul.f32 %v2192_v9, %v4721_v55  ;;  %v2790_v55 = vld [vmem:[%s2599_s10 + $0xe0] sm:$0xff] }
 0x529   : > { %v4757_v13 = vadd.f32 %v2212_v49, %v2211_v20  ;;  %v2198_v52 = vadd.f32 %v3005_v42, %v2197_v50 }
 0x52b   : > { %3008 = vtanh.f32 %v4757_v13  ;;  %v2202_v10 = vsel %vm2201_vm3, %v3005_v42, %v2198_v52 }
 0x52c   : > { %v2207_v21 = vsel %vm2204_vm4, %v2206_v0, %v2202_v10 }
 0x531   : > { %v3009_v1 = vpop.eup %3008 }
 0x532   : > { %v2215_v63 = vmul.f32 %v3009_v1, %v2207_v21 }
 0x534   : > { %2311 = vmatmul.f32.vlgmr.msra.gmra.mxu0 %v2215_v63  ;;  %2788 = vst [vmem:[%s2595_s9 + $0x30] sm:$0xff] %v2215_v63  ;;  %2331 = vmatmul.f32.vlgmr.msra.gmra.mxu1 %v2215_v63 }
 0x535   : > { %2351 = vmatmul.f32.vlgmr.msra.gmra.mxu2 %v2215_v63  ;;  %2371 = vmatmul.f32.vlgmr.msra.gmra.mxu3 %v2215_v63 }
 0x5b1   : > { %v2312_v22 = vpop.f32.mrf.mxu0  ;;  %v2332_v41 = vpop.f32.mrf.mxu1 }
 0x5b2   : > { %v2375_v44 = vadd.f32 %v2790_v55, %v2312_v22  ;;  %v2376_v45 = vadd.f32 %v2791_v4, %v2332_v41 }
 0x5b4   : > { %v2794_v40 = vmul.f32 -1.442695, %v2375_v44  ;;  %v2795_v23 = vmul.f32 -1.442695, %v2376_v45 }
 0x5b6   : > { %3010 = vpow2.f32 %v2794_v40 }
 0x5b7   : > { %3012 = vpow2.f32 %v2795_v23 }
 0x5b8   : > { %v2352_v31 = vpop.f32.mrf.mxu2  ;;  %v2372_v17 = vpop.f32.mrf.mxu3 }
 0x5b9   : > { %v2377_v3 = vadd.f32 %v2792_v8, %v2352_v31  ;;  %v2378_v24 = vadd.f32 %v2793_v16, %v2372_v17 }
 0x5bb   : > { %v2796_v62 = vmul.f32 -1.442695, %v2377_v3 }
 0x5bc   : > { %v3011_v12 = vpop.eup %3010 }
 0x5bd   : > { %v3013_v6 = vpop.eup %3012  ;;  %v2388_v47 = vadd.f32 1.0, %v3011_v12  ;;  %3014 = vpow2.f32 %v2796_v62 }
 0x5be   : > { %v2389_v53 = vadd.f32 1.0, %v3013_v6 }
 0x5bf   : > { %3016 = vrcp.f32 %v2388_v47  ;;  %v2402_v28 = vand.u32 2147483648, %v2388_v47  ;;  %v2400_v30 = vand.u32 2147483647, %v2388_v47  ;;  %vm2396_vm7 = vweird.f32 %v2388_v47 }
 0x5c0   : > { %3018 = vrcp.f32 %v2389_v53  ;;  %v2417_v29 = vand.u32 2147483648, %v2389_v53  ;;  %v2415_v33 = vand.u32 2147483647, %v2389_v53  ;;  %vm2411_vm8 = vweird.f32 %v2389_v53 }
 0x5c1   : > { %v2403_v36 = vor.u32 1.1754944e-38, %v2402_v28  ;;  %vm2401_vm11 = vcmp.eq.f32.partialorder %v2400_v30, 8.507059e+37 }
 0x5c2   : > { %v2418_v19 = vor.u32 1.1754944e-38, %v2417_v29  ;;  %vm2416_vm12 = vcmp.eq.f32.partialorder %v2415_v33, 8.507059e+37 }
 0x5c3   : > { %v3015_v18 = vpop.eup %3014 }
 0x5c4   : > { %v2390_v43 = vadd.f32 1.0, %v3015_v18 }
 0x5c5   : > { %v3017_v58 = vpop.eup %3016 }
 0x5c6   : > { %v3019_v54 = vpop.eup %3018  ;;  %v2392_v25 = vmul.f32 %v3017_v58, %v2388_v47  ;;  %3020 = vrcp.f32 %v2390_v43  ;;  %vm2397_vm5 = vweird.f32 %v3017_v58  ;;  %v2432_v56 = vand.u32 2147483648, %v2390_v43 }
 0x5c7   : > { %v2407_v26 = vmul.f32 %v3019_v54, %v2389_v53  ;;  %3022 = vtanh.f32 %v2378_v24  ;;  %vm2412_vm6 = vweird.f32 %v3019_v54  ;;  %vm2398_vm9 = vmor %vm2396_vm7, %vm2397_vm5  ;;  %vm2426_vm14 = vweird.f32 %v2390_v43 }
 0x5c8   : > { %v2393_v27 = vsub.f32 1.0, %v2392_v25  ;;  %vm2413_vm10 = vmor %vm2411_vm8, %vm2412_vm6  ;;  %v2430_v9 = vand.u32 2147483647, %v2390_v43  ;;  %v2433_v50 = vor.u32 1.1754944e-38, %v2432_v56 }
 0x5c9   : > { %v2408_v61 = vsub.f32 1.0, %v2407_v26 }
 0x5ca   : > { %v2394_v34 = vmul.f32 %v3017_v58, %v2393_v27  ;;  %vm2431_vm0 = vcmp.eq.f32.partialorder %v2430_v9, 8.507059e+37 }
 0x5cb   : > { %v2409_v32 = vmul.f32 %v3019_v54, %v2408_v61 }
 0x5cc   : > { %v3021_v35 = vpop.eup %3020  ;;  %v2395_v57 = vadd.f32 %v3017_v58, %v2394_v34 }
 0x5cd   : > { %v2422_v59 = vmul.f32 %v3021_v35, %v2390_v43  ;;  %v2410_v37 = vadd.f32 %v3019_v54, %v2409_v32  ;;  %v3023_v42 = vpop.eup %3022  ;;  %vm2427_vm13 = vweird.f32 %v3021_v35 }
 0x5ce   : > { %v2399_v2 = vsel %vm2398_vm9, %v3017_v58, %v2395_v57  ;;  %vm2428_vm15 = vmor %vm2426_vm14, %vm2427_vm13 }
 0x5cf   : > { %v2423_v11 = vsub.f32 1.0, %v2422_v59  ;;  %v2404_v14 = vsel %vm2401_vm11, %v2403_v36, %v2399_v2  ;;  %v2414_v7 = vsel %vm2413_vm10, %v3019_v54, %v2410_v37 }
 0x5d0   : > { %v2419_v39 = vsel %vm2416_vm12, %v2418_v19, %v2414_v7  ;;  %v2439_v51 = vmul.f32 %v3023_v42, %v2404_v14 }
 0x5d1   : > { %v2424_v46 = vmul.f32 %v3021_v35, %v2423_v11  ;;  %v2438_v5 = vmul.f32 %v2419_v39, %v4757_v13 }
 0x5d3   : > { %v2440_v48 = vadd.f32 %v2439_v51, %v2438_v5  ;;  %v2425_v38 = vadd.f32 %v3021_v35, %v2424_v46 }
 0x5d5   : > { %3024 = vtanh.f32 %v2440_v48  ;;  %v2429_v49 = vsel %vm2428_vm15, %v3021_v35, %v2425_v38 }
 0x5d6   : > { %v2434_v13 = vsel %vm2431_vm0, %v2433_v50, %v2429_v49 }
 0x5db   : > { %v3025_v20 = vpop.eup %3024 }
 0x5dc   : > { %v2442_v52 = vmul.f32 %v3025_v20, %v2434_v13 }
 0x5de   : > { %2798 = vst [vmem:[%s2603_s23 + $0x38] sm:$0xff] %v2442_v52 }
 0x5df   : > { %3173 = shalt.err (!%p3170_p0)
}
 0x5e0   : > { %s3244_s15 = smov 128   ;;  %s3245_s21 = smov 8  }
 0x5e1   : > { %2819 = dma.vmem_to_hbm [thread:$0]  (%p3330_p9), %s2468_s17, 1024, %s2470_s20, %s2449_s29, %s3244_s15, %s3244_s15, %s3245_s21  }
 0x5e2 PF: > { %s4886_s26 = sld [smem:[#allocation18_spill]]  ;;  %p2835_p1 = pnand %p2679_p12, %p3337_p11 }
 0x5e3   : > { %s4888_s12 = sld [smem:[#allocation20_spill]] }
 0x5e4   : > { %p2836_p3 = pneg %p2835_p1 }
 0x5e8   : > { %s2484_s7 = sand.u32 1, %s4886_s26  }
 0x5e9   : > { %s2485_s9 = scalar_lea.sflag [#allocation7], %s2484_s7 }
 0x5ea   : > { %3211 = dma.done.wait (%p2836_p3), %s2485_s9, 1024  }
 0x5eb   : > { %3213 = vsyncadd (%p2836_p3), %s2485_s9, 4294966272  ;;  %s26_s20 = sadd.s32 1, %s4888_s12   ;;  %s4889_s5 = sld [smem:[#allocation19_spill]] }
 0x5ec   : > { %p23_p6 = scmp.ge.s32.totalorder %s26_s20, 4   ;;  %s4890_s17 = sld [smem:[#allocation22_spill]] }
 0x5ed   : > { %s4891_s28 = sld [smem:[#allocation21_spill]]  ;;  %s4892_s15 = smov %s3220_s16 }
 0x5ee   : > { %s4894_s18 = smov %s3232_s19 }
 0x5ef   :  { %25 = sbr.rel (!%p23_p6) target bundleno = 13 (0xd), region = 138 }
 0x5f1   : > { %s4893_s16 = smov %s4889_s5 }
 0x5f3   : > { %s4895_s19 = smov %s4891_s28 }
 0x5f4   :  { %2491 = vsyncpa [#allocation6], 1 }
 0x5f5   :  { %2493 = vsyncpa [#allocation6 + $0x1], 1 }
 0x5f6   :  { %2494 = vsyncpa [#allocation9], 1 }
 0x5f7   :  { %2496 = vsyncpa [#allocation9 + $0x1], 1 }
 0x5f8   :  { %2497 = vsyncpa [#allocation12], 1 }
 0x5f9   :  { %2499 = vsyncpa [#allocation12 + $0x1], 1 }
 0x5fa   :  { %2500 = vsyncpa [#allocation7], 1 }
 0x5fb   :  { %2502 = vsyncpa [#allocation7 + $0x1], 1 }

</bundles_post_ra>
